<compile_context>
chip_gen: v7x
topology: tpu7x:2x2x1
jax: 0.10.0
libtpu: 0.0.40
codegen_flags: <defaults>
</compile_context>

<pallas_src>
import jax
import jax.numpy as jnp
import numpy as np
from jax.experimental import pallas as pl
from jax.experimental.pallas import tpu as pltpu


def _build_kernel(c_in, mt, m_true):
    inv_m = 1.0 / float(m_true)

    def kernel(x_ref, w1_ref, w2_ref, w3_ref, w4_ref, pp_ref, o_ref,
               s1_sum, s1_sq, s2_sum, s2_sq, s3_sum, s3_sq):
        phase = pl.program_id(0)
        tile = pl.program_id(1)
        eps = jnp.float32(1e-5)

        # Validity mask for padded lanes, folded into the reduction vector so
        # the per-channel sums only count real rows.
        col = jax.lax.broadcasted_iota(jnp.int32, (mt, 1), 0) + tile * mt
        red_vec = (col < m_true).astype(jnp.float32)             # (mt, 1)

        # Packed per-channel params: channels on sublanes, one param per lane.
        b1f = pp_ref[0:64, 0:1]
        g1, be1 = pp_ref[0:64, 1:2], pp_ref[0:64, 2:3]
        b2 = pp_ref[0:128, 3:4]
        g2, be2 = pp_ref[0:128, 4:5], pp_ref[0:128, 5:6]
        b3 = pp_ref[0:64, 6:7]
        g3, be3 = pp_ref[0:64, 7:8], pp_ref[0:64, 8:9]
        b4 = pp_ref[0:1, 9:10]

        def accumulate(h, sum_ref, sq_ref):
            # Per-channel masked sum / sum-of-squares on the MXU (XLU stays free).
            sum_ref[...] += jnp.dot(h, red_vec, preferred_element_type=jnp.float32)
            sq_ref[...] += jnp.dot(h * h, red_vec, preferred_element_type=jnp.float32)

        def bn_apply(h, sum_ref, sq_ref, g, b):
            mu = sum_ref[...] * inv_m                             # (C, 1)
            var = jnp.maximum(sq_ref[...] * inv_m - mu * mu, 0.0)
            scale = jax.lax.rsqrt(var + eps) * g
            return (h - mu) * scale + b

        x = x_ref[...]                                            # (c_in, mt) f32

        def layer1():
            # BN0 already folded into w1/b1; K=c_in is tiny -> VPU FMAs, no MXU.
            acc = w1_ref[:, 0:1] * x[0:1, :]
            for c in range(1, c_in):
                acc = acc + w1_ref[:, c:c + 1] * x[c:c + 1, :]
            acc = acc + b1f
            return jnp.where(acc >= 0.0, acc, 0.2 * acc)          # LeakyReLU(0.2)

        def layer2(h1):
            h = bn_apply(h1, s1_sum, s1_sq, g1, be1)
            return jnp.dot(w2_ref[...], h.astype(jnp.bfloat16),
                           preferred_element_type=jnp.float32) + b2

        def layer3(h2):
            h = bn_apply(h2, s2_sum, s2_sq, g2, be2)
            h = jnp.dot(w3_ref[...], h.astype(jnp.bfloat16),
                        preferred_element_type=jnp.float32) + b3
            return jnp.maximum(h, 0.0)                            # ReLU

        def layer4(h3):
            h = bn_apply(h3, s3_sum, s3_sq, g3, be3)
            h = jnp.dot(w4_ref[...], h, preferred_element_type=jnp.float32) + b4
            return jax.nn.sigmoid(h)

        first = tile == 0

        @pl.when(phase == 0)
        def _():
            @pl.when(first)
            def _():
                s1_sum[...] = jnp.zeros_like(s1_sum)
                s1_sq[...] = jnp.zeros_like(s1_sq)
            accumulate(layer1(), s1_sum, s1_sq)

        @pl.when(phase == 1)
        def _():
            @pl.when(first)
            def _():
                s2_sum[...] = jnp.zeros_like(s2_sum)
                s2_sq[...] = jnp.zeros_like(s2_sq)
            accumulate(layer2(layer1()), s2_sum, s2_sq)

        @pl.when(phase == 2)
        def _():
            @pl.when(first)
            def _():
                s3_sum[...] = jnp.zeros_like(s3_sum)
                s3_sq[...] = jnp.zeros_like(s3_sq)
            accumulate(layer3(layer2(layer1())), s3_sum, s3_sq)

        @pl.when(phase == 3)
        def _():
            o_ref[...] = layer4(layer3(layer2(layer1()))).astype(o_ref.dtype)

    return kernel


def simple_conv_disc(x, params, *, row_tile=512):
    """x: (B, L, C_in) float32 -> (B, L, 1) float32."""
    B, L, c_in = x.shape
    m = B * L
    eps = 1e-5

    # (B, L, C) -> (C, B*L): channels on sublanes, rows on the 128-lane axis.
    x2d = jnp.transpose(x.reshape(m, c_in)).astype(jnp.float32)

    # ---- fold BN0 into conv1 (exact: BN0 stats depend only on the input) ----
    mu0 = jnp.mean(x2d, axis=1)
    var0 = jnp.mean((x2d - mu0[:, None]) ** 2, axis=1)
    scale0 = params["bn0_g"] * jax.lax.rsqrt(var0 + eps)
    shift0 = params["bn0_b"] - mu0 * scale0
    w1f = (params["w1"] * scale0[None, :]).astype(jnp.float32)       # (64, c_in)
    b1f = params["b1"] + params["w1"] @ shift0                       # (64,)

    # ---- pack all small per-channel vectors into one (128, 16) VMEM input ----
    pp = jnp.zeros((128, 16), jnp.float32)
    packed = [
        (b1f, 0), (params["bn1_g"], 1), (params["bn1_b"], 2),
        (params["b2"], 3), (params["bn2_g"], 4), (params["bn2_b"], 5),
        (params["b3"], 6), (params["bn3_g"], 7), (params["bn3_b"], 8),
        (params["b4"], 9),
    ]
    for vec, j in packed:
        pp = pp.at[:vec.shape[0], j].set(vec.astype(jnp.float32))

    w2_bf = params["w2"].astype(jnp.bfloat16)                        # (128, 64)
    w3_bf = params["w3"].astype(jnp.bfloat16)                        # (64, 128)
    w4 = params["w4"].astype(jnp.float32)                            # (1, 64)

    # ---- lane-axis (B*L) row tiling; pad + mask if not a tile multiple ----
    mt = m if m <= row_tile else row_tile
    n_tiles = int(pl.cdiv(m, mt))
    m_pad = n_tiles * mt
    if m_pad != m:
        x2d = jnp.pad(x2d, ((0, 0), (0, m_pad - m)))

    kernel = _build_kernel(c_in, mt, m)

    grid = (4, n_tiles)  # (phase, row tile): BN1/BN2/BN3 stats passes + output
    out2d = pl.pallas_call(
        kernel,
        out_shape=jax.ShapeDtypeStruct((1, m_pad), jnp.float32),
        grid_spec=pltpu.PrefetchScalarGridSpec(
            num_scalar_prefetch=0,
            grid=grid,
            in_specs=[
                pl.BlockSpec((c_in, mt), lambda p, t: (0, t)),       # x (C, M)
                pl.BlockSpec((64, c_in), lambda p, t: (0, 0)),       # w1 (BN0 folded)
                pl.BlockSpec((128, 64), lambda p, t: (0, 0)),        # w2 bf16
                pl.BlockSpec((64, 128), lambda p, t: (0, 0)),        # w3 bf16
                pl.BlockSpec((1, 64), lambda p, t: (0, 0)),          # w4
                pl.BlockSpec((128, 16), lambda p, t: (0, 0)),        # packed params
            ],
            out_specs=pl.BlockSpec((1, mt), lambda p, t: (0, t)),
            scratch_shapes=[
                pltpu.VMEM((64, 1), jnp.float32),    # BN1 sum
                pltpu.VMEM((64, 1), jnp.float32),    # BN1 sum of squares
                pltpu.VMEM((128, 1), jnp.float32),   # BN2 sum
                pltpu.VMEM((128, 1), jnp.float32),   # BN2 sum of squares
                pltpu.VMEM((64, 1), jnp.float32),    # BN3 sum
                pltpu.VMEM((64, 1), jnp.float32),    # BN3 sum of squares
            ],
        ),
        compiler_params=pltpu.CompilerParams(
            # Stats accumulate across row tiles in persistent scratch and the
            # phases are ordered, so both grid axes must stay sequential.
            dimension_semantics=("arbitrary", "arbitrary"),
            vmem_limit_bytes=32 * 1024 * 1024,
        ),
    )(x2d, w1f, w2_bf, w3_bf, w4, pp)

    return out2d[0, :m].reshape(B, L, 1)


def make_params(key, input_features):
    """Synthetic parameters; all weights stored in (C_out, C_in) matmul form."""
    ks = jax.random.split(key, 8)

    def w(k, cout, cin):
        bound = 1.0 / np.sqrt(cin)
        return jax.random.uniform(k, (cout, cin), jnp.float32, -bound, bound)

    def b(k, cout, cin):
        bound = 1.0 / np.sqrt(cin)
        return jax.random.uniform(k, (cout,), jnp.float32, -bound, bound)

    p = {}
    p["bn0_g"] = jnp.ones((input_features,), jnp.float32)
    p["bn0_b"] = jnp.zeros((input_features,), jnp.float32)
    p["w1"], p["b1"] = w(ks[0], 64, input_features), b(ks[1], 64, input_features)
    p["bn1_g"], p["bn1_b"] = jnp.ones((64,), jnp.float32), jnp.zeros((64,), jnp.float32)
    p["w2"], p["b2"] = w(ks[2], 128, 64), b(ks[3], 128, 64)
    p["bn2_g"], p["bn2_b"] = jnp.ones((128,), jnp.float32), jnp.zeros((128,), jnp.float32)
    p["w3"], p["b3"] = w(ks[4], 64, 128), b(ks[5], 64, 128)
    p["bn3_g"], p["bn3_b"] = jnp.ones((64,), jnp.float32), jnp.zeros((64,), jnp.float32)
    p["w4"], p["b4"] = w(ks[6], 1, 64), b(ks[7], 1, 64)
    return p


def reference_forward(x, p):
    """Pure-JAX f32 reference of the same forward pass (correctness check)."""
    eps = 1e-5
    B, L, C = x.shape
    h = jnp.transpose(x.reshape(B * L, C))          # (C, M)

    def bn(h, g, b):
        mu = jnp.mean(h, axis=1, keepdims=True)
        var = jnp.mean((h - mu) ** 2, axis=1, keepdims=True)
        return (h - mu) / jnp.sqrt(var + eps) * g[:, None] + b[:, None]

    h = bn(h, p["bn0_g"], p["bn0_b"])
    h = p["w1"] @ h + p["b1"][:, None]
    h = jnp.where(h >= 0, h, 0.2 * h)
    h = bn(h, p["bn1_g"], p["bn1_b"])
    h = p["w2"] @ h + p["b2"][:, None]
    h = bn(h, p["bn2_g"], p["bn2_b"])
    h = p["w3"] @ h + p["b3"][:, None]
    h = jnp.maximum(h, 0.0)
    h = bn(h, p["bn3_g"], p["bn3_b"])
    h = p["w4"] @ h + p["b4"][:, None]
    h = jax.nn.sigmoid(h)
    return jnp.transpose(h).reshape(B, L, 1)


if __name__ == "__main__":
    B, L, C_in = 2, 16, 4
    key = jax.random.PRNGKey(0)
    kx, kp = jax.random.split(key)

    x = jax.random.normal(kx, (B, L, C_in), jnp.float32)
    params = make_params(kp, C_in)

    out = simple_conv_disc(x, params)
    out = jax.block_until_ready(out)

    ref = reference_forward(x, params)
    # bf16 operands on the two wide matmuls (f32 accumulation) -> loose tolerance
    # vs. the all-f32 reference; BN stats themselves stay f32 in the kernel.
    np.testing.assert_allclose(np.asarray(out), np.asarray(ref), rtol=2e-2, atol=2e-2)

    assert out.shape == (B, L, 1)
    print("KERNEL_OK")
</pallas_src>

<mosaic_0001>
module attributes {stable_mosaic.version = 11 : i64} {
  func.func @kernel(%arg0: i32, %arg1: i32, %arg2: memref<4x32xf32, #tpu.memory_space<vmem>>, %arg3: memref<64x4xf32, #tpu.memory_space<vmem>>, %arg4: memref<128x64xbf16, #tpu.memory_space<vmem>>, %arg5: memref<64x128xbf16, #tpu.memory_space<vmem>>, %arg6: memref<1x64xf32, #tpu.memory_space<vmem>>, %arg7: memref<128x16xf32, #tpu.memory_space<vmem>>, %arg8: memref<1x32xf32, #tpu.memory_space<vmem>>, %arg9: memref<64x1xf32, #tpu.memory_space<vmem>>, %arg10: memref<64x1xf32, #tpu.memory_space<vmem>>, %arg11: memref<128x1xf32, #tpu.memory_space<vmem>>, %arg12: memref<128x1xf32, #tpu.memory_space<vmem>>, %arg13: memref<64x1xf32, #tpu.memory_space<vmem>>, %arg14: memref<64x1xf32, #tpu.memory_space<vmem>>) attributes {dimension_semantics = [#tpu.dimension_semantics<arbitrary>, #tpu.dimension_semantics<arbitrary>], iteration_bounds = array<i64: 4, 1>, scalar_prefetch = 0 : i64, scratch_operands = 6 : i64, tpu.core_type = #tpu.core_type<tc>, window_params = [{transform_indices = @transform_0, window_bounds = array<i64: 4, 32>}, {pipeline_mode = #tpu.pipeline_mode<synchronous>, transform_indices = @transform_1, window_bounds = array<i64: 64, 4>}, {pipeline_mode = #tpu.pipeline_mode<synchronous>, transform_indices = @transform_2, window_bounds = array<i64: 128, 64>}, {pipeline_mode = #tpu.pipeline_mode<synchronous>, transform_indices = @transform_3, window_bounds = array<i64: 64, 128>}, {pipeline_mode = #tpu.pipeline_mode<synchronous>, transform_indices = @transform_4, window_bounds = array<i64: 1, 64>}, {pipeline_mode = #tpu.pipeline_mode<synchronous>, transform_indices = @transform_5, window_bounds = array<i64: 128, 16>}, {transform_indices = @transform_6, window_bounds = array<i64: 1, 32>}]} {
    %0 = tpu.iota {dimensions = array<i32: 0>} : vector<32x1xi32>
    %c32_i32 = arith.constant 32 : i32
    %1 = arith.muli %arg1, %c32_i32 : i32
    %2 = vector.broadcast %1 : i32 to vector<32x1xi32>
    %3 = arith.addi %0, %2 : vector<32x1xi32>
    %c32_i32_0 = arith.constant 32 : i32
    %4 = vector.broadcast %c32_i32_0 : i32 to vector<32x1xi32>
    %5 = arith.cmpi slt, %3, %4 : vector<32x1xi32>
    %6 = arith.extui %5 : vector<32x1xi1> to vector<32x1xi32>
    %7 = arith.sitofp %6 : vector<32x1xi32> to vector<32x1xf32>
    %c0 = arith.constant 0 : index
    %c0_1 = arith.constant 0 : index
    %8 = vector.load %arg7[%c0, %c0_1] : memref<128x16xf32, #tpu.memory_space<vmem>>, vector<64x1xf32>
    %c0_2 = arith.constant 0 : index
    %c1 = arith.constant 1 : index
    %9 = vector.load %arg7[%c0_2, %c1] : memref<128x16xf32, #tpu.memory_space<vmem>>, vector<64x1xf32>
    %c0_3 = arith.constant 0 : index
    %c2 = arith.constant 2 : index
    %10 = vector.load %arg7[%c0_3, %c2] : memref<128x16xf32, #tpu.memory_space<vmem>>, vector<64x1xf32>
    %c0_4 = arith.constant 0 : index
    %c3 = arith.constant 3 : index
    %11 = vector.load %arg7[%c0_4, %c3] : memref<128x16xf32, #tpu.memory_space<vmem>>, vector<128x1xf32>
    %c0_5 = arith.constant 0 : index
    %c4 = arith.constant 4 : index
    %12 = vector.load %arg7[%c0_5, %c4] : memref<128x16xf32, #tpu.memory_space<vmem>>, vector<128x1xf32>
    %c0_6 = arith.constant 0 : index
    %c5 = arith.constant 5 : index
    %13 = vector.load %arg7[%c0_6, %c5] : memref<128x16xf32, #tpu.memory_space<vmem>>, vector<128x1xf32>
    %c0_7 = arith.constant 0 : index
    %c6 = arith.constant 6 : index
    %14 = vector.load %arg7[%c0_7, %c6] : memref<128x16xf32, #tpu.memory_space<vmem>>, vector<64x1xf32>
    %c0_8 = arith.constant 0 : index
    %c7 = arith.constant 7 : index
    %15 = vector.load %arg7[%c0_8, %c7] : memref<128x16xf32, #tpu.memory_space<vmem>>, vector<64x1xf32>
    %c0_9 = arith.constant 0 : index
    %c8 = arith.constant 8 : index
    %16 = vector.load %arg7[%c0_9, %c8] : memref<128x16xf32, #tpu.memory_space<vmem>>, vector<64x1xf32>
    %c0_10 = arith.constant 0 : index
    %c9 = arith.constant 9 : index
    %17 = vector.load %arg7[%c0_10, %c9] : memref<128x16xf32, #tpu.memory_space<vmem>>, vector<1x1xf32>
    %c0_11 = arith.constant 0 : index
    %c0_12 = arith.constant 0 : index
    %18 = vector.load %arg2[%c0_11, %c0_12] : memref<4x32xf32, #tpu.memory_space<vmem>>, vector<4x32xf32>
    %c0_i32 = arith.constant 0 : i32
    %19 = arith.cmpi eq, %arg1, %c0_i32 : i32
    %c0_i32_13 = arith.constant 0 : i32
    %20 = arith.cmpi eq, %arg0, %c0_i32_13 : i32
    %21 = arith.extui %20 : i1 to i32
    %c0_i32_14 = arith.constant 0 : i32
    %22 = arith.cmpi ne, %21, %c0_i32_14 : i32
    scf.if %22 {
      %32 = arith.extui %19 : i1 to i32
      %c0_i32_20 = arith.constant 0 : i32
      %33 = arith.cmpi ne, %32, %c0_i32_20 : i32
      scf.if %33 {
        %cst_41 = arith.constant 0.000000e+00 : f32
        %73 = vector.broadcast %cst_41 : f32 to vector<64x1xf32>
        %c0_42 = arith.constant 0 : index
        %c0_43 = arith.constant 0 : index
        %74 = vector.load %arg9[%c0_42, %c0_43] : memref<64x1xf32, #tpu.memory_space<vmem>>, vector<64x1xf32>
        tpu.vector_store %arg9[%c0_42, %c0_43], %73 {strides = array<i32>} : memref<64x1xf32, #tpu.memory_space<vmem>>, vector<64x1xf32>,
        %cst_44 = arith.constant 0.000000e+00 : f32
        %75 = vector.broadcast %cst_44 : f32 to vector<64x1xf32>
        %c0_45 = arith.constant 0 : index
        %c0_46 = arith.constant 0 : index
        %76 = vector.load %arg10[%c0_45, %c0_46] : memref<64x1xf32, #tpu.memory_space<vmem>>, vector<64x1xf32>
        tpu.vector_store %arg10[%c0_45, %c0_46], %75 {strides = array<i32>} : memref<64x1xf32, #tpu.memory_space<vmem>>, vector<64x1xf32>,
      } else {
      }
      %c0_21 = arith.constant 0 : index
      %c0_22 = arith.constant 0 : index
      %34 = vector.load %arg3[%c0_21, %c0_22] : memref<64x4xf32, #tpu.memory_space<vmem>>, vector<64x1xf32>
      %35 = vector.extract_strided_slice %18 {offsets = [0, 0], sizes = [1, 32], strides = [1, 1]} : vector<4x32xf32> to vector<1x32xf32>
      %36 = vector.broadcast %34 : vector<64x1xf32> to vector<64x32xf32>
      %37 = vector.broadcast %35 : vector<1x32xf32> to vector<64x32xf32>
      %38 = arith.mulf %36, %37 : vector<64x32xf32>
      %c0_23 = arith.constant 0 : index
      %c1_24 = arith.constant 1 : index
      %39 = vector.load %arg3[%c0_23, %c1_24] : memref<64x4xf32, #tpu.memory_space<vmem>>, vector<64x1xf32>
      %40 = vector.extract_strided_slice %18 {offsets = [1, 0], sizes = [1, 32], strides = [1, 1]} : vector<4x32xf32> to vector<1x32xf32>
      %41 = vector.broadcast %39 : vector<64x1xf32> to vector<64x32xf32>
      %42 = vector.broadcast %40 : vector<1x32xf32> to vector<64x32xf32>
      %43 = arith.mulf %41, %42 : vector<64x32xf32>
      %44 = arith.addf %38, %43 : vector<64x32xf32>
      %c0_25 = arith.constant 0 : index
      %c2_26 = arith.constant 2 : index
      %45 = vector.load %arg3[%c0_25, %c2_26] : memref<64x4xf32, #tpu.memory_space<vmem>>, vector<64x1xf32>
      %46 = vector.extract_strided_slice %18 {offsets = [2, 0], sizes = [1, 32], strides = [1, 1]} : vector<4x32xf32> to vector<1x32xf32>
      %47 = vector.broadcast %45 : vector<64x1xf32> to vector<64x32xf32>
      %48 = vector.broadcast %46 : vector<1x32xf32> to vector<64x32xf32>
      %49 = arith.mulf %47, %48 : vector<64x32xf32>
      %50 = arith.addf %44, %49 : vector<64x32xf32>
      %c0_27 = arith.constant 0 : index
      %c3_28 = arith.constant 3 : index
      %51 = vector.load %arg3[%c0_27, %c3_28] : memref<64x4xf32, #tpu.memory_space<vmem>>, vector<64x1xf32>
      %52 = vector.extract_strided_slice %18 {offsets = [3, 0], sizes = [1, 32], strides = [1, 1]} : vector<4x32xf32> to vector<1x32xf32>
      %53 = vector.broadcast %51 : vector<64x1xf32> to vector<64x32xf32>
      %54 = vector.broadcast %52 : vector<1x32xf32> to vector<64x32xf32>
      %55 = arith.mulf %53, %54 : vector<64x32xf32>
      %56 = arith.addf %50, %55 : vector<64x32xf32>
      %57 = vector.broadcast %8 : vector<64x1xf32> to vector<64x32xf32>
      %58 = arith.addf %56, %57 : vector<64x32xf32>
      %cst_29 = arith.constant 0.000000e+00 : f32
      %59 = vector.broadcast %cst_29 : f32 to vector<64x32xf32>
      %60 = arith.cmpf oge, %58, %59 : vector<64x32xf32>
      %cst_30 = arith.constant 2.000000e-01 : f32
      %61 = vector.broadcast %cst_30 : f32 to vector<64x32xf32>
      %62 = arith.mulf %61, %58 : vector<64x32xf32>
      %63 = arith.select %60, %58, %62 : vector<64x32xi1>, vector<64x32xf32>
      %c0_31 = arith.constant 0 : index
      %c0_32 = arith.constant 0 : index
      %64 = vector.load %arg9[%c0_31, %c0_32] : memref<64x1xf32, #tpu.memory_space<vmem>>, vector<64x1xf32>
      %cst_33 = arith.constant dense<0.000000e+00> : vector<64x1xf32>
      %65 = tpu.matmul %63, %7, %cst_33 {dimension_numbers = #tpu.dot_dimension_numbers<[1], [0], [0], [1], [0, 0, 1, 1], [], []>} : vector<64x32xf32>, vector<32x1xf32>, vector<64x1xf32> -> vector<64x1xf32>
      %66 = arith.addf %64, %65 : vector<64x1xf32>
      %c0_34 = arith.constant 0 : index
      %c0_35 = arith.constant 0 : index
      %67 = vector.load %arg9[%c0_34, %c0_35] : memref<64x1xf32, #tpu.memory_space<vmem>>, vector<64x1xf32>
      tpu.vector_store %arg9[%c0_34, %c0_35], %66 {strides = array<i32>} : memref<64x1xf32, #tpu.memory_space<vmem>>, vector<64x1xf32>,
      %c0_36 = arith.constant 0 : index
      %c0_37 = arith.constant 0 : index
      %68 = vector.load %arg10[%c0_36, %c0_37] : memref<64x1xf32, #tpu.memory_space<vmem>>, vector<64x1xf32>
      %69 = arith.mulf %63, %63 : vector<64x32xf32>
      %cst_38 = arith.constant dense<0.000000e+00> : vector<64x1xf32>
      %70 = tpu.matmul %69, %7, %cst_38 {dimension_numbers = #tpu.dot_dimension_numbers<[1], [0], [0], [1], [0, 0, 1, 1], [], []>} : vector<64x32xf32>, vector<32x1xf32>, vector<64x1xf32> -> vector<64x1xf32>
      %71 = arith.addf %68, %70 : vector<64x1xf32>
      %c0_39 = arith.constant 0 : index
      %c0_40 = arith.constant 0 : index
      %72 = vector.load %arg10[%c0_39, %c0_40] : memref<64x1xf32, #tpu.memory_space<vmem>>, vector<64x1xf32>
      tpu.vector_store %arg10[%c0_39, %c0_40], %71 {strides = array<i32>} : memref<64x1xf32, #tpu.memory_space<vmem>>, vector<64x1xf32>,
    } else {
    }
    %c1_i32 = arith.constant 1 : i32
    %23 = arith.cmpi eq, %arg0, %c1_i32 : i32
    %24 = arith.extui %23 : i1 to i32
    %cst = arith.constant 9.99999974E-6 : f32
    %c0_i32_15 = arith.constant 0 : i32
    %25 = arith.cmpi ne, %24, %c0_i32_15 : i32
    scf.if %25 {
      %32 = arith.extui %19 : i1 to i32
      %c0_i32_20 = arith.constant 0 : i32
      %33 = arith.cmpi ne, %32, %c0_i32_20 : i32
      scf.if %33 {
        %cst_51 = arith.constant 0.000000e+00 : f32
        %98 = vector.broadcast %cst_51 : f32 to vector<128x1xf32>
        %c0_52 = arith.constant 0 : index
        %c0_53 = arith.constant 0 : index
        %99 = vector.load %arg11[%c0_52, %c0_53] : memref<128x1xf32, #tpu.memory_space<vmem>>, vector<128x1xf32>
        tpu.vector_store %arg11[%c0_52, %c0_53], %98 {strides = array<i32>} : memref<128x1xf32, #tpu.memory_space<vmem>>, vector<128x1xf32>,
        %cst_54 = arith.constant 0.000000e+00 : f32
        %100 = vector.broadcast %cst_54 : f32 to vector<128x1xf32>
        %c0_55 = arith.constant 0 : index
        %c0_56 = arith.constant 0 : index
        %101 = vector.load %arg12[%c0_55, %c0_56] : memref<128x1xf32, #tpu.memory_space<vmem>>, vector<128x1xf32>
        tpu.vector_store %arg12[%c0_55, %c0_56], %100 {strides = array<i32>} : memref<128x1xf32, #tpu.memory_space<vmem>>, vector<128x1xf32>,
      } else {
      }
      %c0_21 = arith.constant 0 : index
      %c0_22 = arith.constant 0 : index
      %34 = vector.load %arg3[%c0_21, %c0_22] : memref<64x4xf32, #tpu.memory_space<vmem>>, vector<64x1xf32>
      %35 = vector.extract_strided_slice %18 {offsets = [0, 0], sizes = [1, 32], strides = [1, 1]} : vector<4x32xf32> to vector<1x32xf32>
      %36 = vector.broadcast %34 : vector<64x1xf32> to vector<64x32xf32>
      %37 = vector.broadcast %35 : vector<1x32xf32> to vector<64x32xf32>
      %38 = arith.mulf %36, %37 : vector<64x32xf32>
      %c0_23 = arith.constant 0 : index
      %c1_24 = arith.constant 1 : index
      %39 = vector.load %arg3[%c0_23, %c1_24] : memref<64x4xf32, #tpu.memory_space<vmem>>, vector<64x1xf32>
      %40 = vector.extract_strided_slice %18 {offsets = [1, 0], sizes = [1, 32], strides = [1, 1]} : vector<4x32xf32> to vector<1x32xf32>
      %41 = vector.broadcast %39 : vector<64x1xf32> to vector<64x32xf32>
      %42 = vector.broadcast %40 : vector<1x32xf32> to vector<64x32xf32>
      %43 = arith.mulf %41, %42 : vector<64x32xf32>
      %44 = arith.addf %38, %43 : vector<64x32xf32>
      %c0_25 = arith.constant 0 : index
      %c2_26 = arith.constant 2 : index
      %45 = vector.load %arg3[%c0_25, %c2_26] : memref<64x4xf32, #tpu.memory_space<vmem>>, vector<64x1xf32>
      %46 = vector.extract_strided_slice %18 {offsets = [2, 0], sizes = [1, 32], strides = [1, 1]} : vector<4x32xf32> to vector<1x32xf32>
      %47 = vector.broadcast %45 : vector<64x1xf32> to vector<64x32xf32>
      %48 = vector.broadcast %46 : vector<1x32xf32> to vector<64x32xf32>
      %49 = arith.mulf %47, %48 : vector<64x32xf32>
      %50 = arith.addf %44, %49 : vector<64x32xf32>
      %c0_27 = arith.constant 0 : index
      %c3_28 = arith.constant 3 : index
      %51 = vector.load %arg3[%c0_27, %c3_28] : memref<64x4xf32, #tpu.memory_space<vmem>>, vector<64x1xf32>
      %52 = vector.extract_strided_slice %18 {offsets = [3, 0], sizes = [1, 32], strides = [1, 1]} : vector<4x32xf32> to vector<1x32xf32>
      %53 = vector.broadcast %51 : vector<64x1xf32> to vector<64x32xf32>
      %54 = vector.broadcast %52 : vector<1x32xf32> to vector<64x32xf32>
      %55 = arith.mulf %53, %54 : vector<64x32xf32>
      %56 = arith.addf %50, %55 : vector<64x32xf32>
      %57 = vector.broadcast %8 : vector<64x1xf32> to vector<64x32xf32>
      %58 = arith.addf %56, %57 : vector<64x32xf32>
      %cst_29 = arith.constant 0.000000e+00 : f32
      %59 = vector.broadcast %cst_29 : f32 to vector<64x32xf32>
      %60 = arith.cmpf oge, %58, %59 : vector<64x32xf32>
      %cst_30 = arith.constant 2.000000e-01 : f32
      %61 = vector.broadcast %cst_30 : f32 to vector<64x32xf32>
      %62 = arith.mulf %61, %58 : vector<64x32xf32>
      %63 = arith.select %60, %58, %62 : vector<64x32xi1>, vector<64x32xf32>
      %c0_31 = arith.constant 0 : index
      %c0_32 = arith.constant 0 : index
      %64 = vector.load %arg9[%c0_31, %c0_32] : memref<64x1xf32, #tpu.memory_space<vmem>>, vector<64x1xf32>
      %cst_33 = arith.constant 3.125000e-02 : f32
      %65 = vector.broadcast %cst_33 : f32 to vector<64x1xf32>
      %66 = arith.mulf %64, %65 : vector<64x1xf32>
      %c0_34 = arith.constant 0 : index
      %c0_35 = arith.constant 0 : index
      %67 = vector.load %arg10[%c0_34, %c0_35] : memref<64x1xf32, #tpu.memory_space<vmem>>, vector<64x1xf32>
      %cst_36 = arith.constant 3.125000e-02 : f32
      %68 = vector.broadcast %cst_36 : f32 to vector<64x1xf32>
      %69 = arith.mulf %67, %68 : vector<64x1xf32>
      %70 = arith.mulf %66, %66 : vector<64x1xf32>
      %71 = arith.subf %69, %70 : vector<64x1xf32>
      %cst_37 = arith.constant 0.000000e+00 : f32
      %72 = vector.broadcast %cst_37 : f32 to vector<64x1xf32>
      %73 = arith.maximumf %71, %72 : vector<64x1xf32>
      %74 = vector.broadcast %cst : f32 to vector<64x1xf32>
      %75 = arith.addf %73, %74 : vector<64x1xf32>
      %76 = math.rsqrt %75 : vector<64x1xf32>
      %77 = arith.mulf %76, %9 : vector<64x1xf32>
      %78 = vector.broadcast %66 : vector<64x1xf32> to vector<64x32xf32>
      %79 = arith.subf %63, %78 : vector<64x32xf32>
      %80 = vector.broadcast %77 : vector<64x1xf32> to vector<64x32xf32>
      %81 = arith.mulf %79, %80 : vector<64x32xf32>
      %82 = vector.broadcast %10 : vector<64x1xf32> to vector<64x32xf32>
      %83 = arith.addf %81, %82 : vector<64x32xf32>
      %c0_38 = arith.constant 0 : index
      %c0_39 = arith.constant 0 : index
      %84 = vector.load %arg4[%c0_38, %c0_39] : memref<128x64xbf16, #tpu.memory_space<vmem>>, vector<128x64xbf16>
      %85 = arith.truncf %83 : vector<64x32xf32> to vector<64x32xbf16>
      %cst_40 = arith.constant dense<0.000000e+00> : vector<128x32xf32>
      %86 = tpu.matmul %84, %85, %cst_40 {dimension_numbers = #tpu.dot_dimension_numbers<[1], [0], [0], [1], [0, 0, 1, 1], [], []>} : vector<128x64xbf16>, vector<64x32xbf16>, vector<128x32xf32> -> vector<128x32xf32>
      %87 = vector.broadcast %11 : vector<128x1xf32> to vector<128x32xf32>
      %88 = arith.addf %86, %87 : vector<128x32xf32>
      %c0_41 = arith.constant 0 : index
      %c0_42 = arith.constant 0 : index
      %89 = vector.load %arg11[%c0_41, %c0_42] : memref<128x1xf32, #tpu.memory_space<vmem>>, vector<128x1xf32>
      %cst_43 = arith.constant dense<0.000000e+00> : vector<128x1xf32>
      %90 = tpu.matmul %88, %7, %cst_43 {dimension_numbers = #tpu.dot_dimension_numbers<[1], [0], [0], [1], [0, 0, 1, 1], [], []>} : vector<128x32xf32>, vector<32x1xf32>, vector<128x1xf32> -> vector<128x1xf32>
      %91 = arith.addf %89, %90 : vector<128x1xf32>
      %c0_44 = arith.constant 0 : index
      %c0_45 = arith.constant 0 : index
      %92 = vector.load %arg11[%c0_44, %c0_45] : memref<128x1xf32, #tpu.memory_space<vmem>>, vector<128x1xf32>
      tpu.vector_store %arg11[%c0_44, %c0_45], %91 {strides = array<i32>} : memref<128x1xf32, #tpu.memory_space<vmem>>, vector<128x1xf32>,
      %c0_46 = arith.constant 0 : index
      %c0_47 = arith.constant 0 : index
      %93 = vector.load %arg12[%c0_46, %c0_47] : memref<128x1xf32, #tpu.memory_space<vmem>>, vector<128x1xf32>
      %94 = arith.mulf %88, %88 : vector<128x32xf32>
      %cst_48 = arith.constant dense<0.000000e+00> : vector<128x1xf32>
      %95 = tpu.matmul %94, %7, %cst_48 {dimension_numbers = #tpu.dot_dimension_numbers<[1], [0], [0], [1], [0, 0, 1, 1], [], []>} : vector<128x32xf32>, vector<32x1xf32>, vector<128x1xf32> -> vector<128x1xf32>
      %96 = arith.addf %93, %95 : vector<128x1xf32>
      %c0_49 = arith.constant 0 : index
      %c0_50 = arith.constant 0 : index
      %97 = vector.load %arg12[%c0_49, %c0_50] : memref<128x1xf32, #tpu.memory_space<vmem>>, vector<128x1xf32>
      tpu.vector_store %arg12[%c0_49, %c0_50], %96 {strides = array<i32>} : memref<128x1xf32, #tpu.memory_space<vmem>>, vector<128x1xf32>,
    } else {
    }
    %c2_i32 = arith.constant 2 : i32
    %26 = arith.cmpi eq, %arg0, %c2_i32 : i32
    %27 = arith.extui %26 : i1 to i32
    %cst_16 = arith.constant 9.99999974E-6 : f32
    %c0_i32_17 = arith.constant 0 : i32
    %28 = arith.cmpi ne, %27, %c0_i32_17 : i32
    scf.if %28 {
      %32 = arith.extui %19 : i1 to i32
      %c0_i32_20 = arith.constant 0 : i32
      %33 = arith.cmpi ne, %32, %c0_i32_20 : i32
      scf.if %33 {
        %cst_62 = arith.constant 0.000000e+00 : f32
        %125 = vector.broadcast %cst_62 : f32 to vector<64x1xf32>
        %c0_63 = arith.constant 0 : index
        %c0_64 = arith.constant 0 : index
        %126 = vector.load %arg13[%c0_63, %c0_64] : memref<64x1xf32, #tpu.memory_space<vmem>>, vector<64x1xf32>
        tpu.vector_store %arg13[%c0_63, %c0_64], %125 {strides = array<i32>} : memref<64x1xf32, #tpu.memory_space<vmem>>, vector<64x1xf32>,
        %cst_65 = arith.constant 0.000000e+00 : f32
        %127 = vector.broadcast %cst_65 : f32 to vector<64x1xf32>
        %c0_66 = arith.constant 0 : index
        %c0_67 = arith.constant 0 : index
        %128 = vector.load %arg14[%c0_66, %c0_67] : memref<64x1xf32, #tpu.memory_space<vmem>>, vector<64x1xf32>
        tpu.vector_store %arg14[%c0_66, %c0_67], %127 {strides = array<i32>} : memref<64x1xf32, #tpu.memory_space<vmem>>, vector<64x1xf32>,
      } else {
      }
      %c0_21 = arith.constant 0 : index
      %c0_22 = arith.constant 0 : index
      %34 = vector.load %arg3[%c0_21, %c0_22] : memref<64x4xf32, #tpu.memory_space<vmem>>, vector<64x1xf32>
      %35 = vector.extract_strided_slice %18 {offsets = [0, 0], sizes = [1, 32], strides = [1, 1]} : vector<4x32xf32> to vector<1x32xf32>
      %36 = vector.broadcast %34 : vector<64x1xf32> to vector<64x32xf32>
      %37 = vector.broadcast %35 : vector<1x32xf32> to vector<64x32xf32>
      %38 = arith.mulf %36, %37 : vector<64x32xf32>
      %c0_23 = arith.constant 0 : index
      %c1_24 = arith.constant 1 : index
      %39 = vector.load %arg3[%c0_23, %c1_24] : memref<64x4xf32, #tpu.memory_space<vmem>>, vector<64x1xf32>
      %40 = vector.extract_strided_slice %18 {offsets = [1, 0], sizes = [1, 32], strides = [1, 1]} : vector<4x32xf32> to vector<1x32xf32>
      %41 = vector.broadcast %39 : vector<64x1xf32> to vector<64x32xf32>
      %42 = vector.broadcast %40 : vector<1x32xf32> to vector<64x32xf32>
      %43 = arith.mulf %41, %42 : vector<64x32xf32>
      %44 = arith.addf %38, %43 : vector<64x32xf32>
      %c0_25 = arith.constant 0 : index
      %c2_26 = arith.constant 2 : index
      %45 = vector.load %arg3[%c0_25, %c2_26] : memref<64x4xf32, #tpu.memory_space<vmem>>, vector<64x1xf32>
      %46 = vector.extract_strided_slice %18 {offsets = [2, 0], sizes = [1, 32], strides = [1, 1]} : vector<4x32xf32> to vector<1x32xf32>
      %47 = vector.broadcast %45 : vector<64x1xf32> to vector<64x32xf32>
      %48 = vector.broadcast %46 : vector<1x32xf32> to vector<64x32xf32>
      %49 = arith.mulf %47, %48 : vector<64x32xf32>
      %50 = arith.addf %44, %49 : vector<64x32xf32>
      %c0_27 = arith.constant 0 : index
      %c3_28 = arith.constant 3 : index
      %51 = vector.load %arg3[%c0_27, %c3_28] : memref<64x4xf32, #tpu.memory_space<vmem>>, vector<64x1xf32>
      %52 = vector.extract_strided_slice %18 {offsets = [3, 0], sizes = [1, 32], strides = [1, 1]} : vector<4x32xf32> to vector<1x32xf32>
      %53 = vector.broadcast %51 : vector<64x1xf32> to vector<64x32xf32>
      %54 = vector.broadcast %52 : vector<1x32xf32> to vector<64x32xf32>
      %55 = arith.mulf %53, %54 : vector<64x32xf32>
      %56 = arith.addf %50, %55 : vector<64x32xf32>
      %57 = vector.broadcast %8 : vector<64x1xf32> to vector<64x32xf32>
      %58 = arith.addf %56, %57 : vector<64x32xf32>
      %cst_29 = arith.constant 0.000000e+00 : f32
      %59 = vector.broadcast %cst_29 : f32 to vector<64x32xf32>
      %60 = arith.cmpf oge, %58, %59 : vector<64x32xf32>
      %cst_30 = arith.constant 2.000000e-01 : f32
      %61 = vector.broadcast %cst_30 : f32 to vector<64x32xf32>
      %62 = arith.mulf %61, %58 : vector<64x32xf32>
      %63 = arith.select %60, %58, %62 : vector<64x32xi1>, vector<64x32xf32>
      %c0_31 = arith.constant 0 : index
      %c0_32 = arith.constant 0 : index
      %64 = vector.load %arg9[%c0_31, %c0_32] : memref<64x1xf32, #tpu.memory_space<vmem>>, vector<64x1xf32>
      %cst_33 = arith.constant 3.125000e-02 : f32
      %65 = vector.broadcast %cst_33 : f32 to vector<64x1xf32>
      %66 = arith.mulf %64, %65 : vector<64x1xf32>
      %c0_34 = arith.constant 0 : index
      %c0_35 = arith.constant 0 : index
      %67 = vector.load %arg10[%c0_34, %c0_35] : memref<64x1xf32, #tpu.memory_space<vmem>>, vector<64x1xf32>
      %cst_36 = arith.constant 3.125000e-02 : f32
      %68 = vector.broadcast %cst_36 : f32 to vector<64x1xf32>
      %69 = arith.mulf %67, %68 : vector<64x1xf32>
      %70 = arith.mulf %66, %66 : vector<64x1xf32>
      %71 = arith.subf %69, %70 : vector<64x1xf32>
      %cst_37 = arith.constant 0.000000e+00 : f32
      %72 = vector.broadcast %cst_37 : f32 to vector<64x1xf32>
      %73 = arith.maximumf %71, %72 : vector<64x1xf32>
      %74 = vector.broadcast %cst_16 : f32 to vector<64x1xf32>
      %75 = arith.addf %73, %74 : vector<64x1xf32>
      %76 = math.rsqrt %75 : vector<64x1xf32>
      %77 = arith.mulf %76, %9 : vector<64x1xf32>
      %78 = vector.broadcast %66 : vector<64x1xf32> to vector<64x32xf32>
      %79 = arith.subf %63, %78 : vector<64x32xf32>
      %80 = vector.broadcast %77 : vector<64x1xf32> to vector<64x32xf32>
      %81 = arith.mulf %79, %80 : vector<64x32xf32>
      %82 = vector.broadcast %10 : vector<64x1xf32> to vector<64x32xf32>
      %83 = arith.addf %81, %82 : vector<64x32xf32>
      %c0_38 = arith.constant 0 : index
      %c0_39 = arith.constant 0 : index
      %84 = vector.load %arg4[%c0_38, %c0_39] : memref<128x64xbf16, #tpu.memory_space<vmem>>, vector<128x64xbf16>
      %85 = arith.truncf %83 : vector<64x32xf32> to vector<64x32xbf16>
      %cst_40 = arith.constant dense<0.000000e+00> : vector<128x32xf32>
      %86 = tpu.matmul %84, %85, %cst_40 {dimension_numbers = #tpu.dot_dimension_numbers<[1], [0], [0], [1], [0, 0, 1, 1], [], []>} : vector<128x64xbf16>, vector<64x32xbf16>, vector<128x32xf32> -> vector<128x32xf32>
      %87 = vector.broadcast %11 : vector<128x1xf32> to vector<128x32xf32>
      %88 = arith.addf %86, %87 : vector<128x32xf32>
      %c0_41 = arith.constant 0 : index
      %c0_42 = arith.constant 0 : index
      %89 = vector.load %arg11[%c0_41, %c0_42] : memref<128x1xf32, #tpu.memory_space<vmem>>, vector<128x1xf32>
      %cst_43 = arith.constant 3.125000e-02 : f32
      %90 = vector.broadcast %cst_43 : f32 to vector<128x1xf32>
      %91 = arith.mulf %89, %90 : vector<128x1xf32>
      %c0_44 = arith.constant 0 : index
      %c0_45 = arith.constant 0 : index
      %92 = vector.load %arg12[%c0_44, %c0_45] : memref<128x1xf32, #tpu.memory_space<vmem>>, vector<128x1xf32>
      %cst_46 = arith.constant 3.125000e-02 : f32
      %93 = vector.broadcast %cst_46 : f32 to vector<128x1xf32>
      %94 = arith.mulf %92, %93 : vector<128x1xf32>
      %95 = arith.mulf %91, %91 : vector<128x1xf32>
      %96 = arith.subf %94, %95 : vector<128x1xf32>
      %cst_47 = arith.constant 0.000000e+00 : f32
      %97 = vector.broadcast %cst_47 : f32 to vector<128x1xf32>
      %98 = arith.maximumf %96, %97 : vector<128x1xf32>
      %99 = vector.broadcast %cst_16 : f32 to vector<128x1xf32>
      %100 = arith.addf %98, %99 : vector<128x1xf32>
      %101 = math.rsqrt %100 : vector<128x1xf32>
      %102 = arith.mulf %101, %12 : vector<128x1xf32>
      %103 = vector.broadcast %91 : vector<128x1xf32> to vector<128x32xf32>
      %104 = arith.subf %88, %103 : vector<128x32xf32>
      %105 = vector.broadcast %102 : vector<128x1xf32> to vector<128x32xf32>
      %106 = arith.mulf %104, %105 : vector<128x32xf32>
      %107 = vector.broadcast %13 : vector<128x1xf32> to vector<128x32xf32>
      %108 = arith.addf %106, %107 : vector<128x32xf32>
      %c0_48 = arith.constant 0 : index
      %c0_49 = arith.constant 0 : index
      %109 = vector.load %arg5[%c0_48, %c0_49] : memref<64x128xbf16, #tpu.memory_space<vmem>>, vector<64x128xbf16>
      %110 = arith.truncf %108 : vector<128x32xf32> to vector<128x32xbf16>
      %cst_50 = arith.constant dense<0.000000e+00> : vector<64x32xf32>
      %111 = tpu.matmul %109, %110, %cst_50 {dimension_numbers = #tpu.dot_dimension_numbers<[1], [0], [0], [1], [0, 0, 1, 1], [], []>} : vector<64x128xbf16>, vector<128x32xbf16>, vector<64x32xf32> -> vector<64x32xf32>
      %112 = vector.broadcast %14 : vector<64x1xf32> to vector<64x32xf32>
      %113 = arith.addf %111, %112 : vector<64x32xf32>
      %cst_51 = arith.constant 0.000000e+00 : f32
      %114 = vector.broadcast %cst_51 : f32 to vector<64x32xf32>
      %115 = arith.maximumf %113, %114 : vector<64x32xf32>
      %c0_52 = arith.constant 0 : index
      %c0_53 = arith.constant 0 : index
      %116 = vector.load %arg13[%c0_52, %c0_53] : memref<64x1xf32, #tpu.memory_space<vmem>>, vector<64x1xf32>
      %cst_54 = arith.constant dense<0.000000e+00> : vector<64x1xf32>
      %117 = tpu.matmul %115, %7, %cst_54 {dimension_numbers = #tpu.dot_dimension_numbers<[1], [0], [0], [1], [0, 0, 1, 1], [], []>} : vector<64x32xf32>, vector<32x1xf32>, vector<64x1xf32> -> vector<64x1xf32>
      %118 = arith.addf %116, %117 : vector<64x1xf32>
      %c0_55 = arith.constant 0 : index
      %c0_56 = arith.constant 0 : index
      %119 = vector.load %arg13[%c0_55, %c0_56] : memref<64x1xf32, #tpu.memory_space<vmem>>, vector<64x1xf32>
      tpu.vector_store %arg13[%c0_55, %c0_56], %118 {strides = array<i32>} : memref<64x1xf32, #tpu.memory_space<vmem>>, vector<64x1xf32>,
      %c0_57 = arith.constant 0 : index
      %c0_58 = arith.constant 0 : index
      %120 = vector.load %arg14[%c0_57, %c0_58] : memref<64x1xf32, #tpu.memory_space<vmem>>, vector<64x1xf32>
      %121 = arith.mulf %115, %115 : vector<64x32xf32>
      %cst_59 = arith.constant dense<0.000000e+00> : vector<64x1xf32>
      %122 = tpu.matmul %121, %7, %cst_59 {dimension_numbers = #tpu.dot_dimension_numbers<[1], [0], [0], [1], [0, 0, 1, 1], [], []>} : vector<64x32xf32>, vector<32x1xf32>, vector<64x1xf32> -> vector<64x1xf32>
      %123 = arith.addf %120, %122 : vector<64x1xf32>
      %c0_60 = arith.constant 0 : index
      %c0_61 = arith.constant 0 : index
      %124 = vector.load %arg14[%c0_60, %c0_61] : memref<64x1xf32, #tpu.memory_space<vmem>>, vector<64x1xf32>
      tpu.vector_store %arg14[%c0_60, %c0_61], %123 {strides = array<i32>} : memref<64x1xf32, #tpu.memory_space<vmem>>, vector<64x1xf32>,
    } else {
    }
    %c3_i32 = arith.constant 3 : i32
    %29 = arith.cmpi eq, %arg0, %c3_i32 : i32
    %30 = arith.extui %29 : i1 to i32
    %cst_18 = arith.constant 9.99999974E-6 : f32
    %c0_i32_19 = arith.constant 0 : i32
    %31 = arith.cmpi ne, %30, %c0_i32_19 : i32
    scf.if %31 {
      %c0_20 = arith.constant 0 : index
      %c0_21 = arith.constant 0 : index
      %32 = vector.load %arg3[%c0_20, %c0_21] : memref<64x4xf32, #tpu.memory_space<vmem>>, vector<64x1xf32>
      %33 = vector.extract_strided_slice %18 {offsets = [0, 0], sizes = [1, 32], strides = [1, 1]} : vector<4x32xf32> to vector<1x32xf32>
      %34 = vector.broadcast %32 : vector<64x1xf32> to vector<64x32xf32>
      %35 = vector.broadcast %33 : vector<1x32xf32> to vector<64x32xf32>
      %36 = arith.mulf %34, %35 : vector<64x32xf32>
      %c0_22 = arith.constant 0 : index
      %c1_23 = arith.constant 1 : index
      %37 = vector.load %arg3[%c0_22, %c1_23] : memref<64x4xf32, #tpu.memory_space<vmem>>, vector<64x1xf32>
      %38 = vector.extract_strided_slice %18 {offsets = [1, 0], sizes = [1, 32], strides = [1, 1]} : vector<4x32xf32> to vector<1x32xf32>
      %39 = vector.broadcast %37 : vector<64x1xf32> to vector<64x32xf32>
      %40 = vector.broadcast %38 : vector<1x32xf32> to vector<64x32xf32>
      %41 = arith.mulf %39, %40 : vector<64x32xf32>
      %42 = arith.addf %36, %41 : vector<64x32xf32>
      %c0_24 = arith.constant 0 : index
      %c2_25 = arith.constant 2 : index
      %43 = vector.load %arg3[%c0_24, %c2_25] : memref<64x4xf32, #tpu.memory_space<vmem>>, vector<64x1xf32>
      %44 = vector.extract_strided_slice %18 {offsets = [2, 0], sizes = [1, 32], strides = [1, 1]} : vector<4x32xf32> to vector<1x32xf32>
      %45 = vector.broadcast %43 : vector<64x1xf32> to vector<64x32xf32>
      %46 = vector.broadcast %44 : vector<1x32xf32> to vector<64x32xf32>
      %47 = arith.mulf %45, %46 : vector<64x32xf32>
      %48 = arith.addf %42, %47 : vector<64x32xf32>
      %c0_26 = arith.constant 0 : index
      %c3_27 = arith.constant 3 : index
      %49 = vector.load %arg3[%c0_26, %c3_27] : memref<64x4xf32, #tpu.memory_space<vmem>>, vector<64x1xf32>
      %50 = vector.extract_strided_slice %18 {offsets = [3, 0], sizes = [1, 32], strides = [1, 1]} : vector<4x32xf32> to vector<1x32xf32>
      %51 = vector.broadcast %49 : vector<64x1xf32> to vector<64x32xf32>
      %52 = vector.broadcast %50 : vector<1x32xf32> to vector<64x32xf32>
      %53 = arith.mulf %51, %52 : vector<64x32xf32>
      %54 = arith.addf %48, %53 : vector<64x32xf32>
      %55 = vector.broadcast %8 : vector<64x1xf32> to vector<64x32xf32>
      %56 = arith.addf %54, %55 : vector<64x32xf32>
      %cst_28 = arith.constant 0.000000e+00 : f32
      %57 = vector.broadcast %cst_28 : f32 to vector<64x32xf32>
      %58 = arith.cmpf oge, %56, %57 : vector<64x32xf32>
      %cst_29 = arith.constant 2.000000e-01 : f32
      %59 = vector.broadcast %cst_29 : f32 to vector<64x32xf32>
      %60 = arith.mulf %59, %56 : vector<64x32xf32>
      %61 = arith.select %58, %56, %60 : vector<64x32xi1>, vector<64x32xf32>
      %c0_30 = arith.constant 0 : index
      %c0_31 = arith.constant 0 : index
      %62 = vector.load %arg9[%c0_30, %c0_31] : memref<64x1xf32, #tpu.memory_space<vmem>>, vector<64x1xf32>
      %cst_32 = arith.constant 3.125000e-02 : f32
      %63 = vector.broadcast %cst_32 : f32 to vector<64x1xf32>
      %64 = arith.mulf %62, %63 : vector<64x1xf32>
      %c0_33 = arith.constant 0 : index
      %c0_34 = arith.constant 0 : index
      %65 = vector.load %arg10[%c0_33, %c0_34] : memref<64x1xf32, #tpu.memory_space<vmem>>, vector<64x1xf32>
      %cst_35 = arith.constant 3.125000e-02 : f32
      %66 = vector.broadcast %cst_35 : f32 to vector<64x1xf32>
      %67 = arith.mulf %65, %66 : vector<64x1xf32>
      %68 = arith.mulf %64, %64 : vector<64x1xf32>
      %69 = arith.subf %67, %68 : vector<64x1xf32>
      %cst_36 = arith.constant 0.000000e+00 : f32
      %70 = vector.broadcast %cst_36 : f32 to vector<64x1xf32>
      %71 = arith.maximumf %69, %70 : vector<64x1xf32>
      %72 = vector.broadcast %cst_18 : f32 to vector<64x1xf32>
      %73 = arith.addf %71, %72 : vector<64x1xf32>
      %74 = math.rsqrt %73 : vector<64x1xf32>
      %75 = arith.mulf %74, %9 : vector<64x1xf32>
      %76 = vector.broadcast %64 : vector<64x1xf32> to vector<64x32xf32>
      %77 = arith.subf %61, %76 : vector<64x32xf32>
      %78 = vector.broadcast %75 : vector<64x1xf32> to vector<64x32xf32>
      %79 = arith.mulf %77, %78 : vector<64x32xf32>
      %80 = vector.broadcast %10 : vector<64x1xf32> to vector<64x32xf32>
      %81 = arith.addf %79, %80 : vector<64x32xf32>
      %c0_37 = arith.constant 0 : index
      %c0_38 = arith.constant 0 : index
      %82 = vector.load %arg4[%c0_37, %c0_38] : memref<128x64xbf16, #tpu.memory_space<vmem>>, vector<128x64xbf16>
      %83 = arith.truncf %81 : vector<64x32xf32> to vector<64x32xbf16>
      %cst_39 = arith.constant dense<0.000000e+00> : vector<128x32xf32>
      %84 = tpu.matmul %82, %83, %cst_39 {dimension_numbers = #tpu.dot_dimension_numbers<[1], [0], [0], [1], [0, 0, 1, 1], [], []>} : vector<128x64xbf16>, vector<64x32xbf16>, vector<128x32xf32> -> vector<128x32xf32>
      %85 = vector.broadcast %11 : vector<128x1xf32> to vector<128x32xf32>
      %86 = arith.addf %84, %85 : vector<128x32xf32>
      %c0_40 = arith.constant 0 : index
      %c0_41 = arith.constant 0 : index
      %87 = vector.load %arg11[%c0_40, %c0_41] : memref<128x1xf32, #tpu.memory_space<vmem>>, vector<128x1xf32>
      %cst_42 = arith.constant 3.125000e-02 : f32
      %88 = vector.broadcast %cst_42 : f32 to vector<128x1xf32>
      %89 = arith.mulf %87, %88 : vector<128x1xf32>
      %c0_43 = arith.constant 0 : index
      %c0_44 = arith.constant 0 : index
      %90 = vector.load %arg12[%c0_43, %c0_44] : memref<128x1xf32, #tpu.memory_space<vmem>>, vector<128x1xf32>
      %cst_45 = arith.constant 3.125000e-02 : f32
      %91 = vector.broadcast %cst_45 : f32 to vector<128x1xf32>
      %92 = arith.mulf %90, %91 : vector<128x1xf32>
      %93 = arith.mulf %89, %89 : vector<128x1xf32>
      %94 = arith.subf %92, %93 : vector<128x1xf32>
      %cst_46 = arith.constant 0.000000e+00 : f32
      %95 = vector.broadcast %cst_46 : f32 to vector<128x1xf32>
      %96 = arith.maximumf %94, %95 : vector<128x1xf32>
      %97 = vector.broadcast %cst_18 : f32 to vector<128x1xf32>
      %98 = arith.addf %96, %97 : vector<128x1xf32>
      %99 = math.rsqrt %98 : vector<128x1xf32>
      %100 = arith.mulf %99, %12 : vector<128x1xf32>
      %101 = vector.broadcast %89 : vector<128x1xf32> to vector<128x32xf32>
      %102 = arith.subf %86, %101 : vector<128x32xf32>
      %103 = vector.broadcast %100 : vector<128x1xf32> to vector<128x32xf32>
      %104 = arith.mulf %102, %103 : vector<128x32xf32>
      %105 = vector.broadcast %13 : vector<128x1xf32> to vector<128x32xf32>
      %106 = arith.addf %104, %105 : vector<128x32xf32>
      %c0_47 = arith.constant 0 : index
      %c0_48 = arith.constant 0 : index
      %107 = vector.load %arg5[%c0_47, %c0_48] : memref<64x128xbf16, #tpu.memory_space<vmem>>, vector<64x128xbf16>
      %108 = arith.truncf %106 : vector<128x32xf32> to vector<128x32xbf16>
      %cst_49 = arith.constant dense<0.000000e+00> : vector<64x32xf32>
      %109 = tpu.matmul %107, %108, %cst_49 {dimension_numbers = #tpu.dot_dimension_numbers<[1], [0], [0], [1], [0, 0, 1, 1], [], []>} : vector<64x128xbf16>, vector<128x32xbf16>, vector<64x32xf32> -> vector<64x32xf32>
      %110 = vector.broadcast %14 : vector<64x1xf32> to vector<64x32xf32>
      %111 = arith.addf %109, %110 : vector<64x32xf32>
      %cst_50 = arith.constant 0.000000e+00 : f32
      %112 = vector.broadcast %cst_50 : f32 to vector<64x32xf32>
      %113 = arith.maximumf %111, %112 : vector<64x32xf32>
      %c0_51 = arith.constant 0 : index
      %c0_52 = arith.constant 0 : index
      %114 = vector.load %arg13[%c0_51, %c0_52] : memref<64x1xf32, #tpu.memory_space<vmem>>, vector<64x1xf32>
      %cst_53 = arith.constant 3.125000e-02 : f32
      %115 = vector.broadcast %cst_53 : f32 to vector<64x1xf32>
      %116 = arith.mulf %114, %115 : vector<64x1xf32>
      %c0_54 = arith.constant 0 : index
      %c0_55 = arith.constant 0 : index
      %117 = vector.load %arg14[%c0_54, %c0_55] : memref<64x1xf32, #tpu.memory_space<vmem>>, vector<64x1xf32>
      %cst_56 = arith.constant 3.125000e-02 : f32
      %118 = vector.broadcast %cst_56 : f32 to vector<64x1xf32>
      %119 = arith.mulf %117, %118 : vector<64x1xf32>
      %120 = arith.mulf %116, %116 : vector<64x1xf32>
      %121 = arith.subf %119, %120 : vector<64x1xf32>
      %cst_57 = arith.constant 0.000000e+00 : f32
      %122 = vector.broadcast %cst_57 : f32 to vector<64x1xf32>
      %123 = arith.maximumf %121, %122 : vector<64x1xf32>
      %124 = vector.broadcast %cst_18 : f32 to vector<64x1xf32>
      %125 = arith.addf %123, %124 : vector<64x1xf32>
      %126 = math.rsqrt %125 : vector<64x1xf32>
      %127 = arith.mulf %126, %15 : vector<64x1xf32>
      %128 = vector.broadcast %116 : vector<64x1xf32> to vector<64x32xf32>
      %129 = arith.subf %113, %128 : vector<64x32xf32>
      %130 = vector.broadcast %127 : vector<64x1xf32> to vector<64x32xf32>
      %131 = arith.mulf %129, %130 : vector<64x32xf32>
      %132 = vector.broadcast %16 : vector<64x1xf32> to vector<64x32xf32>
      %133 = arith.addf %131, %132 : vector<64x32xf32>
      %c0_58 = arith.constant 0 : index
      %c0_59 = arith.constant 0 : index
      %134 = vector.load %arg6[%c0_58, %c0_59] : memref<1x64xf32, #tpu.memory_space<vmem>>, vector<1x64xf32>
      %cst_60 = arith.constant dense<0.000000e+00> : vector<1x32xf32>
      %135 = tpu.matmul %134, %133, %cst_60 {dimension_numbers = #tpu.dot_dimension_numbers<[1], [0], [0], [1], [0, 0, 1, 1], [], []>} : vector<1x64xf32>, vector<64x32xf32>, vector<1x32xf32> -> vector<1x32xf32>
      %136 = vector.broadcast %17 : vector<1x1xf32> to vector<1x32xf32>
      %137 = arith.addf %135, %136 : vector<1x32xf32>
      %138 = arith.negf %137 : vector<1x32xf32>
      %139 = math.exp %138 : vector<1x32xf32>
      %cst_61 = arith.constant 1.000000e+00 : f32
      %140 = vector.broadcast %cst_61 : f32 to vector<1x32xf32>
      %141 = arith.addf %140, %139 : vector<1x32xf32>
      %142 = arith.divf %140, %141 : vector<1x32xf32>
      %c0_62 = arith.constant 0 : index
      %c0_63 = arith.constant 0 : index
      %143 = vector.load %arg8[%c0_62, %c0_63] : memref<1x32xf32, #tpu.memory_space<vmem>>, vector<1x32xf32>
      tpu.vector_store %arg8[%c0_62, %c0_63], %142 {strides = array<i32>} : memref<1x32xf32, #tpu.memory_space<vmem>>, vector<1x32xf32>,
    } else {
    }
    return
  }
  func.func @transform_0(%arg0: i32, %arg1: i32) -> (i32, i32) {
    %c0_i32 = arith.constant 0 : i32
    %c0_i32_0 = arith.constant 0 : i32
    return %c0_i32, %arg1 : i32, i32
  }
  func.func @transform_1(%arg0: i32, %arg1: i32) -> (i32, i32) {
    %c0_i32 = arith.constant 0 : i32
    %c0_i32_0 = arith.constant 0 : i32
    %c0_i32_1 = arith.constant 0 : i32
    return %c0_i32, %c0_i32_0 : i32, i32
  }
  func.func @transform_2(%arg0: i32, %arg1: i32) -> (i32, i32) {
    %c0_i32 = arith.constant 0 : i32
    %c0_i32_0 = arith.constant 0 : i32
    %c0_i32_1 = arith.constant 0 : i32
    return %c0_i32, %c0_i32_0 : i32, i32
  }
  func.func @transform_3(%arg0: i32, %arg1: i32) -> (i32, i32) {
    %c0_i32 = arith.constant 0 : i32
    %c0_i32_0 = arith.constant 0 : i32
    %c0_i32_1 = arith.constant 0 : i32
    return %c0_i32, %c0_i32_0 : i32, i32
  }
  func.func @transform_4(%arg0: i32, %arg1: i32) -> (i32, i32) {
    %c0_i32 = arith.constant 0 : i32
    %c0_i32_0 = arith.constant 0 : i32
    %c0_i32_1 = arith.constant 0 : i32
    return %c0_i32, %c0_i32_0 : i32, i32
  }
  func.func @transform_5(%arg0: i32, %arg1: i32) -> (i32, i32) {
    %c0_i32 = arith.constant 0 : i32
    %c0_i32_0 = arith.constant 0 : i32
    %c0_i32_1 = arith.constant 0 : i32
    return %c0_i32, %c0_i32_0 : i32, i32
  }
  func.func @transform_6(%arg0: i32, %arg1: i32) -> (i32, i32) {
    %c0_i32 = arith.constant 0 : i32
    %c0_i32_0 = arith.constant 0 : i32
    return %c0_i32, %arg1 : i32, i32
  }
}

</mosaic_0001>

<bundles_post_ra>
// kernel: tpu_custom_call.1
= control target key start
LH: loop header
LB: loop body
LE: loop exit
PB: predicated region body
PF: predicated region fallthrough
CT: control target
= control target key end

     0   :  { %11 = vsyncpa [#allocation9], 0  ;;  %s6960_s21 = smov 0   ;;  %s6962_s22 = smov 0   ;;  %s9094_s0 = inlined_call_operand.vmem [shape: f32[4,32], index: 0, kind: input, shape index: {}]   ;;  %s9095_s1 = inlined_call_operand.vmem [shape: f32[64,4], index: 1, kind: input, shape index: {}]   ;;  %s9096_s2 = inlined_call_operand.vmem [shape: bf16[128,64], index: 2, kind: input, shape index: {}]   ;;  %s9097_s3 = inlined_call_operand.vmem [shape: bf16[64,128], index: 3, kind: input, shape index: {}]   ;;  %s9098_s4 = inlined_call_operand.vmem [shape: f32[1,64], index: 4, kind: input, shape index: {}]   ;;  %s9099_s5 = inlined_call_operand.vmem [shape: f32[128,16], index: 5, kind: input, shape index: {}]   ;;  %s9100_s6 = inlined_call_operand.hbm [shape: f32[1,32], index: 6, kind: output, shape index: {}]  }
   0x1   :  { %s6964_s23 = smov 0  }
   0x2 LB: > { %s5792_s24 = sadd.s32 4294967295, %s6885_s23   ;;  %s29_s25 = sadd.s32 1, %s6881_s22  ;;  %s6885_s23 = sphi %s6964_s23, %s17_s23   ;;  %s6881_s22 = sphi %s6962_s22, %s9302_s22   ;;  %s6877_s21 = sphi %s6960_s21, %s9301_s21  }
   0x3   : > { %p31_p0 = scmp.ge.s32.totalorder %s29_s25, 4  ;;  %p5795_p1 = scmp.ge.s32.totalorder %s6885_s23, 1 }
   0x4   : > { %p224_p2 = scmp.lt.s32.totalorder %s6885_s23, 5 }
   0x5   : > { %s9304_s25 = smov (%p31_p0, %s29_s25), 0 }
   0x6   : > { %p225_p3 = pnand %p5795_p1, %p224_p2 }
   0x8   : > { %228 = sbr.rel (%p225_p3) target bundleno = 3578 (0xdfa), region = 44 }
   0xf   : > { %v6984_v0 = vld [vmem:[%s9099_s5] sm:$0xff]  ;;  %v6989_v1 = vld [vmem:[%s9099_s5 + $0x8] sm:$0xff]  ;;  %v6994_v2 = vld [vmem:[%s9099_s5 + $0x10] sm:$0xff]  ;;  %p5796_p4 = scmp.ne.s32.totalorder %s6877_s21, 0 }
  0x10   : > { %9189 = vst [vmem:[#allocation11_spill] sm:$0xff] %v6984_v0  ;;  %9190 = vst [vmem:[#allocation12_spill] sm:$0xff] %v6989_v1  ;;  %v6999_v3 = vld [vmem:[%s9099_s5 + $0x18] sm:$0xff]  ;;  %v7004_v4 = vld [vmem:[%s9099_s5 + $0x20] sm:$0xff]  ;;  %v6887_v20 = vmov (!%p5796_p4), 3   ;;  %v6888_v21 = vmov (!%p5796_p4), 0   ;;  %v367_v42 = vlaneseq (!%p5796_p4) }
  0x11   : > { %9191 = vst [vmem:[#allocation13_spill] sm:$0xff] %v6994_v2  ;;  %9192 = vst [vmem:[#allocation14_spill] sm:$0xff] %v6999_v3  ;;  %v7009_v5 = vld [vmem:[%s9099_s5 + $0x28] sm:$0xff]  ;;  %v7014_v6 = vld [vmem:[%s9099_s5 + $0x30] sm:$0xff]  ;;  %6479 = vset.pattern.permute.xlu0 (!%p5796_p4), %v6887_v20  ;;  %6474 = vset.pattern.permute.xlu1 (!%p5796_p4), %v6888_v21  ;;  %v6889_v22 = vmov (!%p5796_p4), 1   ;;  %v6890_v24 = vmov (!%p5796_p4), 2  }
  0x12   : > { %9193 = vst [vmem:[#allocation15_spill] sm:$0xff] %v7004_v4  ;;  %9194 = vst [vmem:[#allocation16_spill] sm:$0xff] %v7009_v5  ;;  %v7019_v7 = vld [vmem:[%s9099_s5 + $0x38] sm:$0xff]  ;;  %v7024_v8 = vld [vmem:[%s9099_s5 + $0x40] sm:$0xff]  ;;  %298 = sbr.rel (%p5796_p4) target bundleno = 493 (0x1ed), region = 48  ;;  %vm302_vm0 = vcmask (!%p5796_p4), 7168  }
  0x13   : > { %9195 = vst [vmem:[#allocation17_spill] sm:$0xff] %v7014_v6  ;;  %9196 = vst [vmem:[#allocation18_spill] sm:$0xff] %v7019_v7  ;;  %v7029_v9 = vld [vmem:[%s9099_s5 + $0x48] sm:$0xff]  ;;  %v7034_v10 = vld [vmem:[%s9099_s5 + $0x50] sm:$0xff]  ;;  %v6891_v30 = vmov (!%p5796_p4), 1.0|1.0  }
  0x14   : > { %9197 = vst [vmem:[#allocation19_spill] sm:$0xff] %v7024_v8  ;;  %9198 = vst [vmem:[#allocation20_spill] sm:$0xff] %v7029_v9  ;;  %v7039_v11 = vld [vmem:[%s9099_s5 + $0x58] sm:$0xff]  ;;  %v7044_v12 = vld [vmem:[%s9099_s5 + $0x60] sm:$0xff]  ;;  %6366 = vmatprep.subr.bf16.mxu0 (!%p5796_p4), %v6891_v30  ;;  %6370 = vmatprep.subr.bf16.mxu1 (!%p5796_p4), %v6891_v30  ;;  %v6892_v31 = vmov (!%p5796_p4), 0.0   ;;  %v368_v44 = vshrl.u32 (!%p5796_p4), %v367_v42, 7 }
  0x15   : > { %9199 = vst [vmem:[#allocation21_spill] sm:$0xff] %v7034_v10  ;;  %9200 = vst [vmem:[#allocation22_spill] sm:$0xff] %v7039_v11  ;;  %v7049_v13 = vld [vmem:[%s9099_s5 + $0x68] sm:$0xff]  ;;  %v7054_v14 = vld [vmem:[%s9099_s5 + $0x70] sm:$0xff]  ;;  %6367 = vmatpush3.bf16.msra.mxu0 (!%p5796_p4), %v6891_v30  ;;  %6371 = vmatpush3.bf16.msra.mxu1 (!%p5796_p4), %v6891_v30  ;;  %vm615_vm2 = vcmask (!%p5796_p4), 261120  }
  0x16   : > { %9201 = vst [vmem:[#allocation23_spill] sm:$0xff] %v7044_v12  ;;  %9202 = vst [vmem:[#allocation24_spill] sm:$0xff] %v7049_v13  ;;  %v7059_v15 = vld [vmem:[%s9099_s5 + $0x78] sm:$0xff]  ;;  %v7064_v16 = vld [vmem:[%s9099_s5] sm:$0x1]  ;;  %6368 = vmatprep.subr.bf16.mxu0 (!%p5796_p4), %v6891_v30  ;;  %6372 = vmatprep.subr.bf16.mxu1 (!%p5796_p4), %v6891_v30  ;;  %v369_v47 = vsub.s32 (!%p5796_p4), 0, %v368_v44 }
  0x17   : > { %9203 = vst [vmem:[#allocation25_spill] sm:$0xff] %v7054_v14  ;;  %9204 = vst [vmem:[#allocation26_spill] sm:$0xff] %v7059_v15  ;;  %v7069_v17 = vld [vmem:[%s9094_s0] sm:$0xf]  ;;  %v320_v18 = vld [vmem:[%s9095_s1 + $0x8] sm:$0xff] (!%p5796_p4)  ;;  %v413_v48 = vsub.s32 (!%p5796_p4), 1, %v368_v44 }
  0x18   : > { %9205 = vst [vmem:[#allocation27_spill] sm:$0xff] %v7064_v16  ;;  %9206 = vst [vmem:[#allocation28_spill] sm:$0xff] %v7069_v17  ;;  %v319_v19 = vld [vmem:[%s9095_s1] sm:$0xff] (!%p5796_p4)  ;;  %334 = vperm.xlu1 (!%p5796_p4), %6474, %v320_v18   ;;  %v321_v23 = vld [vmem:[%s9095_s1 + $0x10] sm:$0xff] (!%p5796_p4)  ;;  %v7157_v50 = vrot.slane (!%p5796_p4), %v7069_v17, %v369_v47  ;;  %v465_v52 = vsub.s32 (!%p5796_p4), 2, %v368_v44  ;;  %v517_v54 = vsub.s32 (!%p5796_p4), 3, %v368_v44 }
  0x19   : > { %484 = vperm.xlu0 %6479, %v319_v19   ;;  %v324_v25 = vld [vmem:[%s9095_s1 + $0x28] sm:$0xff]  ;;  %v325_v26 = vld [vmem:[%s9095_s1 + $0x30] sm:$0xff]  ;;  %v322_v27 = vld [vmem:[%s9095_s1 + $0x18] sm:$0xff]  ;;  %6369 = vmatpush3.bf16.msra.mxu0 %v6891_v30  ;;  %304 = vst.msk [vmem:[#allocation2 + $0x8] sm:$0xff] %vm302_vm0, %v6892_v31  ;;  %v7160_v51 = vrot.slane %v7069_v17, %v413_v48 }
  0x1a   : > { %v326_v28 = vld [vmem:[%s9095_s1 + $0x38] sm:$0xff]  ;;  %v323_v29 = vld [vmem:[%s9095_s1 + $0x20] sm:$0xff]  ;;  %6373 = vmatpush3.bf16.msra.mxu1 %v6891_v30  ;;  %303 = vst.msk [vmem:[#allocation2] sm:$0xff] %vm302_vm0, %v6892_v31  ;;  %305 = vst.msk [vmem:[#allocation2 + $0x10] sm:$0xff] %vm302_vm0, %v6892_v31  ;;  %v7165_v57 = vrot.slane %v7069_v17, %v465_v52  ;;  %v7172_v60 = vrot.slane %v7069_v17, %v517_v54 }
  0x1b   : > { %306 = vst.msk [vmem:[#allocation2 + $0x18] sm:$0xff] %vm302_vm0, %v6892_v31  ;;  %307 = vst.msk [vmem:[#allocation2 + $0x20] sm:$0xff] %vm302_vm0, %v6892_v31 }
  0x1c   : > { %6475 = vset.pattern.permute.xlu1 %v6889_v22  ;;  %308 = vst.msk [vmem:[#allocation2 + $0x28] sm:$0xff] %vm302_vm0, %v6892_v31  ;;  %309 = vst.msk [vmem:[#allocation2 + $0x30] sm:$0xff] %vm302_vm0, %v6892_v31 }
  0x1d   : > { %488 = vperm.xlu0 %6479, %v320_v18   ;;  %384 = vperm.xlu1 %6475, %v320_v18   ;;  %310 = vst.msk [vmem:[#allocation2 + $0x38] sm:$0xff] %vm302_vm0, %v6892_v31  ;;  %311 = vst.msk [vmem:[#allocation3] sm:$0xff] %vm302_vm0, %v6892_v31 }
  0x1e   : > { %312 = vst.msk [vmem:[#allocation3 + $0x8] sm:$0xff] %vm302_vm0, %v6892_v31  ;;  %313 = vst.msk [vmem:[#allocation3 + $0x10] sm:$0xff] %vm302_vm0, %v6892_v31 }
  0x1f   : > { %314 = vst.msk [vmem:[#allocation3 + $0x18] sm:$0xff] %vm302_vm0, %v6892_v31  ;;  %315 = vst.msk [vmem:[#allocation3 + $0x20] sm:$0xff] %vm302_vm0, %v6892_v31 }
  0x20   : > { %316 = vst.msk [vmem:[#allocation3 + $0x28] sm:$0xff] %vm302_vm0, %v6892_v31  ;;  %317 = vst.msk [vmem:[#allocation3 + $0x30] sm:$0xff] %vm302_vm0, %v6892_v31 }
  0x21   : > { %492 = vperm.xlu0 %6479, %v321_v23   ;;  %6476 = vset.pattern.permute.xlu1 %v6890_v24  ;;  %318 = vst.msk [vmem:[#allocation3 + $0x38] sm:$0xff] %vm302_vm0, %v6892_v31 }
  0x22   : > { %432 = vperm.xlu1 %6476, %v319_v19  }
  0x25   : > { %6485 = vset.pattern.permute.xlu0 %v6889_v22 }
  0x26   : > { %380 = vperm.xlu0 %6485, %v319_v19   ;;  %6477 = vset.pattern.permute.xlu1 %v6888_v21 }
  0x27   : > { %339 = vperm.xlu1 %6477, %v321_v23  }
  0x2a   : > { %400 = vperm.xlu0 %6485, %v324_v25  }
  0x2b   : > { %6478 = vset.pattern.permute.xlu1 %v6889_v22 }
  0x2c   : > { %388 = vperm.xlu1 %6478, %v321_v23  }
  0x2e   : > { %404 = vperm.xlu0 %6485, %v325_v26  }
  0x30   : > { %6480 = vset.pattern.permute.xlu1 %v6888_v21 }
  0x31   : > { %344 = vperm.xlu1 %6480, %v322_v27  }
  0x32   : > { %6491 = vset.pattern.permute.xlu0 %v6888_v21 }
  0x33   : > { %329 = vperm.xlu0 %6491, %v319_v19  }
  0x35   : > { %6481 = vset.pattern.permute.xlu1 %v6889_v22 }
  0x36   : > { %392 = vperm.xlu1 %6481, %v322_v27  }
  0x37   : > { %364 = vperm.xlu0 %6491, %v326_v28  }
  0x3a   : > { %6482 = vset.pattern.permute.xlu1 %v6890_v24 }
  0x3b   : > { %552 = vperm.xlu0 %6491, %v6999_v3   ;;  %440 = vperm.xlu1 %6482, %v321_v23  }
  0x3f   : > { %6496 = vset.pattern.permute.xlu0 %v6890_v24  ;;  %6483 = vset.pattern.permute.xlu1 %v6888_v21 }
  0x40   : > { %436 = vperm.xlu0 %6496, %v320_v18   ;;  %349 = vperm.xlu1 %6483, %v323_v29  }
  0x44   : > { %444 = vperm.xlu0 %6496, %v322_v27   ;;  %6484 = vset.pattern.permute.xlu1 %v6889_v22 }
  0x45   : > { %396 = vperm.xlu1 %6484, %v323_v29  }
  0x48   : > { %448 = vperm.xlu0 %6496, %v323_v29  }
  0x49   : > { %6486 = vset.pattern.permute.xlu1 %v6888_v21 }
  0x4a   : > { %537 = vperm.xlu1 %6486, %v6984_v0  }
  0x4c   : > { %460 = vperm.xlu0 %6496, %v326_v28  }
  0x4e   : > { %354 = vperm.xlu1 %6486, %v324_v25  }
  0x50   : > { %6500 = vset.pattern.permute.xlu0 %v6887_v20 }
  0x51   : > { %512 = vperm.xlu0 %6500, %v326_v28  }
  0x52   : > { %6487 = vset.pattern.permute.xlu1 %v6887_v20 }
  0x53   : > { %496 = vperm.xlu1 %6487, %v322_v27  }
  0x55   : > { %6501 = vset.pattern.permute.xlu0 %v6888_v21 }
  0x56   : > { %572 = vperm.xlu0 %6501, %v7019_v7  }
  0x57   : > { %6488 = vset.pattern.permute.xlu1 %v6888_v21 }
  0x58   : > { %542 = vperm.xlu1 %6488, %v6989_v1  }
  0x5c   : > { %6489 = vset.pattern.permute.xlu1 %v6890_v24 }
  0x5d   : > { %452 = vperm.xlu1 %6489, %v324_v25  }
  0x61   : > { %6490 = vset.pattern.permute.xlu1 %v6888_v21 }
  0x62   : > { %359 = vperm.xlu1 %6490, %v325_v26  }
  0x66   : > { %6492 = vset.pattern.permute.xlu1 %v6887_v20 }
  0x67   : > { %500 = vperm.xlu1 %6492, %v323_v29  }
  0x6b   : > { %6493 = vset.pattern.permute.xlu1 %v6888_v21 }
  0x6c   : > { %547 = vperm.xlu1 %6493, %v6994_v2  }
  0x70   : > { %6494 = vset.pattern.permute.xlu1 %v6889_v22 }
  0x71   : > { %408 = vperm.xlu1 %6494, %v326_v28  }
  0x75   : > { %6495 = vset.pattern.permute.xlu1 %v6887_v20 }
  0x76   : > { %504 = vperm.xlu1 %6495, %v324_v25  }
  0x7a   : > { %6497 = vset.pattern.permute.xlu1 %v6890_v24 }
  0x7b   : > { %456 = vperm.xlu1 %6497, %v325_v26  }
  0x7f   : > { %6498 = vset.pattern.permute.xlu1 %v6887_v20 }
  0x80   : > { %508 = vperm.xlu1 %6498, %v325_v26  }
  0x84   : > { %6499 = vset.pattern.permute.xlu1 %v6888_v21 }
  0x85   : > { %557 = vperm.xlu1 %6499, %v7004_v4  }
  0x89   : > { %562 = vperm.xlu1 %6499, %v7009_v5  }
  0x8d   : > { %567 = vperm.xlu1 %6499, %v7014_v6  }
  0x97   : > { %v335_v32 = vpop.permute.xlu1 %334 }
  0x98   : > { %v485_v33 = vpop.permute.xlu0 %484  ;;  %v372_v28 = vmul.f32 %v7157_v50, %v335_v32 }
  0x99   : > { %v519_v63 = vmul.f32 %v7172_v60, %v485_v33 }
  0x9c   : > { %v489_v34 = vpop.permute.xlu0 %488  ;;  %v385_v35 = vpop.permute.xlu1 %384 }
  0x9d   : > { %v416_v25 = vmul.f32 %v7160_v51, %v385_v35 }
  0x9f   : > { %v424_v33 = vadd.f32 %v416_v25, %v372_v28 }
  0xa0   : > { %v7148_v36 = vpop.permute.xlu0 %492 }
  0xa1   : > { %v433_v37 = vpop.permute.xlu1 %432 }
  0xa2   : > { %v467_v62 = vmul.f32 %v7165_v57, %v433_v37  ;;  %v520_v37 = vmul.f32 %v7172_v60, %v489_v34 }
  0xa5   : > { %v381_v39 = vpop.permute.xlu0 %380 }
  0xa6   : > { %v7150_v38 = vpop.permute.xlu1 %339  ;;  %v415_v55 = vmul.f32 %v7160_v51, %v381_v39 }
  0xa9   : > { %v7152_v41 = vpop.permute.xlu0 %400 }
  0xab   : > { %v389_v40 = vpop.permute.xlu1 %388 }
  0xad   : > { %v7154_v45 = vpop.permute.xlu0 %404 }
  0xb0   : > { %v345_v43 = vpop.permute.xlu1 %344 }
  0xb2   : > { %v330_v49 = vpop.permute.xlu0 %329 }
  0xb3   : > { %v371_v56 = vmul.f32 %v7157_v50, %v330_v49 }
  0xb5   : > { %v393_v46 = vpop.permute.xlu1 %392  ;;  %v423_v61 = vadd.f32 %v415_v55, %v371_v56  ;;  %v374_v55 = vmul.f32 %v7157_v50, %v345_v43 }
  0xb6   : > { %v7167_v58 = vpop.permute.xlu0 %364  ;;  %v418_v32 = vmul.f32 %v7160_v51, %v393_v46  ;;  %v373_v46 = vmul.f32 %v7157_v50, %v7150_v38 }
  0xb7   : > { %v475_v19 = vadd.f32 %v467_v62, %v423_v61 }
  0xb8   : > { %v426_v34 = vadd.f32 %v418_v32, %v374_v55 }
  0xb9   : > { %v527_v21 = vadd.f32 %v519_v63, %v475_v19  ;;  %v417_v63 = vmul.f32 %v7160_v51, %v389_v40 }
  0xba   : > { %v441_v53 = vpop.permute.xlu1 %440  ;;  %v553_v20 = vpop.permute.xlu0 %552 }
  0xbf   : > { %v7169_v59 = vpop.permute.xlu1 %349  ;;  %v437_v24 = vpop.permute.xlu0 %436 }
  0xc0   : > { %v468_v29 = vmul.f32 %v7165_v57, %v437_v24  ;;  %v521_v24 = vmul.f32 %v7172_v60, %v7148_v36  ;;  %v375_v32 = vmul.f32 %v7157_v50, %v7169_v59 }
  0xc2   : > { %v476_v39 = vadd.f32 %v468_v29, %v424_v33 }
  0xc3   : > { %v445_v48 = vpop.permute.xlu0 %444 }
  0xc4   : > { %v7176_v18 = vpop.permute.xlu1 %396  ;;  %v528_v42 = vadd.f32 %v520_v37, %v476_v39  ;;  %v470_v56 = vmul.f32 %v7165_v57, %v445_v48  ;;  %v378_v48 = vmul.f32 %v7157_v50, %v7167_v58 }
  0xc6   : > { %v478_v19 = vadd.f32 %v470_v56, %v426_v34 }
  0xc7   : > { %v449_v36 = vpop.permute.xlu0 %448 }
  0xc9   : > { %v538_v22 = vpop.permute.xlu1 %537 }
  0xca   : > { %v575_v23 = vadd.f32 %v538_v22, %v527_v21  ;;  %v469_v22 = vmul.f32 %v7165_v57, %v441_v53 }
  0xcc   : > { %vm583_vm1 = vcmp.ge.f32.partialorder %v575_v23, 0.0  ;;  %v591_v26 = vmul.f32 0.2, %v575_v23 }
  0xcd   : > { %v7179_v27 = vpop.permute.xlu1 %354 }
  0xce   : > { %v599_v30 = vsel %vm583_vm1, %v575_v23, %v591_v26  ;;  %v425_v23 = vadd.f32 %v417_v63, %v373_v46 }
  0xcf   : > { %6091 = vmatprep.mubr.msk.f32.mxu0 %vm615_vm2, %v599_v30  ;;  %v770_v31 = vmul.f32 %v599_v30, %v599_v30 }
  0xd0   : > { %v477_v25 = vadd.f32 %v469_v22, %v425_v23 }
  0xd1   : > { %6111 = vmatprep.mubr.msk.f32.mxu1 %vm615_vm2, %v770_v31 }
  0xd2   : > { %v497_v35 = vpop.permute.xlu1 %496  ;;  %v529_v29 = vadd.f32 %v521_v24, %v477_v25 }
  0xd3   : > { %v522_v62 = vmul.f32 %v7172_v60, %v497_v35 }
  0xd5   : > { %v530_v43 = vadd.f32 %v522_v62, %v478_v19  ;;  %v420_v62 = vmul.f32 %v7160_v51, %v7152_v41  ;;  %v421_v41 = vmul.f32 %v7160_v51, %v7154_v45 }
  0xd7   : > { %v543_v44 = vpop.permute.xlu1 %542  ;;  %v578_v28 = vadd.f32 %v553_v20, %v530_v43 }
  0xd8   : > { %v576_v47 = vadd.f32 %v543_v44, %v528_v42  ;;  %v461_v42 = vpop.permute.xlu0 %460 }
  0xd9   : > { %v594_v31 = vmul.f32 0.2, %v578_v28  ;;  %vm586_vm4 = vcmp.ge.f32.partialorder %v578_v28, 0.0 }
  0xda   : > { %vm584_vm3 = vcmp.ge.f32.partialorder %v576_v47, 0.0  ;;  %v592_v49 = vmul.f32 0.2, %v576_v47 }
  0xdb   : > { %v602_v37 = vsel %vm586_vm4, %v578_v28, %v594_v31 }
  0xdc   : > { %v453_v52 = vpop.permute.xlu1 %452  ;;  %v600_v54 = vsel %vm584_vm3, %v576_v47, %v592_v49  ;;  %v773_v35 = vmul.f32 %v602_v37, %v602_v37  ;;  %v419_v47 = vmul.f32 %v7160_v51, %v7176_v18  ;;  %v513_v34 = vpop.permute.xlu0 %512  ;;  %v376_v18 = vmul.f32 %v7157_v50, %v7179_v27 }
  0xdd   : > { %6092 = vmatmul.mubr.msk.f32.vlgmr.msra.gmra.mrb[0].mxu0 %vm615_vm2, %v600_v54  ;;  %v771_v61 = vmul.f32 %v600_v54, %v600_v54  ;;  %v474_v54 = vmul.f32 %v7165_v57, %v461_v42  ;;  %v526_v19 = vmul.f32 %v7172_v60, %v513_v34  ;;  %v472_v22 = vmul.f32 %v7165_v57, %v453_v52 }
  0xde   : > { %v427_v56 = vadd.f32 %v419_v47, %v375_v32  ;;  %v428_v23 = vadd.f32 %v420_v62, %v376_v18  ;;  %v762_v18 = vld [vmem:[#allocation3] sm:$0xff] }
  0xdf   : > { %6112 = vmatmul.mubr.msk.f32.vlgmr.msra.gmra.mrb[0].mxu1 %vm615_vm2, %v771_v61  ;;  %v471_v61 = vmul.f32 %v7165_v57, %v449_v36 }
  0xe1   : > { %v360_v21 = vpop.permute.xlu1 %359  ;;  %v479_v59 = vadd.f32 %v471_v61, %v427_v56  ;;  %v763_v61 = vld [vmem:[#allocation3 + $0x8] sm:$0xff] }
  0xe2   : > { %v377_v43 = vmul.f32 %v7157_v50, %v360_v21 }
  0xe6   : > { %v501_v26 = vpop.permute.xlu1 %500 }
  0xe7   : > { %v523_v63 = vmul.f32 %v7172_v60, %v501_v26  ;;  %v573_v26 = vpop.permute.xlu0 %572 }
  0xe9   : > { %v531_v25 = vadd.f32 %v523_v63, %v479_v59 }
  0xeb   : > { %v548_v30 = vpop.permute.xlu1 %547 }
  0xec   : > { %v577_v33 = vadd.f32 %v548_v30, %v529_v29  ;;  %v480_v29 = vadd.f32 %v472_v22, %v428_v23  ;;  %v610_v22 = vld [vmem:[#allocation2 + $0x18] sm:$0xff] }
  0xee   : > { %vm585_vm5 = vcmp.ge.f32.partialorder %v577_v33, 0.0  ;;  %v593_v40 = vmul.f32 0.2, %v577_v33 }
  0xf0   : > { %v409_v39 = vpop.permute.xlu1 %408  ;;  %v601_v38 = vsel %vm585_vm5, %v577_v33, %v593_v40  ;;  %v429_v33 = vadd.f32 %v421_v41, %v377_v43  ;;  %v609_v43 = vld [vmem:[#allocation2 + $0x10] sm:$0xff] }
  0xf1   : > { %6094 = vmatprep.mubr.msk.f32.mxu0 %vm615_vm2, %v601_v38  ;;  %v772_v53 = vmul.f32 %v601_v38, %v601_v38  ;;  %v422_v44 = vmul.f32 %v7160_v51, %v409_v39 }
  0xf2   : > { %6095 = vmatmul.mubr.msk.f32.gmra.mrb[2].mxu0 %vm615_vm2, %v602_v37 }
  0xf3   : > { %6114 = vmatprep.mubr.msk.f32.mxu1 %vm615_vm2, %v772_v53  ;;  %v430_v55 = vadd.f32 %v422_v44, %v378_v48 }
  0xf4   : > { %6115 = vmatmul.mubr.msk.f32.gmra.mrb[2].mxu1 %vm615_vm2, %v773_v35 }
  0xf5   : > { %v505_v20 = vpop.permute.xlu1 %504  ;;  %v482_v46 = vadd.f32 %v474_v54, %v430_v55  ;;  %v608_v54 = vld [vmem:[#allocation2 + $0x8] sm:$0xff]  ;;  %v607_v55 = vld [vmem:[#allocation2] sm:$0xff] }
  0xf6   : > { %v524_v24 = vmul.f32 %v7172_v60, %v505_v20 }
  0xf7   : > { %v534_v28 = vadd.f32 %v526_v19, %v482_v46 }
  0xf8   : > { %v532_v50 = vadd.f32 %v524_v24, %v480_v29  ;;  %v765_v24 = vld [vmem:[#allocation3 + $0x18] sm:$0xff] }
  0xf9   : > { %v582_v21 = vadd.f32 %v573_v26, %v534_v28  ;;  %v764_v28 = vld [vmem:[#allocation3 + $0x10] sm:$0xff] }
  0xfa   : > { %v457_v49 = vpop.permute.xlu1 %456 }
  0xfb   : > { %v473_v30 = vmul.f32 %v7165_v57, %v457_v49  ;;  %v598_v36 = vmul.f32 0.2, %v582_v21  ;;  %vm590_vm8 = vcmp.ge.f32.partialorder %v582_v21, 0.0 }
  0xfd   : > { %v481_v39 = vadd.f32 %v473_v30, %v429_v33  ;;  %v606_v47 = vsel %vm590_vm8, %v582_v21, %v598_v36  ;;  %v612_v33 = vld [vmem:[#allocation2 + $0x28] sm:$0xff] }
  0xfe   : > { %v777_v32 = vmul.f32 %v606_v47, %v606_v47 }
  0xff   : > { %v509_v58 = vpop.permute.xlu1 %508 }
 0x100   : > { %v525_v40 = vmul.f32 %v7172_v60, %v509_v58 }
 0x102   : > { %v533_v35 = vadd.f32 %v525_v40, %v481_v39  ;;  %v611_v40 = vld [vmem:[#allocation2 + $0x20] sm:$0xff] }
 0x103   : > { %v766_v39 = vld [vmem:[#allocation3 + $0x20] sm:$0xff] }
 0x104   : > { %v558_v27 = vpop.permute.xlu1 %557 }
 0x105   : > { %v579_v31 = vadd.f32 %v558_v27, %v531_v25 }
 0x107   : > { %vm587_vm6 = vcmp.ge.f32.partialorder %v579_v31, 0.0  ;;  %v595_v52 = vmul.f32 0.2, %v579_v31 }
 0x108   : > { %v563_v37 = vpop.permute.xlu1 %562 }
 0x109   : > { %v580_v38 = vadd.f32 %v563_v37, %v532_v50  ;;  %v603_v53 = vsel %vm587_vm6, %v579_v31, %v595_v52  ;;  %v767_v50 = vld [vmem:[#allocation3 + $0x28] sm:$0xff] }
 0x10a   : > { %6097 = vmatprep.mubr.msk.f32.mxu0 %vm615_vm2, %v603_v53  ;;  %v774_v45 = vmul.f32 %v603_v53, %v603_v53 }
 0x10b   : > { %vm588_vm7 = vcmp.ge.f32.partialorder %v580_v38, 0.0  ;;  %v596_v51 = vmul.f32 0.2, %v580_v38 }
 0x10c   : > { %6117 = vmatprep.mubr.msk.f32.mxu1 %vm615_vm2, %v774_v45  ;;  %v568_v57 = vpop.permute.xlu1 %567 }
 0x10d   : > { %v581_v60 = vadd.f32 %v568_v57, %v533_v35  ;;  %v604_v20 = vsel %vm588_vm7, %v580_v38, %v596_v51  ;;  %v614_v35 = vld [vmem:[#allocation2 + $0x38] sm:$0xff]  ;;  %v613_v57 = vld [vmem:[#allocation2 + $0x30] sm:$0xff] }
 0x10e   : > { %6098 = vmatmul.mubr.msk.f32.gmra.mrb[4].mxu0 %vm615_vm2, %v604_v20  ;;  %v775_v42 = vmul.f32 %v604_v20, %v604_v20  ;;  %v769_v20 = vld [vmem:[#allocation3 + $0x38] sm:$0xff] }
 0x10f   : > { %vm589_vm9 = vcmp.ge.f32.partialorder %v581_v60, 0.0  ;;  %v597_v44 = vmul.f32 0.2, %v581_v60 }
 0x110   : > { %6118 = vmatmul.mubr.msk.f32.gmra.mrb[4].mxu1 %vm615_vm2, %v775_v42 }
 0x111   : > { %v605_v48 = vsel %vm589_vm9, %v581_v60, %v597_v44 }
 0x112   : > { %6100 = vmatprep.mubr.msk.f32.mxu0 %vm615_vm2, %v605_v48  ;;  %v776_v49 = vmul.f32 %v605_v48, %v605_v48 }
 0x113   : > { %6101 = vmatmul.mubr.msk.f32.gmra.mrb[6].mxu0 %vm615_vm2, %v606_v47  ;;  %v768_v47 = vld [vmem:[#allocation3 + $0x30] sm:$0xff] }
 0x114   : > { %6120 = vmatprep.mubr.msk.f32.mxu1 %vm615_vm2, %v776_v49 }
 0x115   : > { %6121 = vmatmul.mubr.msk.f32.gmra.mrb[6].mxu1 %vm615_vm2, %v777_v32 }
 0x1b0   : > { %v6093_v56 = vpop.f32.mrb[0].mxu0 }
 0x1b1   : > { %v746_v34 = vadd.f32 %v6093_v56, %v608_v54  ;;  %v706_v62 = vpop.f32.mrb[1].mxu0 }
 0x1b2   : > { %v745_v63 = vadd.f32 %v706_v62, %v607_v55  ;;  %v6113_v58 = vpop.f32.mrb[0].mxu1 }
 0x1b3   : > { %755 = vst.msk [vmem:[#allocation2 + $0x8] sm:$0xff] %vm302_vm0, %v746_v34  ;;  %v908_v19 = vadd.f32 %v6113_v58, %v763_v61  ;;  %v868_v46 = vpop.f32.mrb[1].mxu1 }
 0x1b4   : > { %754 = vst.msk [vmem:[#allocation2] sm:$0xff] %vm302_vm0, %v745_v63  ;;  %v907_v59 = vadd.f32 %v868_v46, %v762_v18 }
 0x1b5   : > { %916 = vst.msk [vmem:[#allocation3 + $0x8] sm:$0xff] %vm302_vm0, %v908_v19 }
 0x1b6   : > { %915 = vst.msk [vmem:[#allocation3] sm:$0xff] %vm302_vm0, %v907_v59 }
 0x1c5   : > { %v6096_v23 = vpop.f32.mrb[2].mxu0 }
 0x1c6   : > { %v748_v25 = vadd.f32 %v6096_v23, %v610_v22  ;;  %v716_v41 = vpop.f32.mrb[3].mxu0 }
 0x1c7   : > { %v747_v27 = vadd.f32 %v716_v41, %v609_v43  ;;  %v6116_v29 = vpop.f32.mrb[2].mxu1 }
 0x1c8   : > { %757 = vst.msk [vmem:[#allocation2 + $0x18] sm:$0xff] %vm302_vm0, %v748_v25  ;;  %v910_v26 = vadd.f32 %v6116_v29, %v765_v24  ;;  %v878_v30 = vpop.f32.mrb[3].mxu1 }
 0x1c9   : > { %756 = vst.msk [vmem:[#allocation2 + $0x10] sm:$0xff] %vm302_vm0, %v747_v27  ;;  %v909_v31 = vadd.f32 %v878_v30, %v764_v28 }
 0x1ca   : > { %918 = vst.msk [vmem:[#allocation3 + $0x18] sm:$0xff] %vm302_vm0, %v910_v26 }
 0x1cb   : > { %917 = vst.msk [vmem:[#allocation3 + $0x10] sm:$0xff] %vm302_vm0, %v909_v31 }
 0x1e1   : > { %v6099_v52 = vpop.f32.mrb[4].mxu0 }
 0x1e2   : > { %v750_v21 = vadd.f32 %v6099_v52, %v612_v33  ;;  %v726_v37 = vpop.f32.mrb[5].mxu0 }
 0x1e3   : > { %v749_v38 = vadd.f32 %v726_v37, %v611_v40  ;;  %v6119_v53 = vpop.f32.mrb[4].mxu1 }
 0x1e4   : > { %759 = vst.msk [vmem:[#allocation2 + $0x28] sm:$0xff] %vm302_vm0, %v750_v21  ;;  %v912_v45 = vadd.f32 %v6119_v53, %v767_v50  ;;  %v888_v51 = vpop.f32.mrb[5].mxu1 }
 0x1e5   : > { %758 = vst.msk [vmem:[#allocation2 + $0x20] sm:$0xff] %vm302_vm0, %v749_v38  ;;  %v911_v36 = vadd.f32 %v888_v51, %v766_v39 }
 0x1e6   : > { %920 = vst.msk [vmem:[#allocation3 + $0x28] sm:$0xff] %vm302_vm0, %v912_v45  ;;  %v6102_v60 = vpop.f32.mrb[6].mxu0 }
 0x1e7   : > { %919 = vst.msk [vmem:[#allocation3 + $0x20] sm:$0xff] %vm302_vm0, %v911_v36  ;;  %v752_v42 = vadd.f32 %v6102_v60, %v614_v35  ;;  %v736_v44 = vpop.f32.mrb[7].mxu0 }
 0x1e8   : > { %v751_v48 = vadd.f32 %v736_v44, %v613_v57  ;;  %v6122_v49 = vpop.f32.mrb[6].mxu1 }
 0x1e9   : > { %761 = vst.msk [vmem:[#allocation2 + $0x38] sm:$0xff] %vm302_vm0, %v752_v42  ;;  %v914_v32 = vadd.f32 %v6122_v49, %v769_v20  ;;  %v898_v54 = vpop.f32.mrb[7].mxu1 }
 0x1ea   : > { %760 = vst.msk [vmem:[#allocation2 + $0x30] sm:$0xff] %vm302_vm0, %v751_v48  ;;  %v913_v55 = vadd.f32 %v898_v54, %v768_v47 }
 0x1eb   : > { %922 = vst.msk [vmem:[#allocation3 + $0x38] sm:$0xff] %vm302_vm0, %v914_v32 }
 0x1ec   : > { %921 = vst.msk [vmem:[#allocation3 + $0x30] sm:$0xff] %vm302_vm0, %v913_v55 }
 0x1ed PF: > { %p5813_p5 = scmp.ne.s32.totalorder %s6877_s21, 1 }
 0x1ee   : > { %s6893_s16 = smov (!%p5813_p5), 127   ;;  %v6894_v56 = vmov (!%p5813_p5), 1   ;;  %v6895_v61 = vmov (!%p5813_p5), 0   ;;  %v964_v34 = vld [vmem:[%s9095_s1 + $0x8] sm:$0xff] (!%p5813_p5)  ;;  %v966_v62 = vld [vmem:[%s9095_s1 + $0x18] sm:$0xff] (!%p5813_p5)  ;;  %v963_v18 = vld [vmem:[%s9095_s1] sm:$0xff] (!%p5813_p5) }
 0x1ef   : > { %926 = sbr.rel (%p5813_p5) target bundleno = 1329 (0x531), region = 56  ;;  %1327 = vrot.lane.b32.xlu1 (!%p5813_p5), %v6994_v2, %s6893_s16  ;;  %1323 = vrot.lane.b32.xlu0 (!%p5813_p5), %v6984_v0, %s6893_s16  ;;  %v7272_v63 = vld [vmem:[%s9095_s1 + $0x30] sm:$0xff] (!%p5813_p5)  ;;  %v6896_v58 = vmov (!%p5813_p5), 2   ;;  %v6897_v46 = vmov (!%p5813_p5), 3   ;;  %v968_v59 = vld [vmem:[%s9095_s1 + $0x28] sm:$0xff] (!%p5813_p5)  ;;  %v1251_v23 = vld [vmem:[#allocation2] sm:$0xff] (!%p5813_p5) }
 0x1f0   : > { %6504 = vset.pattern.permute.xlu0 (!%p5813_p5), %v6894_v56  ;;  %6502 = vset.pattern.permute.xlu1 (!%p5813_p5), %v6895_v61  ;;  %v965_v19 = vld [vmem:[%s9095_s1 + $0x10] sm:$0xff] (!%p5813_p5)  ;;  %v7290_v22 = vld [vmem:[%s9095_s1 + $0x38] sm:$0xff] (!%p5813_p5)  ;;  %v967_v43 = vld [vmem:[%s9095_s1 + $0x20] sm:$0xff] (!%p5813_p5)  ;;  %v1259_v24 = vmul.f32 (!%p5813_p5), 0.03125, %v1251_v23  ;;  %vm1623_vm10 = vcmask (!%p5813_p5), 523264   ;;  %vm930_vm3 = vcmask (!%p5813_p5), 7168  }
 0x1f1   : > { %v1254_v25 = vld [vmem:[#allocation2 + $0x18] sm:$0xff] (!%p5813_p5)  ;;  %v1256_v26 = vld [vmem:[#allocation2 + $0x28] sm:$0xff] (!%p5813_p5)  ;;  %v1267_v30 = vld [vmem:[#allocation3] sm:$0xff] (!%p5813_p5)  ;;  %vm1761_vm4 = vcmask (!%p5813_p5), 261120  }
 0x1f2   : > { %v7310_v41 = vmul.f32 (!%p5813_p5), 0.03125, %v1254_v25  ;;  %v1270_v28 = vld [vmem:[#allocation3 + $0x18] sm:$0xff] (!%p5813_p5)  ;;  %v7317_v40 = vmul.f32 (!%p5813_p5), 0.03125, %v1256_v26  ;;  %v1272_v52 = vld [vmem:[#allocation3 + $0x28] sm:$0xff] (!%p5813_p5)  ;;  %v1275_v21 = vmul.f32 (!%p5813_p5), 0.03125, %v1267_v30  ;;  %v1283_v37 = vmul.f32 (!%p5813_p5), %v1259_v24, %v1259_v24 }
 0x1f3   : > { %1329 = vrot.lane.b32.xlu1 (!%p5813_p5), %v6999_v3, %s6893_s16  ;;  %1325 = vrot.lane.b32.xlu0 (!%p5813_p5), %v6989_v1, %s6893_s16  ;;  %v1278_v27 = vmul.f32 (!%p5813_p5), 0.03125, %v1270_v28  ;;  %v1258_v50 = vld [vmem:[#allocation2 + $0x38] sm:$0xff] (!%p5813_p5)  ;;  %v1268_v38 = vld [vmem:[#allocation3 + $0x8] sm:$0xff] (!%p5813_p5)  ;;  %v1280_v45 = vmul.f32 (!%p5813_p5), 0.03125, %v1272_v52  ;;  %v1255_v28 = vld [vmem:[#allocation2 + $0x20] sm:$0xff] (!%p5813_p5) }
 0x1f4   : > { %v1286_v29 = vmul.f32 (!%p5813_p5), %v7310_v41, %v7310_v41  ;;  %v1252_v31 = vld [vmem:[#allocation2 + $0x8] sm:$0xff] (!%p5813_p5)  ;;  %v1288_v51 = vmul.f32 (!%p5813_p5), %v7317_v40, %v7317_v40  ;;  %v7323_v35 = vmul.f32 (!%p5813_p5), 0.03125, %v1258_v50  ;;  %v1274_v36 = vld [vmem:[#allocation3 + $0x38] sm:$0xff] (!%p5813_p5)  ;;  %v1291_v57 = vsub.f32 (!%p5813_p5), %v1275_v21, %v1283_v37 }
 0x1f5   : > { %v1260_v39 = vmul.f32 (!%p5813_p5), 0.03125, %v1252_v31  ;;  %v1276_v60 = vmul.f32 (!%p5813_p5), 0.03125, %v1268_v38  ;;  %v1282_v47 = vmul.f32 (!%p5813_p5), 0.03125, %v1274_v36  ;;  %v1263_v30 = vmul.f32 (!%p5813_p5), 0.03125, %v1255_v28  ;;  %v1269_v31 = vld [vmem:[#allocation3 + $0x10] sm:$0xff] (!%p5813_p5) }
 0x1f6   : > { %v1294_v33 = vsub.f32 %v1278_v27, %v1286_v29  ;;  %v1296_v44 = vsub.f32 %v1280_v45, %v1288_v51  ;;  %v1290_v48 = vmul.f32 %v7323_v35, %v7323_v35  ;;  %v1299_v49 = vmax.f32 %v1291_v57, 0.0 }
 0x1f7   : > { %1333 = vrot.lane.b32.xlu1 %v7009_v5, %s6893_s16  ;;  %1331 = vrot.lane.b32.xlu0 %v7004_v4, %s6893_s16  ;;  %v1284_v20 = vmul.f32 %v1260_v39, %v1260_v39  ;;  %v1277_v21 = vmul.f32 0.03125, %v1269_v31 }
 0x1f8   : > { %v1302_v53 = vmax.f32 %v1294_v33, 0.0  ;;  %v1304_v54 = vmax.f32 %v1296_v44, 0.0  ;;  %v1298_v55 = vsub.f32 %v1282_v47, %v1290_v48  ;;  %v1271_v47 = vld [vmem:[#allocation3 + $0x20] sm:$0xff] }
 0x1f9   : > { %v1292_v32 = vsub.f32 %v1276_v60, %v1284_v20 }
 0x1fa   : > { %v1310_v42 = vadd.f32 1e-05, %v1302_v53 }
 0x1fb   : > { %1337 = vrot.lane.b32.xlu1 %v7019_v7, %s6893_s16  ;;  %1335 = vrot.lane.b32.xlu0 %v7014_v6, %s6893_s16 }
 0x1fc   : > { %6542 = vrsqrt.f32 %v1310_v42 }
 0x1ff   : > { %1028 = vperm.xlu0 %6504, %v964_v34   ;;  %978 = vperm.xlu1 %6502, %v964_v34  }
 0x203   : > { %1036 = vperm.xlu0 %6504, %v966_v62   ;;  %6503 = vset.pattern.permute.xlu1 %v6894_v56 }
 0x204   : > { %1024 = vperm.xlu1 %6503, %v963_v18  }
 0x206   : > { %v6543_v23 = vpop.eup %6542 }
 0x207   : > { %1048 = vperm.xlu0 %6504, %v7272_v63  }
 0x208   : > { %6505 = vset.pattern.permute.xlu1 %v6896_v58 }
 0x209   : > { %1076 = vperm.xlu1 %6505, %v963_v18  }
 0x20b   : > { %6516 = vset.pattern.permute.xlu0 %v6897_v46 }
 0x20c   : > { %1136 = vperm.xlu0 %6516, %v965_v19  }
 0x20d   : > { %1080 = vperm.xlu1 %6505, %v964_v34  }
 0x210   : > { %1148 = vperm.xlu0 %6516, %v968_v59  }
 0x211   : > { %6506 = vset.pattern.permute.xlu1 %v6895_v61 }
 0x212   : > { %988 = vperm.xlu1 %6506, %v966_v62  }
 0x214   : > { %1152 = vperm.xlu0 %6516, %v7272_v63  }
 0x216   : > { %6507 = vset.pattern.permute.xlu1 %v6894_v56 }
 0x217   : > { %1032 = vperm.xlu1 %6507, %v965_v19  }
 0x218   : > { %6521 = vset.pattern.permute.xlu0 %v6896_v58 }
 0x219   : > { %1084 = vperm.xlu0 %6521, %v965_v19  }
 0x21b   : > { %6508 = vset.pattern.permute.xlu1 %v6897_v46 }
 0x21c   : > { %1128 = vperm.xlu1 %6508, %v963_v18  }
 0x21d   : > { %1104 = vperm.xlu0 %6521, %v7290_v22  }
 0x220   : > { %1132 = vperm.xlu1 %6508, %v964_v34   ;;  %v1300_v34 = vmax.f32 %v1292_v32, 0.0  ;;  %v1279_v32 = vmul.f32 0.03125, %v1271_v47 }
 0x221   : > { %1452 = vperm.xlu0 %6521, %v6984_v0  }
 0x224   : > { %6509 = vset.pattern.permute.xlu1 %v6896_v58 }
 0x225   : > { %1460 = vperm.xlu0 %6521, %v6994_v2   ;;  %1088 = vperm.xlu1 %6509, %v966_v62  }
 0x229   : > { %1468 = vperm.xlu0 %6521, %v7004_v4   ;;  %6510 = vset.pattern.permute.xlu1 %v6895_v61 }
 0x22a   : > { %993 = vperm.xlu1 %6510, %v967_v43  }
 0x22d   : > { %6528 = vset.pattern.permute.xlu0 %v6895_v61 }
 0x22e   : > { %973 = vperm.xlu0 %6528, %v963_v18   ;;  %6511 = vset.pattern.permute.xlu1 %v6894_v56  ;;  %v1306_v18 = vmax.f32 %v1298_v55, 0.0  ;;  %v1011_v55 = vlaneseq }
 0x22f   : > { %1040 = vperm.xlu1 %6511, %v967_v43  }
 0x232   : > { %983 = vperm.xlu0 %6528, %v965_v19   ;;  %v1308_v19 = vadd.f32 1e-05, %v1300_v34 }
 0x233   : > { %1044 = vperm.xlu1 %6511, %v968_v59  }
 0x236   : > { %998 = vperm.xlu0 %6528, %v968_v59  }
 0x237   : > { %6512 = vset.pattern.permute.xlu1 %v6897_v46 }
 0x238   : > { %1140 = vperm.xlu1 %6512, %v966_v62   ;;  %v1312_v62 = vadd.f32 1e-05, %v1304_v54  ;;  %v1287_v54 = vmul.f32 %v1263_v30, %v1263_v30 }
 0x23a   : > { %1186 = vperm.xlu0 %6528, %v6989_v1  }
 0x23c   : > { %6513 = vset.pattern.permute.xlu1 %v6895_v61 }
 0x23d   : > { %1181 = vperm.xlu1 %6513, %v6984_v0  }
 0x23e   : > { %1003 = vperm.xlu0 %6528, %v7272_v63  }
 0x241   : > { %6514 = vset.pattern.permute.xlu1 %v6896_v58 }
 0x242   : > { %1357 = vperm.xlu0 %6528, %v1259_v24   ;;  %1092 = vperm.xlu1 %6514, %v967_v43   ;;  %v1253_v24 = vld [vmem:[#allocation2 + $0x10] sm:$0xff] }
 0x243   : > { %v1261_v26 = vmul.f32 0.03125, %v1253_v24 }
 0x245   : > { %v1285_v37 = vmul.f32 %v1261_v26, %v1261_v26 }
 0x246   : > { %1096 = vperm.xlu1 %6514, %v968_v59   ;;  %1206 = vperm.xlu0 %6528, %v7009_v5  }
 0x247   : > { %v1293_v36 = vsub.f32 %v1277_v21, %v1285_v37 }
 0x249   : > { %v1301_v42 = vmax.f32 %v1293_v36, 0.0 }
 0x24a   : > { %6515 = vset.pattern.permute.xlu1 %v6895_v61 }
 0x24b   : > { %1008 = vperm.xlu1 %6515, %v7290_v22   ;;  %v1309_v44 = vadd.f32 1e-05, %v1301_v42 }
 0x24f   : > { %6517 = vset.pattern.permute.xlu1 %v6894_v56  ;;  %v1307_v56 = vadd.f32 1e-05, %v1299_v49 }
 0x250   : > { %1052 = vperm.xlu1 %6517, %v7290_v22  }
 0x251   : > { %6544 = vrsqrt.f32 %v1307_v56 }
 0x252   : > { %6546 = vrsqrt.f32 %v1312_v62  ;;  %v1295_v62 = vsub.f32 %v1279_v32, %v1287_v54 }
 0x253   : > { %6548 = vrsqrt.f32 %v1308_v19  ;;  %v1012_v19 = vshrl.u32 %v1011_v55, 7 }
 0x254   : > { %6518 = vset.pattern.permute.xlu1 %v6897_v46 }
 0x255   : > { %1144 = vperm.xlu1 %6518, %v967_v43   ;;  %v1314_v43 = vadd.f32 1e-05, %v1306_v18  ;;  %v1057_v28 = vsub.s32 1, %v1012_v19  ;;  %v1109_v36 = vsub.s32 2, %v1012_v19  ;;  %v1161_v55 = vsub.s32 3, %v1012_v19 }
 0x257   : > { %6550 = vrsqrt.f32 %v1314_v43  ;;  %v7383_v54 = vrot.slane %v7069_v17, %v1109_v36 }
 0x258   : > { %6552 = vrsqrt.f32 %v1309_v44 }
 0x259   : > { %6519 = vset.pattern.permute.xlu1 %v6895_v61 }
 0x25a   : > { %1191 = vperm.xlu1 %6519, %v6994_v2  }
 0x25b   : > { %v6545_v52 = vpop.eup %6544 }
 0x25c   : > { %v6547_v50 = vpop.eup %6546 }
 0x25d   : > { %v6549_v53 = vpop.eup %6548 }
 0x25e   : > { %1196 = vperm.xlu1 %6519, %v6999_v3  }
 0x261   : > { %v7331_v59 = vpop.permute.xlu1 %1327  ;;  %v1324_v29 = vpop.permute.xlu0 %1323 }
 0x262   : > { %1362 = vperm.xlu1 %6519, %v1260_v39   ;;  %v1347_v38 = vmul.f32 %v6545_v52, %v1324_v29  ;;  %v6551_v51 = vpop.eup %6550  ;;  %v7364_v52 = vrot.slane %v7069_v17, %v1057_v28 }
 0x263   : > { %v6553_v18 = vpop.eup %6552 }
 0x265   : > { %v1330_v25 = vpop.permute.xlu1 %1329  ;;  %v1326_v39 = vpop.permute.xlu0 %1325 }
 0x266   : > { %v1350_v27 = vmul.f32 %v6543_v23, %v1330_v25  ;;  %6520 = vset.pattern.permute.xlu1 %v6896_v58  ;;  %v1348_v57 = vmul.f32 %v6549_v53, %v1326_v39  ;;  %v1303_v23 = vmax.f32 %v1295_v62, 0.0  ;;  %v1257_v25 = vld [vmem:[#allocation2 + $0x30] sm:$0xff] }
 0x267   : > { %1100 = vperm.xlu1 %6520, %v7272_v63   ;;  %v1265_v31 = vmul.f32 0.03125, %v1257_v25 }
 0x268   : > { %1420 = vperm.xlu0 %6528, %v1350_v27   ;;  %v1311_v29 = vadd.f32 1e-05, %v1303_v23 }
 0x269   : > { %v1334_v33 = vpop.permute.xlu1 %1333  ;;  %v7338_v20 = vpop.permute.xlu0 %1331  ;;  %v1289_v39 = vmul.f32 %v1265_v31, %v1265_v31 }
 0x26a   : > { %v1352_v45 = vmul.f32 %v6547_v50, %v1334_v33  ;;  %v1273_v33 = vld [vmem:[#allocation3 + $0x30] sm:$0xff]  ;;  %6554 = vrsqrt.f32 %v1311_v29 }
 0x26b   : > { %6522 = vset.pattern.permute.xlu1 %v6897_v46  ;;  %v1281_v37 = vmul.f32 0.03125, %v1273_v33 }
 0x26c   : > { %1377 = vperm.xlu0 %6528, %v1263_v30   ;;  %1156 = vperm.xlu1 %6522, %v7290_v22  }
 0x26d   : > { %v1338_v63 = vpop.permute.xlu1 %1337  ;;  %v7340_v22 = vpop.permute.xlu0 %1335 }
 0x26e   : > { %v1354_v60 = vmul.f32 %v6551_v51, %v1338_v63  ;;  %v1297_v63 = vsub.f32 %v1281_v37, %v1289_v39 }
 0x270   : > { %1430 = vperm.xlu0 %6528, %v1352_v45   ;;  %6523 = vset.pattern.permute.xlu1 %v6895_v61  ;;  %v1305_v42 = vmax.f32 %v1297_v63, 0.0 }
 0x271   : > { %1405 = vperm.xlu1 %6523, %v1347_v38  }
 0x272   : > { %v1313_v23 = vadd.f32 1e-05, %v1305_v42 }
 0x274   : > { %1440 = vperm.xlu0 %6528, %v1354_v60   ;;  %v6555_v44 = vpop.eup %6554  ;;  %6556 = vrsqrt.f32 %v1313_v23 }
 0x275   : > { %1410 = vperm.xlu1 %6523, %v1348_v57  }
 0x278   : > { %6532 = vset.pattern.permute.xlu0 %v6897_v46 }
 0x279   : > { %1201 = vperm.xlu1 %6523, %v7004_v4   ;;  %1536 = vperm.xlu0 %6532, %v7014_v6  }
 0x27d   : > { %1367 = vperm.xlu1 %6523, %v1261_v26   ;;  %1550 = vperm.xlu0 %6532, %v7029_v9   ;;  %v1013_v26 = vsub.s32 0, %v1012_v19 }
 0x27e   : > { %v1029_v48 = vpop.permute.xlu0 %1028  ;;  %v979_v49 = vpop.permute.xlu1 %978 }
 0x27f   : > { %v7370_v50 = vrot.slane %v7069_v17, %v1013_v26  ;;  %v1060_v47 = vmul.f32 %v7364_v52, %v1029_v48  ;;  %v7392_v48 = vrot.slane %v7069_v17, %v1161_v55  ;;  %v6557_v39 = vpop.eup %6556 }
 0x281   : > { %1372 = vperm.xlu1 %6523, %v7310_v41   ;;  %1560 = vperm.xlu0 %6532, %v7039_v11   ;;  %v1349_v41 = vmul.f32 %v6553_v18, %v7331_v59  ;;  %v1016_v32 = vmul.f32 %v7370_v50, %v979_v49 }
 0x282   : > { %v1037_v56 = vpop.permute.xlu0 %1036 }
 0x283   : > { %v7348_v34 = vpop.permute.xlu1 %1024  ;;  %v1062_v21 = vmul.f32 %v7364_v52, %v1037_v56 }
 0x285   : > { %6524 = vset.pattern.permute.xlu1 %v6896_v58  ;;  %1570 = vperm.xlu0 %6532, %v7049_v13  }
 0x286   : > { %1456 = vperm.xlu1 %6524, %v6989_v1   ;;  %v7353_v43 = vpop.permute.xlu0 %1048 }
 0x288   : > { %v7355_v24 = vpop.permute.xlu1 %1076 }
 0x289   : > { %1580 = vperm.xlu0 %6532, %v7059_v15  }
 0x28a   : > { %6525 = vset.pattern.permute.xlu1 %v6895_v61 }
 0x28b   : > { %1415 = vperm.xlu1 %6525, %v1349_v41   ;;  %v7360_v27 = vpop.permute.xlu0 %1136  ;;  %v1068_v41 = vadd.f32 %v1060_v47, %v1016_v32 }
 0x28c   : > { %v1081_v30 = vpop.permute.xlu1 %1080 }
 0x28d   : > { %1516 = vperm.xlu0 %6532, %v6989_v1   ;;  %v1112_v62 = vmul.f32 %v7383_v54, %v1081_v30 }
 0x28f   : > { %1211 = vperm.xlu1 %6525, %v7014_v6   ;;  %v7367_v59 = vpop.permute.xlu0 %1148  ;;  %v1120_v25 = vadd.f32 %v1112_v62, %v1068_v41  ;;  %v1165_v41 = vmul.f32 %v7392_v48, %v7360_v27 }
 0x291   : > { %v989_v38 = vpop.permute.xlu1 %988  ;;  %1524 = vperm.xlu0 %6532, %v6999_v3  }
 0x292   : > { %v1018_v53 = vmul.f32 %v7370_v50, %v989_v38 }
 0x293   : > { %1216 = vperm.xlu1 %6525, %v7019_v7   ;;  %v7376_v45 = vpop.permute.xlu0 %1152 }
 0x294   : > { %v1070_v51 = vadd.f32 %v1062_v21, %v1018_v53  ;;  %v1059_v53 = vmul.f32 %v7364_v52, %v7348_v34 }
 0x295   : > { %1532 = vperm.xlu0 %6532, %v7009_v5  }
 0x296   : > { %v1033_v57 = vpop.permute.xlu1 %1032 }
 0x297   : > { %1382 = vperm.xlu1 %6525, %v7317_v40   ;;  %v1351_v40 = vmul.f32 %v6555_v44, %v7338_v20  ;;  %v1061_v47 = vmul.f32 %v7364_v52, %v1033_v57 }
 0x298   : > { %v1085_v60 = vpop.permute.xlu0 %1084 }
 0x299   : > { %v1113_v34 = vmul.f32 %v7383_v54, %v1085_v60 }
 0x29b   : > { %6526 = vset.pattern.permute.xlu1 %v6896_v58  ;;  %v1129_v56 = vpop.permute.xlu1 %1128 }
 0x29c   : > { %1464 = vperm.xlu1 %6526, %v6999_v3   ;;  %v7388_v18 = vpop.permute.xlu0 %1104  ;;  %v1163_v62 = vmul.f32 %v7392_v48, %v1129_v56 }
 0x29f   : > { %v1133_v49 = vpop.permute.xlu1 %1132 }
 0x2a0   : > { %v1164_v19 = vmul.f32 %v7392_v48, %v1133_v49  ;;  %6527 = vset.pattern.permute.xlu1 %v6895_v61  ;;  %v7396_v28 = vpop.permute.xlu0 %1452 }
 0x2a1   : > { %1425 = vperm.xlu1 %6527, %v1351_v40  }
 0x2a2   : > { %v7398_v29 = vadd.f32 %v1164_v19, %v1120_v25 }
 0x2a4   : > { %v1089_v26 = vpop.permute.xlu1 %1088  ;;  %v7400_v30 = vpop.permute.xlu0 %1460 }
 0x2a5   : > { %v1114_v20 = vmul.f32 %v7383_v54, %v1089_v26  ;;  %1387 = vperm.xlu1 %6527, %v1265_v31   ;;  %v1353_v31 = vmul.f32 %v6557_v39, %v7340_v22 }
 0x2a7   : > { %v1122_v33 = vadd.f32 %v1114_v20, %v1070_v51 }
 0x2a8   : > { %v7403_v21 = vpop.permute.xlu0 %1468 }
 0x2a9   : > { %1392 = vperm.xlu1 %6527, %v7323_v35   ;;  %v994_v37 = vpop.permute.xlu1 %993  ;;  %v1111_v35 = vmul.f32 %v7383_v54, %v7355_v24 }
 0x2aa   : > { %v1019_v51 = vmul.f32 %v7370_v50, %v994_v37 }
 0x2ad   : > { %v974_v38 = vpop.permute.xlu0 %973  ;;  %6529 = vset.pattern.permute.xlu1 %v6896_v58 }
 0x2ae   : > { %v1015_v63 = vmul.f32 %v7370_v50, %v974_v38  ;;  %1472 = vperm.xlu1 %6529, %v7009_v5   ;;  %v1041_v36 = vpop.permute.xlu1 %1040 }
 0x2af   : > { %v1063_v42 = vmul.f32 %v7364_v52, %v1041_v36 }
 0x2b0   : > { %v1067_v44 = vadd.f32 %v1059_v53, %v1015_v63 }
 0x2b1   : > { %v1071_v32 = vadd.f32 %v1063_v42, %v1019_v51  ;;  %v984_v55 = vpop.permute.xlu0 %983 }
 0x2b2   : > { %v1017_v40 = vmul.f32 %v7370_v50, %v984_v55  ;;  %6530 = vset.pattern.permute.xlu1 %v6895_v61  ;;  %v1045_v22 = vpop.permute.xlu1 %1044  ;;  %v1119_v23 = vadd.f32 %v1111_v35, %v1067_v44  ;;  %v1118_v35 = vmul.f32 %v7383_v54, %v7388_v18 }
 0x2b3   : > { %1435 = vperm.xlu1 %6530, %v1353_v31  }
 0x2b4   : > { %v1069_v24 = vadd.f32 %v1061_v47, %v1017_v40  ;;  %v7423_v49 = vadd.f32 %v1163_v62, %v1119_v23  ;;  %v6898_v23 = vmov 1.0|1.0  }
 0x2b5   : > { %v999_v26 = vpop.permute.xlu0 %998  ;;  %6402 = vmatprep.subr.bf16.mxu1 %v6898_v23 }
 0x2b6   : > { %v1121_v57 = vadd.f32 %v1113_v34, %v1069_v24  ;;  %v1020_v20 = vmul.f32 %v7370_v50, %v999_v26  ;;  %6404 = vmatpush3.bf16.msra.mxu1 %v6898_v23  ;;  %v1169_v26 = vmul.f32 %v7392_v48, %v7376_v45 }
 0x2b7   : > { %6531 = vset.pattern.permute.xlu1 %v6896_v58  ;;  %v1141_v25 = vpop.permute.xlu1 %1140  ;;  %v6534_v58 = vld [vmem:[%s9096_s2] sm:$0xff]   ;;  %6403 = vmatprep.subr.bf16.mxu1 %v6898_v23 }
 0x2b8   : > { %v1166_v60 = vmul.f32 %v7392_v48, %v1141_v25  ;;  %1476 = vperm.xlu1 %6531, %v7014_v6   ;;  %v7428_v56 = vadd.f32 %v1165_v41, %v1121_v57  ;;  %6131 = vmatprep.mubr.msk.bf16.mxu0 %vm1623_vm10, %v6534_v58  ;;  %v1065_v57 = vmul.f32 %v7364_v52, %v7353_v43 }
 0x2ba   : > { %v7430_v61 = vadd.f32 %v1166_v60, %v1122_v33  ;;  %v1064_v33 = vmul.f32 %v7364_v52, %v1045_v22  ;;  %v1187_v22 = vpop.permute.xlu0 %1186  ;;  %6405 = vmatpush3.bf16.msra.mxu1 %v6898_v23 }
 0x2bb   : > { %6378 = vmatprep.subr.bf16.mxu1 %v6898_v23 }
 0x2bc   : > { %1480 = vperm.xlu1 %6531, %v7019_v7   ;;  %v1182_v19 = vpop.permute.xlu1 %1181  ;;  %v1072_v53 = vadd.f32 %v1064_v33, %v1020_v20 }
 0x2be   : > { %v1004_v24 = vpop.permute.xlu0 %1003 }
 0x2bf   : > { %v1021_v25 = vmul.f32 %v7370_v50, %v1004_v24 }
 0x2c0   : > { %6533 = vset.pattern.permute.xlu1 %v6897_v46  ;;  %v1168_v46 = vmul.f32 %v7392_v48, %v7367_v59 }
 0x2c1   : > { %v1093_v27 = vpop.permute.xlu1 %1092  ;;  %1540 = vperm.xlu1 %6533, %v7019_v7  }
 0x2c2   : > { %v1115_v37 = vmul.f32 %v7383_v54, %v1093_v27  ;;  %v1073_v27 = vadd.f32 %v1065_v57, %v1021_v25 }
 0x2c4   : > { %v1123_v39 = vadd.f32 %v1115_v37, %v1071_v32 }
 0x2c5   : > { %v1097_v38 = vpop.permute.xlu1 %1096  ;;  %1545 = vperm.xlu1 %6533, %v7024_v8  }
 0x2c6   : > { %v1116_v63 = vmul.f32 %v7383_v54, %v1097_v38 }
 0x2c8   : > { %v1124_v36 = vadd.f32 %v1116_v63, %v1072_v53  ;;  %v1220_v53 = vadd.f32 %v1187_v22, %v7398_v29 }
 0x2c9   : > { %1555 = vperm.xlu1 %6533, %v7034_v10  }
 0x2ca   : > { %v1009_v31 = vpop.permute.xlu1 %1008  ;;  %v7447_v51 = vadd.f32 %v1168_v46, %v1124_v36  ;;  %v1236_v36 = vmul.f32 0.2, %v1220_v53  ;;  %vm1228_vm12 = vcmp.ge.f32.partialorder %v1220_v53, 0.0 }
 0x2cb   : > { %v1022_v44 = vmul.f32 %v7370_v50, %v1009_v31  ;;  %v1219_v50 = vadd.f32 %v1182_v19, %v7423_v49 }
 0x2cd   : > { %1565 = vperm.xlu1 %6533, %v7044_v12   ;;  %v1235_v63 = vmul.f32 0.2, %v1219_v50  ;;  %vm1227_vm11 = vcmp.ge.f32.partialorder %v1219_v50, 0.0 }
 0x2cf   : > { %v1053_v42 = vpop.permute.xlu1 %1052  ;;  %v1243_v31 = vsel %vm1227_vm11, %v1219_v50, %v1235_v63 }
 0x2d0   : > { %v1066_v47 = vmul.f32 %v7364_v52, %v1053_v42 }
 0x2d1   : > { %1575 = vperm.xlu1 %6533, %v7054_v14  }
 0x2d2   : > { %v1074_v59 = vadd.f32 %v1066_v47, %v1022_v44  ;;  %v1244_v44 = vsel %vm1228_vm12, %v1220_v53, %v1236_v36 }
 0x2d4   : > { %v1145_v32 = vpop.permute.xlu1 %1144  ;;  %v1126_v55 = vadd.f32 %v1118_v35, %v1074_v59 }
 0x2d5   : > { %v1167_v34 = vmul.f32 %v7392_v48, %v1145_v32  ;;  %1512 = vperm.xlu1 %6533, %v6984_v0  }
 0x2d7   : > { %v7457_v62 = vadd.f32 %v1167_v34, %v1123_v39 }
 0x2d9   : > { %v1192_v40 = vpop.permute.xlu1 %1191  ;;  %1520 = vperm.xlu1 %6533, %v6994_v2  }
 0x2da   : > { %v1221_v34 = vadd.f32 %v1192_v40, %v7428_v56 }
 0x2dc   : > { %v1237_v57 = vmul.f32 0.2, %v1221_v34  ;;  %vm1229_vm13 = vcmp.ge.f32.partialorder %v1221_v34, 0.0 }
 0x2dd   : > { %v1197_v18 = vpop.permute.xlu1 %1196  ;;  %1528 = vperm.xlu1 %6533, %v7004_v4  }
 0x2de   : > { %v1222_v22 = vadd.f32 %v1197_v18, %v7430_v61 }
 0x2e0   : > { %v1238_v25 = vmul.f32 0.2, %v1222_v22  ;;  %vm1230_vm14 = vcmp.ge.f32.partialorder %v1222_v22, 0.0 }
 0x2e1   : > { %v1363_v41 = vpop.permute.xlu1 %1362 }
 0x2e6   : > { %v1101_v60 = vpop.permute.xlu1 %1100 }
 0x2e7   : > { %v1117_v58 = vmul.f32 %v7383_v54, %v1101_v60  ;;  %v1358_v54 = vpop.permute.xlu0 %1357 }
 0x2e8   : > { %v1395_v42 = vsub.f32 %v1243_v31, %v1358_v54 }
 0x2e9   : > { %v1125_v20 = vadd.f32 %v1117_v58, %v1073_v27  ;;  %v1246_v27 = vsel %vm1230_vm14, %v1222_v22, %v1238_v25 }
 0x2eb   : > { %v1157_v37 = vpop.permute.xlu1 %1156  ;;  %v7472_v33 = vadd.f32 %v1169_v26, %v1125_v20  ;;  %v1207_v60 = vpop.permute.xlu0 %1206  ;;  %v1245_v26 = vsel %vm1229_vm13, %v1221_v34, %v1237_v57 }
 0x2ec   : > { %v1170_v39 = vmul.f32 %v7392_v48, %v1157_v37  ;;  %v1396_v48 = vsub.f32 %v1244_v44, %v1363_v41  ;;  %v1224_v50 = vadd.f32 %v1207_v60, %v7447_v51 }
 0x2ee   : > { %v7475_v38 = vadd.f32 %v1170_v39, %v1126_v55  ;;  %vm1232_vm0 = vcmp.ge.f32.partialorder %v1224_v50, 0.0 }
 0x2ef   : > { %v1421_v39 = vpop.permute.xlu0 %1420 }
 0x2f0   : > { %v1406_v43 = vpop.permute.xlu1 %1405 }
 0x2f1   : > { %v1443_v47 = vmul.f32 %v1406_v43, %v1395_v42 }
 0x2f3   : > { %v1483_v55 = vadd.f32 %v7396_v28, %v1443_v47  ;;  %v1378_v54 = vpop.permute.xlu0 %1377 }
 0x2f4   : > { %v1411_v52 = vpop.permute.xlu1 %1410 }
 0x2f5   : > { %v1444_v59 = vmul.f32 %v1411_v52, %v1396_v48 }
 0x2f7   : > { %v1431_v47 = vpop.permute.xlu0 %1430 }
 0x2f8   : > { %v1202_v46 = vpop.permute.xlu1 %1201 }
 0x2f9   : > { %v1223_v61 = vadd.f32 %v1202_v46, %v7457_v62 }
 0x2fb   : > { %v1239_v63 = vmul.f32 0.2, %v1223_v61  ;;  %vm1231_vm15 = vcmp.ge.f32.partialorder %v1223_v61, 0.0 }
 0x2fc   : > { %v1368_v45 = vpop.permute.xlu1 %1367 }
 0x2fd   : > { %v1397_v58 = vsub.f32 %v1245_v26, %v1368_v45  ;;  %v1240_v45 = vmul.f32 0.2, %v1224_v50  ;;  %v1247_v31 = vsel %vm1231_vm15, %v1223_v61, %v1239_v63 }
 0x2fe   : > { %v1399_v44 = vsub.f32 %v1247_v31, %v1378_v54 }
 0x2ff   : > { %v1248_v42 = vsel %vm1232_vm0, %v1224_v50, %v1240_v45 }
 0x300   : > { %v1373_v35 = vpop.permute.xlu1 %1372 }
 0x301   : > { %v1398_v28 = vsub.f32 %v1246_v27, %v1373_v35 }
 0x303   : > { %v1446_v43 = vmul.f32 %v1421_v39, %v1398_v28  ;;  %v6538_v39 = vld [vmem:[%s9096_s2 + $0x20] sm:$0xff]  }
 0x305   : > { %v1457_v32 = vpop.permute.xlu1 %1456 }
 0x306   : > { %v1484_v49 = vadd.f32 %v1457_v32, %v1444_v59 }
 0x308   : > { %v1507_v19 = vpack.c.bf16 %v1484_v49, %v1483_v55 }
 0x30a   : > { %6123 = vmatprep.subr.bf16.mxu0 %v1507_v19  ;;  %v1416_v29 = vpop.permute.xlu1 %1415 }
 0x30b   : > { %6124 = vmatpush3.bf16.msra.mxu0 %v1507_v19  ;;  %v1445_v37 = vmul.f32 %v1416_v29, %v1397_v58 }
 0x30d   : > { %v1485_v56 = vadd.f32 %v7400_v30, %v1445_v37  ;;  %v6537_v37 = vld [vmem:[%s9096_s2 + $0x18] sm:$0xff]  }
 0x30e   : > { %v1212_v24 = vpop.permute.xlu1 %1211 }
 0x30f   : > { %v1225_v55 = vadd.f32 %v1212_v24, %v7472_v33  ;;  %v6535_v24 = vld [vmem:[%s9096_s2 + $0x8] sm:$0xff]  }
 0x311   : > { %v1241_v34 = vmul.f32 0.2, %v1225_v55  ;;  %vm1233_vm2 = vcmp.ge.f32.partialorder %v1225_v55, 0.0 }
 0x312   : > { %v1217_v41 = vpop.permute.xlu1 %1216 }
 0x313   : > { %v1226_v46 = vadd.f32 %v1217_v41, %v7475_v38  ;;  %v1249_v25 = vsel %vm1233_vm2, %v1225_v55, %v1241_v34  ;;  %v1441_v38 = vpop.permute.xlu0 %1440 }
 0x315   : > { %v1242_v19 = vmul.f32 0.2, %v1226_v46  ;;  %vm1234_vm1 = vcmp.ge.f32.partialorder %v1226_v46, 0.0 }
 0x316   : > { %v1383_v20 = vpop.permute.xlu1 %1382 }
 0x317   : > { %v1400_v35 = vsub.f32 %v1248_v42, %v1383_v20  ;;  %v1250_v22 = vsel %vm1234_vm1, %v1226_v46, %v1242_v19  ;;  %v6536_v20 = vld [vmem:[%s9096_s2 + $0x10] sm:$0xff]  }
 0x319   : > { %v1448_v62 = vmul.f32 %v1431_v47, %v1400_v35 }
 0x31b   : > { %v1465_v52 = vpop.permute.xlu1 %1464 }
 0x31c   : > { %v1486_v40 = vadd.f32 %v1465_v52, %v1446_v43  ;;  %v6539_v43 = vld [vmem:[%s9096_s2 + $0x28] sm:$0xff]   ;;  %v6540_v52 = vld [vmem:[%s9096_s2 + $0x30] sm:$0xff]  }
 0x31e   : > { %v1508_v18 = vpack.c.bf16 %v1486_v40, %v1485_v56  ;;  %v6541_v56 = vld [vmem:[%s9096_s2 + $0x38] sm:$0xff]   ;;  %v6899_v40 = vmov 0.0  }
 0x31f   : > { %932 = vst.msk [vmem:[#allocation4 + $0x8] sm:$0xff] %vm930_vm3, %v6899_v40  ;;  %931 = vst.msk [vmem:[#allocation4] sm:$0xff] %vm930_vm3, %v6899_v40 }
 0x320   : > { %6125 = vmatprep.subr.bf16.mxu0 %v1508_v18  ;;  %v1426_v53 = vpop.permute.xlu1 %1425  ;;  %933 = vst.msk [vmem:[#allocation4 + $0x10] sm:$0xff] %vm930_vm3, %v6899_v40  ;;  %934 = vst.msk [vmem:[#allocation4 + $0x18] sm:$0xff] %vm930_vm3, %v6899_v40 }
 0x321   : > { %6126 = vmatpush3.bf16.msra.mxu0 %v1508_v18  ;;  %v1447_v48 = vmul.f32 %v1426_v53, %v1399_v44  ;;  %935 = vst.msk [vmem:[#allocation4 + $0x20] sm:$0xff] %vm930_vm3, %v6899_v40  ;;  %936 = vst.msk [vmem:[#allocation4 + $0x28] sm:$0xff] %vm930_vm3, %v6899_v40  ;;  %v1537_v18 = vpop.permute.xlu0 %1536 }
 0x322   : > { %937 = vst.msk [vmem:[#allocation4 + $0x30] sm:$0xff] %vm930_vm3, %v6899_v40  ;;  %938 = vst.msk [vmem:[#allocation4 + $0x38] sm:$0xff] %vm930_vm3, %v6899_v40 }
 0x323   : > { %v1487_v59 = vadd.f32 %v7403_v21, %v1447_v48  ;;  %939 = vst.msk [vmem:[#allocation4 + $0x40] sm:$0xff] %vm930_vm3, %v6899_v40  ;;  %940 = vst.msk [vmem:[#allocation4 + $0x48] sm:$0xff] %vm930_vm3, %v6899_v40 }
 0x324   : > { %v1388_v36 = vpop.permute.xlu1 %1387  ;;  %941 = vst.msk [vmem:[#allocation4 + $0x50] sm:$0xff] %vm930_vm3, %v6899_v40  ;;  %942 = vst.msk [vmem:[#allocation4 + $0x58] sm:$0xff] %vm930_vm3, %v6899_v40 }
 0x325   : > { %v1401_v26 = vsub.f32 %v1249_v25, %v1388_v36  ;;  %943 = vst.msk [vmem:[#allocation4 + $0x60] sm:$0xff] %vm930_vm3, %v6899_v40  ;;  %944 = vst.msk [vmem:[#allocation4 + $0x68] sm:$0xff] %vm930_vm3, %v6899_v40  ;;  %v1551_v53 = vpop.permute.xlu0 %1550 }
 0x326   : > { %945 = vst.msk [vmem:[#allocation4 + $0x70] sm:$0xff] %vm930_vm3, %v6899_v40  ;;  %946 = vst.msk [vmem:[#allocation4 + $0x78] sm:$0xff] %vm930_vm3, %v6899_v40 }
 0x327   : > { %947 = vst.msk [vmem:[#allocation5] sm:$0xff] %vm930_vm3, %v6899_v40  ;;  %948 = vst.msk [vmem:[#allocation5 + $0x8] sm:$0xff] %vm930_vm3, %v6899_v40 }
 0x328   : > { %v1393_v30 = vpop.permute.xlu1 %1392  ;;  %949 = vst.msk [vmem:[#allocation5 + $0x10] sm:$0xff] %vm930_vm3, %v6899_v40  ;;  %950 = vst.msk [vmem:[#allocation5 + $0x18] sm:$0xff] %vm930_vm3, %v6899_v40 }
 0x329   : > { %v1402_v57 = vsub.f32 %v1250_v22, %v1393_v30  ;;  %951 = vst.msk [vmem:[#allocation5 + $0x20] sm:$0xff] %vm930_vm3, %v6899_v40  ;;  %952 = vst.msk [vmem:[#allocation5 + $0x28] sm:$0xff] %vm930_vm3, %v6899_v40  ;;  %v1561_v45 = vpop.permute.xlu0 %1560 }
 0x32a   : > { %953 = vst.msk [vmem:[#allocation5 + $0x30] sm:$0xff] %vm930_vm3, %v6899_v40  ;;  %954 = vst.msk [vmem:[#allocation5 + $0x38] sm:$0xff] %vm930_vm3, %v6899_v40 }
 0x32b   : > { %v1450_v27 = vmul.f32 %v1441_v38, %v1402_v57  ;;  %955 = vst.msk [vmem:[#allocation5 + $0x40] sm:$0xff] %vm930_vm3, %v6899_v40  ;;  %956 = vst.msk [vmem:[#allocation5 + $0x48] sm:$0xff] %vm930_vm3, %v6899_v40 }
 0x32c   : > { %957 = vst.msk [vmem:[#allocation5 + $0x50] sm:$0xff] %vm930_vm3, %v6899_v40  ;;  %958 = vst.msk [vmem:[#allocation5 + $0x58] sm:$0xff] %vm930_vm3, %v6899_v40 }
 0x32d   : > { %v1473_v51 = vpop.permute.xlu1 %1472  ;;  %959 = vst.msk [vmem:[#allocation5 + $0x60] sm:$0xff] %vm930_vm3, %v6899_v40  ;;  %960 = vst.msk [vmem:[#allocation5 + $0x68] sm:$0xff] %vm930_vm3, %v6899_v40  ;;  %v1571_v54 = vpop.permute.xlu0 %1570 }
 0x32e   : > { %v1488_v32 = vadd.f32 %v1473_v51, %v1448_v62  ;;  %961 = vst.msk [vmem:[#allocation5 + $0x70] sm:$0xff] %vm930_vm3, %v6899_v40  ;;  %962 = vst.msk [vmem:[#allocation5 + $0x78] sm:$0xff] %vm930_vm3, %v6899_v40 }
 0x330   : > { %v1509_v49 = vpack.c.bf16 %v1488_v32, %v1487_v59 }
 0x331   : > { %v1581_v42 = vpop.permute.xlu0 %1580 }
 0x332   : > { %6127 = vmatprep.subr.bf16.mxu0 %v1509_v49  ;;  %v1436_v29 = vpop.permute.xlu1 %1435 }
 0x333   : > { %6128 = vmatpush3.bf16.msra.mxu0 %v1509_v49  ;;  %v1449_v41 = vmul.f32 %v1436_v29, %v1401_v26 }
 0x335   : > { %v1517_v44 = vpop.permute.xlu0 %1516 }
 0x337   : > { %v1477_v60 = vpop.permute.xlu1 %1476 }
 0x338   : > { %v1489_v58 = vadd.f32 %v1477_v60, %v1449_v41 }
 0x339   : > { %v1525_v55 = vpop.permute.xlu0 %1524 }
 0x33b   : > { %v1481_v21 = vpop.permute.xlu1 %1480 }
 0x33c   : > { %v1490_v28 = vadd.f32 %v1481_v21, %v1450_v27 }
 0x33d   : > { %v1533_v57 = vpop.permute.xlu0 %1532 }
 0x33e   : > { %v1510_v33 = vpack.c.bf16 %v1490_v28, %v1489_v58 }
 0x340   : > { %6129 = vmatprep.subr.bf16.mxu0 %v1510_v33  ;;  %v1541_v61 = vpop.permute.xlu1 %1540 }
 0x341   : > { %6130 = vmatpush3.bf16.msra.mxu0 %v1510_v33 }
 0x342   : > { %6374 = vmatprep.subr.bf16.mxu0 %v6898_v23 }
 0x344   : > { %6132 = vmatmul.mubr.msk.bf16.vlgmr.msra.gmra.mrb[0].mxu0 %vm1623_vm10, %v6535_v24  ;;  %v1546_v50 = vpop.permute.xlu1 %1545 }
 0x345   : > { %6135 = vmatprep.mubr.msk.bf16.mxu0 %vm1623_vm10, %v6536_v20  ;;  %6375 = vmatpush3.bf16.msra.mxu0 %v6898_v23 }
 0x346   : > { %6376 = vmatprep.subr.bf16.mxu0 %v6898_v23 }
 0x348   : > { %v1556_v63 = vpop.permute.xlu1 %1555 }
 0x349   : > { %6377 = vmatpush3.bf16.msra.mxu0 %v6898_v23 }
 0x34c   : > { %6136 = vmatmul.mubr.msk.bf16.gmra.mrb[4].mxu0 %vm1623_vm10, %v6537_v37  ;;  %v1566_v36 = vpop.permute.xlu1 %1565 }
 0x34d   : > { %6139 = vmatprep.mubr.msk.bf16.mxu0 %vm1623_vm10, %v6538_v39 }
 0x350   : > { %v1576_v31 = vpop.permute.xlu1 %1575 }
 0x354   : > { %6140 = vmatmul.mubr.msk.bf16.gmra.mrb[8].mxu0 %vm1623_vm10, %v6539_v43  ;;  %v1513_v35 = vpop.permute.xlu1 %1512 }
 0x355   : > { %6143 = vmatprep.mubr.msk.bf16.mxu0 %vm1623_vm10, %v6540_v52 }
 0x358   : > { %v1521_v47 = vpop.permute.xlu1 %1520 }
 0x35c   : > { %6144 = vmatmul.mubr.msk.bf16.gmra.mrb[12].mxu0 %vm1623_vm10, %v6541_v56  ;;  %v1529_v49 = vpop.permute.xlu1 %1528 }
 0x417   : > { %v6133_v30 = vpop.f32.mrb[0].mxu0 }
 0x418   : > { %v1682_v48 = vpop.f32.mrb[1].mxu0  ;;  %v1691_v32 = vadd.f32 %v6133_v30, %v1521_v47 }
 0x419   : > { %v1683_v62 = vadd.f32 %v1682_v48, %v1513_v35  ;;  %v6134_v46 = vpop.f32.mrb[2].mxu0 }
 0x41a   : > { %v1685_v51 = vpop.f32.mrb[3].mxu0  ;;  %v1694_v19 = vadd.f32 %v6134_v46, %v1525_v55 }
 0x41b   : > { %v1686_v59 = vadd.f32 %v1685_v51, %v1517_v44  ;;  %6155 = vmatprep.mubr.msk.f32.mxu0 %vm1761_vm4, %v1683_v62 }
 0x41d   : > { %6156 = vmatmul.mubr.msk.f32.vlgmr.msra.gmra.mrb[16].mxu0 %vm1761_vm4, %v1686_v59 }
 0x41e   : > { %6158 = vmatprep.mubr.msk.f32.mxu0 %vm1761_vm4, %v1691_v32 }
 0x41f   : > { %v6137_v29 = vpop.f32.mrb[4].mxu0 }
 0x420   : > { %v1707_v34 = vadd.f32 %v6137_v29, %v1537_v18  ;;  %v1698_v22 = vpop.f32.mrb[5].mxu0 }
 0x421   : > { %v1699_v25 = vadd.f32 %v1698_v22, %v1529_v49  ;;  %v6138_v60 = vpop.f32.mrb[6].mxu0  ;;  %6159 = vmatmul.mubr.msk.f32.gmra.mrb[18].mxu0 %vm1761_vm4, %v1694_v19  ;;  %v1747_v22 = vld [vmem:[#allocation4 + $0x10] sm:$0xff] }
 0x422   : > { %v1710_v26 = vadd.f32 %v6138_v60, %v1541_v61  ;;  %v1701_v38 = vpop.f32.mrb[7].mxu0  ;;  %6164 = vmatprep.mubr.msk.f32.mxu1 %vm1761_vm4, %v1707_v34 }
 0x423   : > { %v1702_v41 = vadd.f32 %v1701_v38, %v1533_v57  ;;  %6161 = vmatprep.mubr.msk.f32.mxu0 %vm1761_vm4, %v1699_v25 }
 0x424   : > { %6165 = vmatmul.mubr.msk.f32.vlgmr.msra.gmra.mrb[0].mxu1 %vm1761_vm4, %v1710_v26 }
 0x425   : > { %6162 = vmatmul.mubr.msk.f32.gmra.mrb[20].mxu0 %vm1761_vm4, %v1702_v41  ;;  %6379 = vmatpush3.bf16.msra.mxu1 %v6898_v23 }
 0x426   : > { %6380 = vmatprep.subr.bf16.mxu1 %v6898_v23 }
 0x427   : > { %v6141_v27 = vpop.f32.mrb[8].mxu0 }
 0x428   : > { %v1714_v21 = vpop.f32.mrb[9].mxu0  ;;  %v1723_v20 = vadd.f32 %v6141_v27, %v1556_v63  ;;  %v2006_v63 = vmul.f32 %v1691_v32, %v1691_v32  ;;  %v1745_v32 = vld [vmem:[#allocation4] sm:$0xff]  ;;  %v1751_v27 = vld [vmem:[#allocation4 + $0x30] sm:$0xff] }
 0x429   : > { %v1715_v58 = vadd.f32 %v1714_v21, %v1546_v50  ;;  %v6142_v28 = vpop.f32.mrb[10].mxu0  ;;  %6381 = vmatpush3.bf16.msra.mxu1 %v6898_v23  ;;  %v2004_v50 = vmul.f32 %v1683_v62, %v1683_v62 }
 0x42a   : > { %v1717_v33 = vpop.f32.mrb[11].mxu0  ;;  %v1726_v37 = vadd.f32 %v6142_v28, %v1561_v45  ;;  %v2007_v45 = vmul.f32 %v1694_v19, %v1694_v19  ;;  %v2014_v30 = vmul.f32 %v1723_v20, %v1723_v20 }
 0x42b   : > { %v1718_v24 = vadd.f32 %v1717_v33, %v1551_v53  ;;  %6167 = vmatprep.mubr.msk.f32.mxu1 %vm1761_vm4, %v1715_v58  ;;  %v2005_v53 = vmul.f32 %v1686_v59, %v1686_v59  ;;  %v2012_v35 = vmul.f32 %v1715_v58, %v1715_v58  ;;  %v1746_v59 = vld [vmem:[#allocation4 + $0x8] sm:$0xff]  ;;  %v1749_v58 = vld [vmem:[#allocation4 + $0x20] sm:$0xff] }
 0x42c   : > { %v2015_v48 = vmul.f32 %v1726_v37, %v1726_v37 }
 0x42d   : > { %6168 = vmatmul.mubr.msk.f32.gmra.mrb[2].mxu1 %vm1761_vm4, %v1718_v24  ;;  %v2013_v44 = vmul.f32 %v1718_v24, %v1718_v24 }
 0x42e   : > { %6170 = vmatprep.mubr.msk.f32.mxu1 %vm1761_vm4, %v1723_v20 }
 0x42f   : > { %v6145_v39 = vpop.f32.mrb[12].mxu0 }
 0x430   : > { %v1730_v43 = vpop.f32.mrb[13].mxu0  ;;  %v1739_v23 = vadd.f32 %v6145_v39, %v1576_v31  ;;  %v2010_v31 = vmul.f32 %v1707_v34, %v1707_v34  ;;  %v1748_v34 = vld [vmem:[#allocation4 + $0x18] sm:$0xff] }
 0x431   : > { %v1731_v52 = vadd.f32 %v1730_v43, %v1566_v36  ;;  %v6146_v56 = vpop.f32.mrb[14].mxu0  ;;  %6171 = vmatmul.mubr.msk.f32.gmra.mrb[4].mxu1 %vm1761_vm4, %v1726_v37  ;;  %v2008_v36 = vmul.f32 %v1699_v25, %v1699_v25 }
 0x432   : > { %v1733_v40 = vpop.f32.mrb[15].mxu0  ;;  %v1742_v18 = vadd.f32 %v6146_v56, %v1581_v42  ;;  %v2011_v42 = vmul.f32 %v1710_v26, %v1710_v26  ;;  %v2018_v46 = vmul.f32 %v1739_v23, %v1739_v23  ;;  %v1752_v26 = vld [vmem:[#allocation4 + $0x38] sm:$0xff]  ;;  %v1753_v56 = vld [vmem:[#allocation4 + $0x40] sm:$0xff] }
 0x433   : > { %v1734_v61 = vadd.f32 %v1733_v40, %v1571_v54  ;;  %6173 = vmatprep.mubr.msk.f32.mxu1 %vm1761_vm4, %v1731_v52  ;;  %v2009_v54 = vmul.f32 %v1702_v41, %v1702_v41  ;;  %v2016_v47 = vmul.f32 %v1731_v52, %v1731_v52  ;;  %v1750_v41 = vld [vmem:[#allocation4 + $0x28] sm:$0xff] }
 0x434   : > { %v2019_v51 = vmul.f32 %v1742_v18, %v1742_v18  ;;  %v1754_v52 = vld [vmem:[#allocation4 + $0x48] sm:$0xff] }
 0x435   : > { %6174 = vmatmul.mubr.msk.f32.gmra.mrb[6].mxu1 %vm1761_vm4, %v1734_v61  ;;  %v2017_v62 = vmul.f32 %v1734_v61, %v1734_v61 }
 0x436   : > { %6176 = vmatprep.mubr.msk.f32.mxu1 %vm1761_vm4, %v1739_v23 }
 0x439   : > { %6177 = vmatmul.mubr.msk.f32.gmra.mrb[8].mxu1 %vm1761_vm4, %v1742_v18 }
 0x43a   : > { %6187 = vmatprep.mubr.msk.f32.mxu1 %vm1761_vm4, %v2004_v50  ;;  %v1756_v50 = vld [vmem:[#allocation4 + $0x58] sm:$0xff] }
 0x43d   : > { %6188 = vmatmul.mubr.msk.f32.vlgmr.msra.gmra.mrb[10].mxu1 %vm1761_vm4, %v2005_v53  ;;  %v1755_v53 = vld [vmem:[#allocation4 + $0x50] sm:$0xff] }
 0x43e   : > { %6190 = vmatprep.mubr.msk.f32.mxu1 %vm1761_vm4, %v2006_v63 }
 0x441   : > { %6191 = vmatmul.mubr.msk.f32.gmra.mrb[12].mxu1 %vm1761_vm4, %v2007_v45 }
 0x442   : > { %6193 = vmatprep.mubr.msk.f32.mxu1 %vm1761_vm4, %v2008_v36 }
 0x445   : > { %6194 = vmatmul.mubr.msk.f32.gmra.mrb[14].mxu1 %vm1761_vm4, %v2009_v54 }
 0x446   : > { %6196 = vmatprep.mubr.msk.f32.mxu1 %vm1761_vm4, %v2010_v31  ;;  %v1758_v31 = vld [vmem:[#allocation4 + $0x68] sm:$0xff] }
 0x449   : > { %6197 = vmatmul.mubr.msk.f32.gmra.mrb[16].mxu1 %vm1761_vm4, %v2011_v42  ;;  %v1757_v42 = vld [vmem:[#allocation4 + $0x60] sm:$0xff] }
 0x44a   : > { %6199 = vmatprep.mubr.msk.f32.mxu1 %vm1761_vm4, %v2012_v35 }
 0x44d   : > { %6200 = vmatmul.mubr.msk.f32.gmra.mrb[18].mxu1 %vm1761_vm4, %v2013_v44 }
 0x44e   : > { %6202 = vmatprep.mubr.msk.f32.mxu1 %vm1761_vm4, %v2014_v30 }
 0x451   : > { %6203 = vmatmul.mubr.msk.f32.gmra.mrb[20].mxu1 %vm1761_vm4, %v2015_v48 }
 0x452   : > { %6205 = vmatprep.mubr.msk.f32.mxu1 %vm1761_vm4, %v2016_v47  ;;  %v1760_v47 = vld [vmem:[#allocation4 + $0x78] sm:$0xff] }
 0x455   : > { %6206 = vmatmul.mubr.msk.f32.gmra.mrb[22].mxu1 %vm1761_vm4, %v2017_v62  ;;  %v1759_v62 = vld [vmem:[#allocation4 + $0x70] sm:$0xff] }
 0x456   : > { %6208 = vmatprep.mubr.msk.f32.mxu1 %vm1761_vm4, %v2018_v46 }
 0x459   : > { %6209 = vmatmul.mubr.msk.f32.gmra.mrb[24].mxu1 %vm1761_vm4, %v2019_v51 }
 0x4f0   : > { %v6157_v55 = vpop.f32.mrb[16].mxu0 }
 0x4f1   : > { %v1956_v49 = vadd.f32 %v6157_v55, %v1746_v59  ;;  %v1876_v19 = vpop.f32.mrb[17].mxu0  ;;  %v1989_v55 = vld [vmem:[#allocation5 + $0x8] sm:$0xff] }
 0x4f2   : > { %v1955_v29 = vadd.f32 %v1876_v19, %v1745_v32 }
 0x4f3   : > { %1973 = vst.msk [vmem:[#allocation4 + $0x8] sm:$0xff] %vm930_vm3, %v1956_v49  ;;  %v1988_v49 = vld [vmem:[#allocation5] sm:$0xff] }
 0x4f4   : > { %1972 = vst.msk [vmem:[#allocation4] sm:$0xff] %vm930_vm3, %v1955_v29  ;;  %v6160_v57 = vpop.f32.mrb[18].mxu0 }
 0x4f5   : > { %v1958_v25 = vadd.f32 %v6160_v57, %v1748_v34  ;;  %v1886_v60 = vpop.f32.mrb[19].mxu0  ;;  %v1991_v57 = vld [vmem:[#allocation5 + $0x18] sm:$0xff] }
 0x4f6   : > { %v1957_v38 = vadd.f32 %v1886_v60, %v1747_v22 }
 0x4f7   : > { %1975 = vst.msk [vmem:[#allocation4 + $0x18] sm:$0xff] %vm930_vm3, %v1958_v25  ;;  %v6166_v21 = vpop.f32.mrb[0].mxu1  ;;  %v1990_v25 = vld [vmem:[#allocation5 + $0x10] sm:$0xff] }
 0x4f8   : > { %1974 = vst.msk [vmem:[#allocation4 + $0x10] sm:$0xff] %vm930_vm3, %v1957_v38  ;;  %v1962_v28 = vadd.f32 %v6166_v21, %v1752_v26  ;;  %v6163_v33 = vpop.f32.mrb[20].mxu0  ;;  %v1906_v24 = vpop.f32.mrb[1].mxu1  ;;  %v1992_v21 = vld [vmem:[#allocation5 + $0x20] sm:$0xff] }
 0x4f9   : > { %v1960_v20 = vadd.f32 %v6163_v33, %v1750_v41  ;;  %v1961_v37 = vadd.f32 %v1906_v24, %v1751_v27  ;;  %v1896_v39 = vpop.f32.mrb[21].mxu0  ;;  %v1993_v27 = vld [vmem:[#allocation5 + $0x28] sm:$0xff] }
 0x4fa   : > { %1979 = vst.msk [vmem:[#allocation4 + $0x38] sm:$0xff] %vm930_vm3, %v1962_v28  ;;  %v1959_v43 = vadd.f32 %v1896_v39, %v1749_v58 }
 0x4fb   : > { %1977 = vst.msk [vmem:[#allocation4 + $0x28] sm:$0xff] %vm930_vm3, %v1960_v20  ;;  %1978 = vst.msk [vmem:[#allocation4 + $0x30] sm:$0xff] %vm930_vm3, %v1961_v37  ;;  %v1995_v20 = vld [vmem:[#allocation5 + $0x38] sm:$0xff]  ;;  %v1994_v37 = vld [vmem:[#allocation5 + $0x30] sm:$0xff] }
 0x4fc   : > { %1976 = vst.msk [vmem:[#allocation4 + $0x20] sm:$0xff] %vm930_vm3, %v1959_v43 }
 0x500   : > { %v6169_v40 = vpop.f32.mrb[2].mxu1 }
 0x501   : > { %v1964_v61 = vadd.f32 %v6169_v40, %v1754_v52  ;;  %v1916_v23 = vpop.f32.mrb[3].mxu1  ;;  %v1997_v40 = vld [vmem:[#allocation5 + $0x48] sm:$0xff] }
 0x502   : > { %v1963_v18 = vadd.f32 %v1916_v23, %v1753_v56 }
 0x503   : > { %1981 = vst.msk [vmem:[#allocation4 + $0x48] sm:$0xff] %vm930_vm3, %v1964_v61  ;;  %v1996_v61 = vld [vmem:[#allocation5 + $0x40] sm:$0xff] }
 0x504   : > { %1980 = vst.msk [vmem:[#allocation4 + $0x40] sm:$0xff] %vm930_vm3, %v1963_v18  ;;  %v6172_v63 = vpop.f32.mrb[4].mxu1 }
 0x505   : > { %v1966_v45 = vadd.f32 %v6172_v63, %v1756_v50  ;;  %v1926_v36 = vpop.f32.mrb[5].mxu1  ;;  %v1999_v63 = vld [vmem:[#allocation5 + $0x58] sm:$0xff] }
 0x506   : > { %v1965_v54 = vadd.f32 %v1926_v36, %v1755_v53 }
 0x507   : > { %1983 = vst.msk [vmem:[#allocation4 + $0x58] sm:$0xff] %vm930_vm3, %v1966_v45  ;;  %v1998_v45 = vld [vmem:[#allocation5 + $0x50] sm:$0xff] }
 0x508   : > { %1982 = vst.msk [vmem:[#allocation4 + $0x50] sm:$0xff] %vm930_vm3, %v1965_v54  ;;  %v6175_v35 = vpop.f32.mrb[6].mxu1 }
 0x509   : > { %v1968_v44 = vadd.f32 %v6175_v35, %v1758_v31  ;;  %v1936_v30 = vpop.f32.mrb[7].mxu1  ;;  %v2001_v35 = vld [vmem:[#allocation5 + $0x68] sm:$0xff] }
 0x50a   : > { %v1967_v48 = vadd.f32 %v1936_v30, %v1757_v42 }
 0x50b   : > { %1985 = vst.msk [vmem:[#allocation4 + $0x68] sm:$0xff] %vm930_vm3, %v1968_v44  ;;  %v2000_v44 = vld [vmem:[#allocation5 + $0x60] sm:$0xff] }
 0x50c   : > { %1984 = vst.msk [vmem:[#allocation4 + $0x60] sm:$0xff] %vm930_vm3, %v1967_v48  ;;  %v6178_v46 = vpop.f32.mrb[8].mxu1 }
 0x50d   : > { %v1970_v51 = vadd.f32 %v6178_v46, %v1760_v47  ;;  %v1946_v59 = vpop.f32.mrb[9].mxu1  ;;  %v2003_v46 = vld [vmem:[#allocation5 + $0x78] sm:$0xff] }
 0x50e   : > { %v1969_v32 = vadd.f32 %v1946_v59, %v1759_v62 }
 0x50f   : > { %1987 = vst.msk [vmem:[#allocation4 + $0x78] sm:$0xff] %vm930_vm3, %v1970_v51  ;;  %v2002_v51 = vld [vmem:[#allocation5 + $0x70] sm:$0xff] }
 0x510   : > { %1986 = vst.msk [vmem:[#allocation4 + $0x70] sm:$0xff] %vm930_vm3, %v1969_v32  ;;  %v6189_v19 = vpop.f32.mrb[10].mxu1 }
 0x511   : > { %v2214_v29 = vadd.f32 %v6189_v19, %v1989_v55  ;;  %v2134_v34 = vpop.f32.mrb[11].mxu1 }
 0x512   : > { %v2213_v22 = vadd.f32 %v2134_v34, %v1988_v49 }
 0x513   : > { %2230 = vst.msk [vmem:[#allocation5 + $0x8] sm:$0xff] %vm930_vm3, %v2214_v29 }
 0x514   : > { %2229 = vst.msk [vmem:[#allocation5] sm:$0xff] %vm930_vm3, %v2213_v22  ;;  %v6192_v60 = vpop.f32.mrb[12].mxu1 }
 0x515   : > { %v2216_v26 = vadd.f32 %v6192_v60, %v1991_v57  ;;  %v2144_v38 = vpop.f32.mrb[13].mxu1 }
 0x516   : > { %v2215_v41 = vadd.f32 %v2144_v38, %v1990_v25 }
 0x517   : > { %2232 = vst.msk [vmem:[#allocation5 + $0x18] sm:$0xff] %vm930_vm3, %v2216_v26 }
 0x518   : > { %2231 = vst.msk [vmem:[#allocation5 + $0x10] sm:$0xff] %vm930_vm3, %v2215_v41  ;;  %v6195_v58 = vpop.f32.mrb[14].mxu1 }
 0x519   : > { %v2218_v28 = vadd.f32 %v6195_v58, %v1993_v27  ;;  %v2154_v33 = vpop.f32.mrb[15].mxu1 }
 0x51a   : > { %v2217_v24 = vadd.f32 %v2154_v33, %v1992_v21 }
 0x51b   : > { %2234 = vst.msk [vmem:[#allocation5 + $0x28] sm:$0xff] %vm930_vm3, %v2218_v28 }
 0x51c   : > { %2233 = vst.msk [vmem:[#allocation5 + $0x20] sm:$0xff] %vm930_vm3, %v2217_v24  ;;  %v6198_v39 = vpop.f32.mrb[16].mxu1 }
 0x51d   : > { %v2220_v43 = vadd.f32 %v6198_v39, %v1995_v20  ;;  %v2164_v52 = vpop.f32.mrb[17].mxu1 }
 0x51e   : > { %v2219_v56 = vadd.f32 %v2164_v52, %v1994_v37 }
 0x51f   : > { %2236 = vst.msk [vmem:[#allocation5 + $0x38] sm:$0xff] %vm930_vm3, %v2220_v43 }
 0x520   : > { %2235 = vst.msk [vmem:[#allocation5 + $0x30] sm:$0xff] %vm930_vm3, %v2219_v56  ;;  %v6201_v23 = vpop.f32.mrb[18].mxu1 }
 0x521   : > { %v2222_v18 = vadd.f32 %v6201_v23, %v1997_v40  ;;  %v2174_v50 = vpop.f32.mrb[19].mxu1 }
 0x522   : > { %v2221_v53 = vadd.f32 %v2174_v50, %v1996_v61 }
 0x523   : > { %2238 = vst.msk [vmem:[#allocation5 + $0x48] sm:$0xff] %vm930_vm3, %v2222_v18 }
 0x524   : > { %2237 = vst.msk [vmem:[#allocation5 + $0x40] sm:$0xff] %vm930_vm3, %v2221_v53  ;;  %v6204_v36 = vpop.f32.mrb[20].mxu1 }
 0x525   : > { %v2224_v54 = vadd.f32 %v6204_v36, %v1999_v63  ;;  %v2184_v31 = vpop.f32.mrb[21].mxu1 }
 0x526   : > { %v2223_v42 = vadd.f32 %v2184_v31, %v1998_v45 }
 0x527   : > { %2240 = vst.msk [vmem:[#allocation5 + $0x58] sm:$0xff] %vm930_vm3, %v2224_v54 }
 0x528   : > { %2239 = vst.msk [vmem:[#allocation5 + $0x50] sm:$0xff] %vm930_vm3, %v2223_v42  ;;  %v6207_v30 = vpop.f32.mrb[22].mxu1 }
 0x529   : > { %v2226_v48 = vadd.f32 %v6207_v30, %v2001_v35  ;;  %v2194_v47 = vpop.f32.mrb[23].mxu1 }
 0x52a   : > { %v2225_v62 = vadd.f32 %v2194_v47, %v2000_v44 }
 0x52b   : > { %2242 = vst.msk [vmem:[#allocation5 + $0x68] sm:$0xff] %vm930_vm3, %v2226_v48 }
 0x52c   : > { %2241 = vst.msk [vmem:[#allocation5 + $0x60] sm:$0xff] %vm930_vm3, %v2225_v62  ;;  %v6210_v59 = vpop.f32.mrb[24].mxu1 }
 0x52d   : > { %v2228_v32 = vadd.f32 %v6210_v59, %v2003_v46  ;;  %v2204_v55 = vpop.f32.mrb[25].mxu1 }
 0x52e   : > { %v2227_v49 = vadd.f32 %v2204_v55, %v2002_v51 }
 0x52f   : > { %2244 = vst.msk [vmem:[#allocation5 + $0x78] sm:$0xff] %vm930_vm3, %v2228_v32 }
 0x530   : > { %2243 = vst.msk [vmem:[#allocation5 + $0x70] sm:$0xff] %vm930_vm3, %v2227_v49 }
 0x531 PF: > { %p5862_p6 = scmp.ne.s32.totalorder %s6877_s21, 2 }
 0x533   : > { %2248 = sbr.rel (%p5862_p6) target bundleno = 2424 (0x978), region = 64 }
 0x53a   : > { %s6900_s11 = smov 127   ;;  %v6901_v19 = vmov 1   ;;  %v9103_v29 = vmov 0   ;;  %v2270_v34 = vld [vmem:[%s9095_s1 + $0x8] sm:$0xff]  ;;  %v2272_v22 = vld [vmem:[%s9095_s1 + $0x18] sm:$0xff]  ;;  %v2269_v57 = vld [vmem:[%s9095_s1] sm:$0xff] }
 0x53b   : > { %2633 = vrot.lane.b32.xlu1 %v6994_v2, %s6900_s11  ;;  %2629 = vrot.lane.b32.xlu0 %v6984_v0, %s6900_s11  ;;  %v7643_v25 = vld [vmem:[%s9095_s1 + $0x30] sm:$0xff]  ;;  %v6903_v60 = vmov 2   ;;  %v9101_v38 = vmov 3   ;;  %v2274_v41 = vld [vmem:[%s9095_s1 + $0x28] sm:$0xff]  ;;  %v2557_v58 = vld [vmem:[#allocation2] sm:$0xff]  ;;  %s6905_s9 = smov 124  }
 0x53c   : > { %6560 = vset.pattern.permute.xlu0 %v6901_v19  ;;  %6558 = vset.pattern.permute.xlu1 %v9103_v29  ;;  %v2271_v26 = vld [vmem:[%s9095_s1 + $0x10] sm:$0xff]  ;;  %v7661_v27 = vld [vmem:[%s9095_s1 + $0x38] sm:$0xff]  ;;  %v2273_v21 = vld [vmem:[%s9095_s1 + $0x20] sm:$0xff]  ;;  %v2565_v28 = vmul.f32 0.03125, %v2557_v58  ;;  %vm2929_vm5 = vcmask 523264   ;;  %vm2252_vm14 = vcmask 7168  }
 0x53d   : > { %v2560_v33 = vld [vmem:[#allocation2 + $0x18] sm:$0xff]  ;;  %v2562_v43 = vld [vmem:[#allocation2 + $0x28] sm:$0xff]  ;;  %v2573_v52 = vld [vmem:[#allocation3] sm:$0xff]  ;;  %vm3684_vm15 = vcmask 261120  }
 0x53e   : > { %v7681_v24 = vmul.f32 0.03125, %v2560_v33  ;;  %v2576_v20 = vld [vmem:[#allocation3 + $0x18] sm:$0xff]  ;;  %v2558_v56 = vld [vmem:[#allocation2 + $0x8] sm:$0xff]  ;;  %v7688_v61 = vmul.f32 0.03125, %v2562_v43  ;;  %v2581_v50 = vmul.f32 0.03125, %v2573_v52  ;;  %v2589_v53 = vmul.f32 %v2565_v28, %v2565_v28 }
 0x53f   : > { %2635 = vrot.lane.b32.xlu1 %v6999_v3, %s6900_s11  ;;  %2631 = vrot.lane.b32.xlu0 %v6989_v1, %s6900_s11  ;;  %v2584_v37 = vmul.f32 0.03125, %v2576_v20  ;;  %v2578_v23 = vld [vmem:[#allocation3 + $0x28] sm:$0xff]  ;;  %v2564_v18 = vld [vmem:[#allocation2 + $0x38] sm:$0xff]  ;;  %v2566_v63 = vmul.f32 0.03125, %v2558_v56  ;;  %v2561_v20 = vld [vmem:[#allocation2 + $0x20] sm:$0xff] }
 0x540   : > { %v2592_v39 = vmul.f32 %v7681_v24, %v7681_v24  ;;  %v2574_v45 = vld [vmem:[#allocation3 + $0x8] sm:$0xff]  ;;  %v2586_v54 = vmul.f32 0.03125, %v2578_v23  ;;  %v2594_v31 = vmul.f32 %v7688_v61, %v7688_v61  ;;  %v7694_v42 = vmul.f32 0.03125, %v2564_v18  ;;  %v2580_v35 = vld [vmem:[#allocation3 + $0x38] sm:$0xff]  ;;  %v2575_v56 = vld [vmem:[#allocation3 + $0x10] sm:$0xff] }
 0x541   : > { %v2597_v44 = vsub.f32 %v2581_v50, %v2589_v53  ;;  %v2582_v30 = vmul.f32 0.03125, %v2574_v45  ;;  %v2590_v48 = vmul.f32 %v2566_v63, %v2566_v63  ;;  %v2588_v46 = vmul.f32 0.03125, %v2580_v35 }
 0x542   : > { %v2600_v40 = vsub.f32 %v2584_v37, %v2592_v39  ;;  %v2602_v62 = vsub.f32 %v2586_v54, %v2594_v31  ;;  %v2596_v51 = vmul.f32 %v7694_v42, %v7694_v42  ;;  %v2569_v52 = vmul.f32 0.03125, %v2561_v20 }
 0x543   : > { %2639 = vrot.lane.b32.xlu1 %v7009_v5, %s6900_s11  ;;  %2637 = vrot.lane.b32.xlu0 %v7004_v4, %s6900_s11  ;;  %v2605_v59 = vmax.f32 %v2597_v44, 0.0  ;;  %v2598_v32 = vsub.f32 %v2582_v30, %v2590_v48  ;;  %v2583_v50 = vmul.f32 0.03125, %v2575_v56 }
 0x544   : > { %v2608_v36 = vmax.f32 %v2600_v40, 0.0  ;;  %v2610_v55 = vmax.f32 %v2602_v62, 0.0  ;;  %v2604_v49 = vsub.f32 %v2588_v46, %v2596_v51  ;;  %v2577_v46 = vld [vmem:[#allocation3 + $0x20] sm:$0xff] }
 0x546   : > { %v2616_v47 = vadd.f32 1e-05, %v2608_v36 }
 0x547   : > { %2643 = vrot.lane.b32.xlu1 %v7019_v7, %s6900_s11  ;;  %2641 = vrot.lane.b32.xlu0 %v7014_v6, %s6900_s11 }
 0x548   : > { %6630 = vrsqrt.f32 %v2616_v47 }
 0x54b   : > { %2334 = vperm.xlu0 %6560, %v2270_v34   ;;  %2284 = vperm.xlu1 %6558, %v2270_v34  }
 0x54f   : > { %2342 = vperm.xlu0 %6560, %v2272_v22   ;;  %6559 = vset.pattern.permute.xlu1 %v6901_v19 }
 0x550   : > { %2330 = vperm.xlu1 %6559, %v2269_v57  }
 0x552   : > { %v6631_v58 = vpop.eup %6630 }
 0x553   : > { %2354 = vperm.xlu0 %6560, %v7643_v25  }
 0x554   : > { %6561 = vset.pattern.permute.xlu1 %v6903_v60 }
 0x555   : > { %2382 = vperm.xlu1 %6561, %v2269_v57  }
 0x557   : > { %6572 = vset.pattern.permute.xlu0 %v9101_v38 }
 0x558   : > { %2442 = vperm.xlu0 %6572, %v2271_v26  }
 0x559   : > { %2386 = vperm.xlu1 %6561, %v2270_v34  }
 0x55c   : > { %2454 = vperm.xlu0 %6572, %v2274_v41  }
 0x55d   : > { %6562 = vset.pattern.permute.xlu1 %v9103_v29 }
 0x55e   : > { %2294 = vperm.xlu1 %6562, %v2272_v22  }
 0x560   : > { %2458 = vperm.xlu0 %6572, %v7643_v25  }
 0x562   : > { %6563 = vset.pattern.permute.xlu1 %v6901_v19 }
 0x563   : > { %2338 = vperm.xlu1 %6563, %v2271_v26  }
 0x564   : > { %6577 = vset.pattern.permute.xlu0 %v6903_v60 }
 0x565   : > { %2390 = vperm.xlu0 %6577, %v2271_v26  }
 0x567   : > { %6564 = vset.pattern.permute.xlu1 %v9101_v38 }
 0x568   : > { %2434 = vperm.xlu1 %6564, %v2269_v57  }
 0x569   : > { %2410 = vperm.xlu0 %6577, %v7661_v27  }
 0x56c   : > { %2438 = vperm.xlu1 %6564, %v2270_v34   ;;  %v2606_v34 = vmax.f32 %v2598_v32, 0.0  ;;  %v2585_v32 = vmul.f32 0.03125, %v2577_v46 }
 0x56d   : > { %2758 = vperm.xlu0 %6577, %v6984_v0  }
 0x570   : > { %6565 = vset.pattern.permute.xlu1 %v6903_v60 }
 0x571   : > { %2766 = vperm.xlu0 %6577, %v6994_v2   ;;  %2394 = vperm.xlu1 %6565, %v2272_v22  }
 0x575   : > { %2774 = vperm.xlu0 %6577, %v7004_v4   ;;  %6566 = vset.pattern.permute.xlu1 %v9103_v29 }
 0x576   : > { %2299 = vperm.xlu1 %6566, %v2273_v21  }
 0x579   : > { %6584 = vset.pattern.permute.xlu0 %v9103_v29 }
 0x57a   : > { %2279 = vperm.xlu0 %6584, %v2269_v57   ;;  %6567 = vset.pattern.permute.xlu1 %v6901_v19  ;;  %v2612_v57 = vmax.f32 %v2604_v49, 0.0 }
 0x57b   : > { %2346 = vperm.xlu1 %6567, %v2273_v21  }
 0x57e   : > { %2289 = vperm.xlu0 %6584, %v2271_v26   ;;  %v2614_v26 = vadd.f32 1e-05, %v2606_v34 }
 0x57f   : > { %2350 = vperm.xlu1 %6567, %v2274_v41  }
 0x582   : > { %2304 = vperm.xlu0 %6584, %v2274_v41  }
 0x583   : > { %6568 = vset.pattern.permute.xlu1 %v9101_v38 }
 0x584   : > { %2446 = vperm.xlu1 %6568, %v2272_v22   ;;  %v2618_v22 = vadd.f32 1e-05, %v2610_v55  ;;  %v2593_v55 = vmul.f32 %v2569_v52, %v2569_v52 }
 0x586   : > { %2492 = vperm.xlu0 %6584, %v6989_v1   ;;  %v2601_v34 = vsub.f32 %v2585_v32, %v2593_v55 }
 0x588   : > { %6569 = vset.pattern.permute.xlu1 %v9103_v29 }
 0x589   : > { %2487 = vperm.xlu1 %6569, %v6984_v0  }
 0x58a   : > { %2309 = vperm.xlu0 %6584, %v7643_v25  }
 0x58d   : > { %6570 = vset.pattern.permute.xlu1 %v6903_v60 }
 0x58e   : > { %2663 = vperm.xlu0 %6584, %v2565_v28   ;;  %2398 = vperm.xlu1 %6570, %v2273_v21   ;;  %v2559_v28 = vld [vmem:[#allocation2 + $0x10] sm:$0xff] }
 0x58f   : > { %v2567_v43 = vmul.f32 0.03125, %v2559_v28 }
 0x591   : > { %v2591_v53 = vmul.f32 %v2567_v43, %v2567_v43 }
 0x592   : > { %2402 = vperm.xlu1 %6570, %v2274_v41   ;;  %2512 = vperm.xlu0 %6584, %v7009_v5  }
 0x593   : > { %v2599_v35 = vsub.f32 %v2583_v50, %v2591_v53 }
 0x595   : > { %v2607_v47 = vmax.f32 %v2599_v35, 0.0 }
 0x596   : > { %6571 = vset.pattern.permute.xlu1 %v9103_v29 }
 0x597   : > { %2314 = vperm.xlu1 %6571, %v7661_v27   ;;  %v2615_v62 = vadd.f32 1e-05, %v2607_v47  ;;  %v3052_v47 = vld [vmem:[#allocation4 + $0x8] sm:$0xff] }
 0x59b   : > { %6573 = vset.pattern.permute.xlu1 %v6901_v19  ;;  %v2613_v19 = vadd.f32 1e-05, %v2605_v59 }
 0x59c   : > { %2358 = vperm.xlu1 %6573, %v7661_v27  }
 0x59d   : > { %6632 = vrsqrt.f32 %v2613_v19 }
 0x59e   : > { %6634 = vrsqrt.f32 %v2618_v22 }
 0x59f   : > { %6636 = vrsqrt.f32 %v2614_v26  ;;  %v2609_v26 = vmax.f32 %v2601_v34, 0.0 }
 0x5a0   : > { %6574 = vset.pattern.permute.xlu1 %v9101_v38 }
 0x5a1   : > { %2450 = vperm.xlu1 %6574, %v2273_v21   ;;  %v2620_v21 = vadd.f32 1e-05, %v2612_v57 }
 0x5a3   : > { %6638 = vrsqrt.f32 %v2620_v21 }
 0x5a4   : > { %6640 = vrsqrt.f32 %v2615_v62  ;;  %v7789_v62 = vmul.f32 0.03125, %v3052_v47 }
 0x5a5   : > { %6575 = vset.pattern.permute.xlu1 %v9103_v29 }
 0x5a6   : > { %2497 = vperm.xlu1 %6575, %v6994_v2  }
 0x5a7   : > { %v6633_v23 = vpop.eup %6632 }
 0x5a8   : > { %v6635_v18 = vpop.eup %6634 }
 0x5a9   : > { %v6637_v36 = vpop.eup %6636 }
 0x5aa   : > { %2502 = vperm.xlu1 %6575, %v6999_v3  }
 0x5ad   : > { %v7702_v41 = vpop.permute.xlu1 %2633  ;;  %v2630_v39 = vpop.permute.xlu0 %2629 }
 0x5ae   : > { %2668 = vperm.xlu1 %6575, %v2566_v63   ;;  %v2653_v45 = vmul.f32 %v6633_v23, %v2630_v39  ;;  %v6639_v31 = vpop.eup %6638  ;;  %v2579_v39 = vld [vmem:[#allocation3 + $0x30] sm:$0xff] }
 0x5af   : > { %v6641_v22 = vpop.eup %6640 }
 0x5b1   : > { %v2636_v33 = vpop.permute.xlu1 %2635  ;;  %v2632_v63 = vpop.permute.xlu0 %2631 }
 0x5b2   : > { %v2656_v37 = vmul.f32 %v6631_v58, %v2636_v33  ;;  %6576 = vset.pattern.permute.xlu1 %v6903_v60  ;;  %v2654_v44 = vmul.f32 %v6637_v36, %v2632_v63  ;;  %v2563_v58 = vld [vmem:[#allocation2 + $0x30] sm:$0xff]  ;;  %v2617_v33 = vadd.f32 1e-05, %v2609_v26  ;;  %v2317_v26 = vlaneseq }
 0x5b3   : > { %2406 = vperm.xlu1 %6576, %v7643_v25  }
 0x5b4   : > { %2726 = vperm.xlu0 %6584, %v2656_v37   ;;  %v2571_v37 = vmul.f32 0.03125, %v2563_v58  ;;  %6642 = vrsqrt.f32 %v2617_v33  ;;  %v2318_v33 = vshrl.u32 %v2317_v26, 7 }
 0x5b5   : > { %v2640_v40 = vpop.permute.xlu1 %2639  ;;  %v7709_v48 = vpop.permute.xlu0 %2637 }
 0x5b6   : > { %v2658_v54 = vmul.f32 %v6635_v18, %v2640_v40  ;;  %v2595_v56 = vmul.f32 %v2571_v37, %v2571_v37 }
 0x5b7   : > { %6578 = vset.pattern.permute.xlu1 %v9101_v38 }
 0x5b8   : > { %2683 = vperm.xlu0 %6584, %v2569_v52   ;;  %2462 = vperm.xlu1 %6578, %v7661_v27   ;;  %v2587_v52 = vmul.f32 0.03125, %v2579_v39  ;;  %v2319_v39 = vsub.s32 0, %v2318_v33 }
 0x5b9   : > { %v2644_v25 = vpop.permute.xlu1 %2643  ;;  %v7711_v27 = vpop.permute.xlu0 %2641 }
 0x5ba   : > { %v2660_v30 = vmul.f32 %v6639_v31, %v2644_v25  ;;  %v2603_v23 = vsub.f32 %v2587_v52, %v2595_v56  ;;  %v2363_v52 = vsub.s32 1, %v2318_v33 }
 0x5bc   : > { %2736 = vperm.xlu0 %6584, %v2658_v54   ;;  %6579 = vset.pattern.permute.xlu1 %v9103_v29  ;;  %v2611_v63 = vmax.f32 %v2603_v23, 0.0  ;;  %v7814_v23 = vrot.slane %v7069_v17, %v2319_v39 }
 0x5bd   : > { %2711 = vperm.xlu1 %6579, %v2653_v45  }
 0x5be   : > { %v6643_v53 = vpop.eup %6642  ;;  %v2619_v31 = vadd.f32 1e-05, %v2611_v63 }
 0x5bf   : > { %v2657_v54 = vmul.f32 %v6643_v53, %v7709_v48  ;;  %v2415_v53 = vsub.s32 2, %v2318_v33 }
 0x5c0   : > { %2746 = vperm.xlu0 %6584, %v2660_v30   ;;  %6644 = vrsqrt.f32 %v2619_v31  ;;  %v7825_v31 = vrot.slane %v7069_v17, %v2363_v52 }
 0x5c1   : > { %2716 = vperm.xlu1 %6579, %v2654_v44  }
 0x5c4   : > { %3195 = vrot.lane.b32.xlu0 %v6984_v0, %s6905_s9 }
 0x5c5   : > { %2507 = vperm.xlu1 %6579, %v7004_v4   ;;  %6588 = vset.pattern.permute.xlu0 %v9101_v38 }
 0x5c8   : > { %3199 = vrot.lane.b32.xlu0 %v6994_v2, %s6905_s9 }
 0x5c9   : > { %2673 = vperm.xlu1 %6579, %v2567_v43  }
 0x5ca   : > { %v7719_v51 = vpop.permute.xlu0 %2334  ;;  %v7721_v59 = vpop.permute.xlu1 %2284 }
 0x5cb   : > { %v6645_v46 = vpop.eup %6644 }
 0x5cc   : > { %3203 = vrot.lane.b32.xlu0 %v7004_v4, %s6905_s9  ;;  %v2659_v34 = vmul.f32 %v6645_v46, %v7711_v27  ;;  %v7830_v46 = vrot.slane %v7069_v17, %v2415_v53 }
 0x5cd   : > { %2678 = vperm.xlu1 %6579, %v7681_v24   ;;  %v2655_v24 = vmul.f32 %v6641_v22, %v7702_v41 }
 0x5ce   : > { %v7726_v49 = vpop.permute.xlu0 %2342 }
 0x5cf   : > { %v7728_v19 = vpop.permute.xlu1 %2330 }
 0x5d0   : > { %3207 = vrot.lane.b32.xlu0 %v7014_v6, %s6905_s9 }
 0x5d1   : > { %6580 = vset.pattern.permute.xlu1 %v6903_v60 }
 0x5d2   : > { %2762 = vperm.xlu1 %6580, %v6989_v1   ;;  %v7734_v57 = vpop.permute.xlu0 %2354 }
 0x5d4   : > { %v7736_v21 = vpop.permute.xlu1 %2382  ;;  %3211 = vrot.lane.b32.xlu0 %v7024_v8, %s6905_s9 }
 0x5d6   : > { %6581 = vset.pattern.permute.xlu1 %v9103_v29 }
 0x5d7   : > { %2721 = vperm.xlu1 %6581, %v2655_v24   ;;  %v7742_v28 = vpop.permute.xlu0 %2442 }
 0x5d8   : > { %v7744_v20 = vpop.permute.xlu1 %2386  ;;  %3215 = vrot.lane.b32.xlu0 %v7034_v10, %s6905_s9 }
 0x5db   : > { %2517 = vperm.xlu1 %6581, %v7014_v6   ;;  %v7749_v43 = vpop.permute.xlu0 %2454 }
 0x5dc   : > { %3219 = vrot.lane.b32.xlu0 %v7044_v12, %s6905_s9  ;;  %v3055_v12 = vld [vmem:[#allocation4 + $0x20] sm:$0xff] }
 0x5dd   : > { %v7753_v41 = vpop.permute.xlu1 %2294 }
 0x5df   : > { %2522 = vperm.xlu1 %6581, %v7019_v7   ;;  %v7756_v40 = vpop.permute.xlu0 %2458 }
 0x5e0   : > { %3223 = vrot.lane.b32.xlu0 %v7054_v14, %s6905_s9 }
 0x5e2   : > { %v7760_v18 = vpop.permute.xlu1 %2338 }
 0x5e3   : > { %2688 = vperm.xlu1 %6581, %v7688_v61  }
 0x5e4   : > { %v7763_v50 = vpop.permute.xlu0 %2390  ;;  %2818 = vperm.xlu0 %6588, %v6984_v0  }
 0x5e7   : > { %6582 = vset.pattern.permute.xlu1 %v6903_v60  ;;  %v7767_v45 = vpop.permute.xlu1 %2434 }
 0x5e8   : > { %2770 = vperm.xlu1 %6582, %v6999_v3   ;;  %v7770_v36 = vpop.permute.xlu0 %2410  ;;  %2838 = vperm.xlu0 %6588, %v7009_v5  }
 0x5eb   : > { %v7774_v61 = vpop.permute.xlu1 %2438 }
 0x5ec   : > { %6583 = vset.pattern.permute.xlu1 %v9103_v29  ;;  %v7777_v25 = vpop.permute.xlu0 %2758  ;;  %6595 = vset.pattern.permute.xlu0 %v9103_v29 }
 0x5ed   : > { %2731 = vperm.xlu1 %6583, %v2657_v54   ;;  %3266 = vperm.xlu0 %6595, %v7789_v62   ;;  %v6618_v54 = vld [vmem:[%s9096_s2] sm:$0xff]  }
 0x5ee   : > { %6219 = vmatprep.mubr.msk.bf16.mxu0 %vm2929_vm5, %v6618_v54 }
 0x5f0   : > { %v7780_v35 = vpop.permute.xlu1 %2394  ;;  %v7782_v44 = vpop.permute.xlu0 %2766 }
 0x5f1   : > { %2693 = vperm.xlu1 %6583, %v2571_v37  }
 0x5f4   : > { %v7784_v30 = vpop.permute.xlu0 %2774 }
 0x5f5   : > { %2698 = vperm.xlu1 %6583, %v7694_v42   ;;  %v7787_v48 = vpop.permute.xlu1 %2299 }
 0x5f9   : > { %v7791_v32 = vpop.permute.xlu0 %2279  ;;  %6585 = vset.pattern.permute.xlu1 %v6903_v60 }
 0x5fa   : > { %2778 = vperm.xlu1 %6585, %v7009_v5   ;;  %v7796_v55 = vpop.permute.xlu1 %2346 }
 0x5fd   : > { %v7799_v22 = vpop.permute.xlu0 %2289 }
 0x5fe   : > { %6586 = vset.pattern.permute.xlu1 %v9103_v29  ;;  %v2351_v42 = vpop.permute.xlu1 %2350 }
 0x5ff   : > { %2741 = vperm.xlu1 %6586, %v2659_v34   ;;  %v2370_v26 = vmul.f32 %v7825_v31, %v2351_v42 }
 0x601   : > { %v2305_v24 = vpop.permute.xlu0 %2304 }
 0x602   : > { %v2326_v47 = vmul.f32 %v7814_v23, %v2305_v24 }
 0x603   : > { %6587 = vset.pattern.permute.xlu1 %v6903_v60  ;;  %v7803_v58 = vpop.permute.xlu1 %2446  ;;  %v2467_v60 = vsub.s32 3, %v2318_v33 }
 0x604   : > { %2782 = vperm.xlu1 %6587, %v7014_v6   ;;  %v2378_v52 = vadd.f32 %v2370_v26, %v2326_v47  ;;  %v3051_v47 = vld [vmem:[#allocation4] sm:$0xff]  ;;  %v3053_v26 = vld [vmem:[#allocation4 + $0x10] sm:$0xff] }
 0x605   : > { %v7806_v37 = vpop.permute.xlu0 %2492  ;;  %v7833_v34 = vrot.slane %v7069_v17, %v2467_v60 }
 0x607   : > { %v2474_v24 = vmul.f32 %v7833_v34, %v7749_v43 }
 0x608   : > { %2786 = vperm.xlu1 %6587, %v7019_v7   ;;  %v7809_v27 = vpop.permute.xlu1 %2487 }
 0x609   : > { %v7811_v56 = vpop.permute.xlu0 %2309 }
 0x60c   : > { %3197 = vrot.lane.b32.xlu1 %v6989_v1, %s6905_s9 }
 0x60d   : > { %v7818_v63 = vpop.permute.xlu1 %2398  ;;  %6589 = vset.pattern.permute.xlu1 %v9101_v38  ;;  %v7838_v33 = vpop.permute.xlu0 %2663 }
 0x610   : > { %3201 = vrot.lane.b32.xlu1 %v6999_v3, %s6905_s9 }
 0x611   : > { %v2403_v39 = vpop.permute.xlu1 %2402  ;;  %v2513_v53 = vpop.permute.xlu0 %2512 }
 0x612   : > { %v2422_v54 = vmul.f32 %v7830_v46, %v2403_v39 }
 0x614   : > { %v2430_v38 = vadd.f32 %v2422_v54, %v2378_v52  ;;  %3205 = vrot.lane.b32.xlu1 %v7009_v5, %s6905_s9 }
 0x616   : > { %v7845_v60 = vpop.permute.xlu1 %2314  ;;  %v2482_v42 = vadd.f32 %v2474_v24, %v2430_v38  ;;  %v3083_v38 = vld [vmem:[#allocation5] sm:$0xff]  ;;  %v3067_v24 = vmul.f32 0.03125, %v3051_v47  ;;  %v7874_v47 = vmul.f32 0.03125, %v3055_v12 }
 0x617   : > { %v3099_v52 = vmul.f32 0.03125, %v3083_v38  ;;  %v3087_v38 = vld [vmem:[#allocation5 + $0x20] sm:$0xff] }
 0x618   : > { %v7847_v29 = vadd.f32 %v2513_v53, %v2482_v42  ;;  %3209 = vrot.lane.b32.xlu1 %v7019_v7, %s6905_s9  ;;  %v3115_v54 = vmul.f32 %v3067_v24, %v3067_v24  ;;  %v7863_v53 = vmul.f32 0.03125, %v3053_v26  ;;  %v3085_v42 = vld [vmem:[#allocation5 + $0x10] sm:$0xff] }
 0x619   : > { %v3101_v8 = vmul.f32 0.03125, %v3085_v42  ;;  %v3089_v7 = vld [vmem:[#allocation5 + $0x30] sm:$0xff] }
 0x61a   : > { %v3131_v10 = vsub.f32 %v3099_v52, %v3115_v54  ;;  %v3117_v6 = vmul.f32 %v7863_v53, %v7863_v53  ;;  %v3119_v52 = vmul.f32 %v7874_v47, %v7874_v47  ;;  %v2321_v54 = vmul.f32 %v7814_v23, %v7791_v32 }
 0x61b   : > { %v7851_v16 = vpop.permute.xlu1 %2358  ;;  %vm2538_vm11 = vcmp.ge.f32.partialorder %v7847_v29, 0.0 }
 0x61c   : > { %3213 = vrot.lane.b32.xlu1 %v7029_v9, %s6905_s9  ;;  %v3147_v26 = vmax.f32 %v3131_v10, 0.0  ;;  %v3133_v14 = vsub.f32 %v3101_v8, %v3117_v6  ;;  %v2365_v6 = vmul.f32 %v7825_v31, %v7728_v19  ;;  %v9208_v8 = vmov 3  }
 0x61d   : > { %v3105_v19 = vmul.f32 0.03125, %v3089_v7  ;;  %v2469_v7 = vmul.f32 %v7833_v34, %v7767_v45 }
 0x61e   : > { %v3163_v12 = vadd.f32 1e-05, %v3147_v26  ;;  %v3149_v9 = vmax.f32 %v3133_v14, 0.0  ;;  %v2417_v14 = vmul.f32 %v7830_v46, %v7736_v21 }
 0x620   : > { %v7855_v43 = vpop.permute.xlu1 %2450  ;;  %3217 = vrot.lane.b32.xlu1 %v7039_v11, %s6905_s9  ;;  %6646 = vrsqrt.f32 %v3163_v12  ;;  %v3165_v0 = vadd.f32 1e-05, %v3149_v9  ;;  %v2418_v9 = vmul.f32 %v7830_v46, %v7744_v20 }
 0x622   : > { %6648 = vrsqrt.f32 %v3165_v0 }
 0x624   : > { %3221 = vrot.lane.b32.xlu1 %v7049_v13, %s6905_s9  ;;  %v9207_v13 = vmov 0  }
 0x625   : > { %v7861_v39 = vpop.permute.xlu1 %2497 }
 0x628   : > { %3225 = vrot.lane.b32.xlu1 %v7059_v15, %s6905_s9  ;;  %v3103_v15 = vmul.f32 0.03125, %v3087_v38  ;;  %v2373_v38 = vadd.f32 %v2365_v6, %v2321_v54  ;;  %v3059_v6 = vld [vmem:[#allocation4 + $0x40] sm:$0xff] }
 0x629   : > { %v7867_v17 = vpop.permute.xlu1 %2502 }
 0x62a   : > { %v3135_v10 = vsub.f32 %v3103_v15, %v3119_v52  ;;  %v2322_v52 = vmul.f32 %v7814_v23, %v7721_v59  ;;  %v2425_v54 = vadd.f32 %v2417_v14, %v2373_v38  ;;  %v2470_v59 = vmul.f32 %v7833_v34, %v7774_v61  ;;  %v3091_v14 = vld [vmem:[#allocation5 + $0x40] sm:$0xff]  ;;  %v6647_v45 = vpop.eup %6646 }
 0x62c   : > { %2822 = vperm.xlu1 %6589, %v6989_v1   ;;  %v3057_v1 = vld [vmem:[#allocation4 + $0x30] sm:$0xff]  ;;  %v3151_v26 = vmax.f32 %v3135_v10, 0.0  ;;  %v2477_v38 = vadd.f32 %v2469_v7, %v2425_v54 }
 0x62d   : > { %v7872_v4 = vpop.permute.xlu1 %2668 }
 0x62e   : > { %v3167_v10 = vadd.f32 1e-05, %v3151_v26  ;;  %v2525_v20 = vadd.f32 %v7809_v27, %v2477_v38 }
 0x630   : > { %6590 = vset.pattern.permute.xlu1 %v9207_v13  ;;  %6650 = vrsqrt.f32 %v3167_v10  ;;  %vm2533_vm6 = vcmp.ge.f32.partialorder %v2525_v20, 0.0 }
 0x631   : > { %3261 = vperm.xlu1 %6590, %v3067_v24   ;;  %v7888_v24 = vmul.f32 0.03125, %v3057_v1  ;;  %v2366_v1 = vmul.f32 %v7825_v31, %v7719_v51  ;;  %v7910_v51 = vmul.f32 0.03125, %v3059_v6  ;;  %v2541_v6 = vmul.f32 0.2, %v2525_v20 }
 0x632   : > { %v7881_v42 = vpop.permute.xlu1 %2406 }
 0x633   : > { %v7883_v11 = vpop.permute.xlu0 %2726  ;;  %9209 = vst [vmem:[#allocation29_spill] sm:$0xff] %v7888_v24  ;;  %v3121_v15 = vmul.f32 %v7888_v24, %v7888_v24  ;;  %9210 = vst [vmem:[#allocation30_spill] sm:$0xff] %v7910_v51 }
 0x635   : > { %6591 = vset.pattern.permute.xlu1 %v9208_v8  ;;  %v3137_v24 = vsub.f32 %v3105_v19, %v3121_v15  ;;  %v3107_v19 = vmul.f32 0.03125, %v3091_v14  ;;  %v3123_v15 = vmul.f32 %v7910_v51, %v7910_v51  ;;  %v2549_v51 = vsel %vm2533_vm6, %v2525_v20, %v2541_v6 }
 0x636   : > { %2826 = vperm.xlu1 %6591, %v6994_v2   ;;  %v2374_v2 = vadd.f32 %v2366_v1, %v2322_v52  ;;  %v3061_v52 = vld [vmem:[#allocation4 + $0x50] sm:$0xff]  ;;  %v2367_v20 = vmul.f32 %v7825_v31, %v7760_v18  ;;  %v2324_v18 = vmul.f32 %v7814_v23, %v7753_v41 }
 0x637   : > { %v7891_v32 = vpop.permute.xlu0 %2683  ;;  %v7893_v5 = vpop.permute.xlu1 %2462  ;;  %v3153_v26 = vmax.f32 %v3137_v24, 0.0  ;;  %v7923_v38 = vmul.f32 0.03125, %v3061_v52  ;;  %v3093_v24 = vld [vmem:[#allocation5 + $0x50] sm:$0xff]  ;;  %v2701_v52 = vsub.f32 %v2549_v51, %v7838_v33  ;;  %v2419_v33 = vmul.f32 %v7830_v46, %v7763_v50 }
 0x638   : > { %v2426_v8 = vadd.f32 %v2418_v9, %v2374_v2  ;;  %v6649_v2 = vpop.eup %6648  ;;  %v3139_v9 = vsub.f32 %v3107_v19, %v3123_v15 }
 0x639   : > { %v3169_v27 = vadd.f32 1e-05, %v3153_v26  ;;  %9211 = vst [vmem:[#allocation31_spill] sm:$0xff] %v7923_v38  ;;  %v3063_v26 = vld [vmem:[#allocation4 + $0x60] sm:$0xff] }
 0x63a   : > { %2830 = vperm.xlu1 %6591, %v6999_v3   ;;  %v2478_v1 = vadd.f32 %v2470_v59, %v2426_v8  ;;  %v6651_v19 = vpop.eup %6650 }
 0x63b   : > { %v7904_v12 = vpop.permute.xlu0 %2736  ;;  %6652 = vrsqrt.f32 %v3169_v27 }
 0x63c   : > { %v2712_v21 = vpop.permute.xlu1 %2711  ;;  %v2526_v54 = vadd.f32 %v7806_v37, %v2478_v1  ;;  %v3155_v37 = vmax.f32 %v3139_v9, 0.0  ;;  %v3109_v1 = vmul.f32 0.03125, %v3093_v24  ;;  %v7939_v9 = vmul.f32 0.03125, %v3063_v26 }
 0x63d   : > { %v2749_v24 = vmul.f32 %v2712_v21, %v2701_v52  ;;  %v2471_v26 = vmul.f32 %v7833_v34, %v7742_v28 }
 0x63e   : > { %6592 = vset.pattern.permute.xlu1 %v9207_v13  ;;  %v2542_v14 = vmul.f32 0.2, %v2526_v54  ;;  %vm2534_vm7 = vcmp.ge.f32.partialorder %v2526_v54, 0.0 }
 0x63f   : > { %v7915_v0 = vpop.permute.xlu0 %2746 }
 0x640   : > { %v2717_v3 = vpop.permute.xlu1 %2716  ;;  %v2550_v6 = vsel %vm2534_vm7, %v2526_v54, %v2542_v14  ;;  %v3058_v54 = vld [vmem:[#allocation4 + $0x38] sm:$0xff]  ;;  %v2420_v14 = vmul.f32 %v7830_v46, %v7780_v35 }
 0x641   : > { %v7954_v41 = vmul.f32 0.03125, %v3058_v54 }
 0x643   : > { %v3196_v61 = vpop.permute.xlu0 %3195 }
 0x644   : > { %v7921_v7 = vpop.permute.xlu1 %2507  ;;  %v3243_v13 = vmul.f32 %v6647_v45, %v3196_v61  ;;  %v3125_v45 = vmul.f32 %v7923_v38, %v7923_v38  ;;  %v2368_v38 = vmul.f32 %v7825_v31, %v7726_v49 }
 0x645   : > { %v6653_v50 = vpop.eup %6652 }
 0x646   : > { %3357 = vperm.xlu0 %6595, %v3243_v13   ;;  %v2323_v13 = vmul.f32 %v7814_v23, %v7799_v22  ;;  %v3141_v27 = vsub.f32 %v3109_v1, %v3125_v45  ;;  %v3095_v22 = vld [vmem:[#allocation5 + $0x60] sm:$0xff]  ;;  %v3127_v1 = vmul.f32 %v7939_v9, %v7939_v9  ;;  %v2789_v45 = vadd.f32 %v7777_v25, %v2749_v24  ;;  %v3060_v24 = vld [vmem:[#allocation4 + $0x48] sm:$0xff] }
 0x647   : > { %v3200_v10 = vpop.permute.xlu0 %3199 }
 0x648   : > { %v7925_v8 = vpop.permute.xlu1 %2673  ;;  %v7927_v59 = vmul.f32 %v6649_v2, %v3200_v10  ;;  %v3171_v2 = vadd.f32 1e-05, %v3155_v37  ;;  %v2375_v51 = vadd.f32 %v2367_v20, %v2323_v13  ;;  %v3111_v37 = vmul.f32 0.03125, %v3095_v22 }
 0x649   : > { %v7965_v22 = vmul.f32 0.03125, %v3060_v24 }
 0x64a   : > { %3271 = vperm.xlu0 %6595, %v7863_v53   ;;  %v2702_v53 = vsub.f32 %v2550_v6, %v7872_v4  ;;  %6654 = vrsqrt.f32 %v3171_v2  ;;  %v2427_v35 = vadd.f32 %v2419_v33, %v2375_v51  ;;  %v3143_v6 = vsub.f32 %v3111_v37, %v3127_v1 }
 0x64b   : > { %v3204_v15 = vpop.permute.xlu0 %3203  ;;  %v2421_v37 = vmul.f32 %v7830_v46, %v7818_v63 }
 0x64c   : > { %v7937_v61 = vpop.permute.xlu1 %2678  ;;  %v3247_v10 = vmul.f32 %v6651_v19, %v3204_v15  ;;  %v2750_v4 = vmul.f32 %v2717_v3, %v2702_v53  ;;  %v2376_v19 = vadd.f32 %v2368_v38, %v2324_v18  ;;  %v2472_v3 = vmul.f32 %v7833_v34, %v7803_v58 }
 0x64d   : > { %v3159_v58 = vmax.f32 %v3143_v6, 0.0 }
 0x64e   : > { %3281 = vperm.xlu0 %6595, %v7874_v47   ;;  %v3157_v47 = vmax.f32 %v3141_v27, 0.0  ;;  %v2428_v20 = vadd.f32 %v2420_v14, %v2376_v19  ;;  %v2479_v27 = vadd.f32 %v2471_v26, %v2427_v35 }
 0x64f   : > { %v3208_v13 = vpop.permute.xlu0 %3207  ;;  %v3175_v14 = vadd.f32 1e-05, %v3159_v58  ;;  %v2327_v58 = vmul.f32 %v7814_v23, %v7811_v56  ;;  %v2424_v56 = vmul.f32 %v7830_v46, %v7770_v36 }
 0x650   : > { %v3173_v52 = vadd.f32 1e-05, %v3157_v47  ;;  %v3249_v25 = vmul.f32 %v6653_v50, %v3208_v13  ;;  %v2480_v53 = vadd.f32 %v2472_v3, %v2428_v20  ;;  %v2527_v28 = vadd.f32 %v7861_v39, %v2479_v27 }
 0x651   : > { %v2763_v21 = vpop.permute.xlu1 %2762  ;;  %v2325_v47 = vmul.f32 %v7814_v23, %v7787_v48  ;;  %v2473_v3 = vmul.f32 %v7833_v34, %v7855_v43 }
 0x652   : > { %v2790_v49 = vadd.f32 %v2763_v21, %v2750_v4  ;;  %3377 = vperm.xlu0 %6595, %v3247_v10   ;;  %v2528_v38 = vadd.f32 %v7867_v17, %v2480_v53  ;;  %6656 = vrsqrt.f32 %v3173_v52  ;;  %v2543_v51 = vmul.f32 0.2, %v2527_v28  ;;  %v3062_v21 = vld [vmem:[#allocation4 + $0x58] sm:$0xff] }
 0x653   : > { %v3212_v33 = vpop.permute.xlu0 %3211  ;;  %vm2535_vm8 = vcmp.ge.f32.partialorder %v2527_v28, 0.0  ;;  %v2369_v17 = vmul.f32 %v7825_v31, %v7796_v55  ;;  %6658 = vrsqrt.f32 %v3175_v14  ;;  %v7978_v19 = vmul.f32 0.03125, %v3062_v21  ;;  %v3066_v21 = vld [vmem:[#allocation4 + $0x78] sm:$0xff] }
 0x654   : > { %v2813_v15 = vpack.c.bf16 %v2790_v49, %v2789_v45  ;;  %v6655_v18 = vpop.eup %6654  ;;  %v2544_v54 = vmul.f32 0.2, %v2528_v38  ;;  %vm2536_vm9 = vcmp.ge.f32.partialorder %v2528_v38, 0.0  ;;  %v2551_v1 = vsel %vm2535_vm8, %v2527_v28, %v2543_v51 }
 0x655   : > { %v3251_v39 = vmul.f32 %v6655_v18, %v3212_v33  ;;  %v2703_v45 = vsub.f32 %v2551_v1, %v7925_v8  ;;  %v2377_v55 = vadd.f32 %v2369_v17, %v2325_v47  ;;  %v2328_v33 = vmul.f32 %v7814_v23, %v7845_v60 }
 0x656   : > { %6211 = vmatprep.subr.bf16.mxu0 %v2813_v15  ;;  %v2722_v2 = vpop.permute.xlu1 %2721  ;;  %3296 = vperm.xlu0 %6595, %v7954_v41   ;;  %v2552_v49 = vsel %vm2536_vm9, %v2528_v38, %v2544_v54  ;;  %v2371_v38 = vmul.f32 %v7825_v31, %v7734_v57  ;;  %v2546_v51 = vmul.f32 0.2, %v7847_v29  ;;  %v3116_v57 = vmul.f32 %v7789_v62, %v7789_v62 }
 0x657   : > { %6212 = vmatpush3.bf16.msra.mxu0 %v2813_v15  ;;  %v2704_v50 = vsub.f32 %v2552_v49, %v7937_v61  ;;  %v3216_v48 = vpop.permute.xlu0 %3215  ;;  %v2751_v13 = vmul.f32 %v2722_v2, %v2703_v45  ;;  %v2429_v15 = vadd.f32 %v2421_v37, %v2377_v55  ;;  %v3064_v61 = vld [vmem:[#allocation4 + $0x68] sm:$0xff]  ;;  %v2476_v23 = vmul.f32 %v7833_v34, %v7893_v5 }
 0x658   : > { %v7986_v24 = vmul.f32 0.03125, %v3064_v61  ;;  %v2554_v60 = vsel %vm2538_vm11, %v7847_v29, %v2546_v51  ;;  %v8009_v1 = vmul.f32 0.03125, %v3066_v21  ;;  %v2475_v49 = vmul.f32 %v7833_v34, %v7756_v40  ;;  %v3086_v61 = vld [vmem:[#allocation5 + $0x18] sm:$0xff] }
 0x659   : > { %v2752_v63 = vmul.f32 %v7883_v11, %v2704_v50  ;;  %v2481_v8 = vadd.f32 %v2473_v3, %v2429_v15  ;;  %v2791_v6 = vadd.f32 %v7782_v44, %v2751_v13  ;;  %v3084_v11 = vld [vmem:[#allocation5 + $0x8] sm:$0xff]  ;;  %v2372_v44 = vmul.f32 %v7825_v31, %v7851_v16  ;;  %v6621_v21 = vld [vmem:[%s9096_s2 + $0x18] sm:$0xff]  }
 0x65a   : > { %v7963_v10 = vpop.permute.xlu1 %2517  ;;  %3387 = vperm.xlu0 %6595, %v3249_v25   ;;  %v3100_v54 = vmul.f32 0.03125, %v3084_v11  ;;  %v2379_v31 = vadd.f32 %v2371_v38, %v2327_v58  ;;  %v9212_v13 = vld [vmem:[#allocation11_spill] sm:$0xff]  ;;  %v9215_v58 = vld [vmem:[#allocation18_spill] sm:$0xff] }
 0x65b   : > { %v2529_v27 = vadd.f32 %v7921_v7, %v2481_v8  ;;  %v3220_v2 = vpop.permute.xlu0 %3219  ;;  %v2380_v14 = vadd.f32 %v2372_v44, %v2328_v33 }
 0x65c   : > { %v6657_v35 = vpop.eup %6656  ;;  %v3132_v62 = vsub.f32 %v3100_v54, %v3116_v57  ;;  %v9216_v57 = vld [vmem:[#allocation20_spill] sm:$0xff] }
 0x65d   : > { %v3253_v20 = vmul.f32 %v6657_v35, %v3216_v48  ;;  %v6659_v43 = vpop.eup %6658  ;;  %v2545_v18 = vmul.f32 0.2, %v2529_v27  ;;  %vm2537_vm10 = vcmp.ge.f32.partialorder %v2529_v27, 0.0  ;;  %v6906_v48 = vmov 5  }
 0x65e   : > { %v7967_v4 = vpop.permute.xlu1 %2522  ;;  %3306 = vperm.xlu0 %6595, %v7965_v22   ;;  %v3255_v7 = vmul.f32 %v6659_v43, %v3220_v2  ;;  %v3148_v35 = vmax.f32 %v3132_v62, 0.0  ;;  %v3102_v43 = vmul.f32 0.03125, %v3086_v61  ;;  %v9219_v62 = vld [vmem:[#allocation12_spill] sm:$0xff] }
 0x65f   : > { %v2553_v17 = vsel %vm2537_vm10, %v2529_v27, %v2545_v18  ;;  %v9214_v27 = vld [vmem:[#allocation16_spill] sm:$0xff] }
 0x660   : > { %v2705_v36 = vsub.f32 %v2553_v17, %v7891_v32  ;;  %v3164_v34 = vadd.f32 1e-05, %v3148_v35  ;;  %v9218_v17 = vld [vmem:[#allocation24_spill] sm:$0xff] }
 0x661   : > { %v6624_v35 = vld [vmem:[%s9096_s2 + $0x30] sm:$0xff]  }
 0x662   : > { %v2689_v26 = vpop.permute.xlu1 %2688  ;;  %3397 = vperm.xlu0 %6595, %v3251_v39   ;;  %v2423_v39 = vmul.f32 %v7830_v46, %v7881_v42  ;;  %v2432_v46 = vadd.f32 %v2424_v56, %v2380_v14  ;;  %6660 = vrsqrt.f32 %v3164_v34  ;;  %v9217_v14 = vld [vmem:[#allocation22_spill] sm:$0xff] }
 0x663   : > { %v2706_v47 = vsub.f32 %v2554_v60, %v2689_v26  ;;  %v6622_v60 = vld [vmem:[%s9096_s2 + $0x20] sm:$0xff]  }
 0x664   : > { %v2431_v45 = vadd.f32 %v2423_v39, %v2379_v31  ;;  %v2484_v50 = vadd.f32 %v2476_v23, %v2432_v46  ;;  %v3056_v23 = vld [vmem:[#allocation4 + $0x28] sm:$0xff] }
 0x665   : > { %v2754_v5 = vmul.f32 %v7904_v12, %v2706_v47  ;;  %v3072_v47 = vmul.f32 0.03125, %v3056_v23 }
 0x666   : > { %3316 = vperm.xlu0 %6595, %v7978_v19   ;;  %v2483_v29 = vadd.f32 %v2475_v49, %v2431_v45  ;;  %v2532_v26 = vadd.f32 %v7967_v4, %v2484_v50  ;;  %v9213_v4 = vld [vmem:[#allocation14_spill] sm:$0xff]  ;;  %v9221_v49 = vmov 3   ;;  %v6623_v50 = vld [vmem:[%s9096_s2 + $0x28] sm:$0xff]  }
 0x667   : > { %v2771_v52 = vpop.permute.xlu1 %2770  ;;  %v3120_v46 = vmul.f32 %v3072_v47, %v3072_v47 }
 0x668   : > { %v2792_v25 = vadd.f32 %v2771_v52, %v2752_v63  ;;  %v2531_v40 = vadd.f32 %v7963_v10, %v2483_v29  ;;  %v2548_v63 = vmul.f32 0.2, %v2532_v26  ;;  %vm2540_vm12 = vcmp.ge.f32.partialorder %v2532_v26, 0.0 }
 0x66a   : > { %v2814_v53 = vpack.c.bf16 %v2792_v25, %v2791_v6  ;;  %3407 = vperm.xlu0 %6595, %v3253_v20   ;;  %v3054_v20 = vld [vmem:[#allocation4 + $0x18] sm:$0xff]  ;;  %v2547_v8 = vmul.f32 0.2, %v2531_v40  ;;  %vm2539_vm13 = vcmp.ge.f32.partialorder %v2531_v40, 0.0  ;;  %v2556_v52 = vsel %vm2540_vm12, %v2532_v26, %v2548_v63 }
 0x66b   : > { %v3090_v63 = vld [vmem:[#allocation5 + $0x38] sm:$0xff] }
 0x66c   : > { %6213 = vmatprep.subr.bf16.mxu0 %v2814_v53  ;;  %v2732_v28 = vpop.permute.xlu1 %2731  ;;  %v2555_v10 = vsel %vm2539_vm13, %v2531_v40, %v2547_v8  ;;  %v6661_v33 = vpop.eup %6660  ;;  %v6625_v40 = vld [vmem:[%s9096_s2 + $0x38] sm:$0xff]  }
 0x66d   : > { %6214 = vmatpush3.bf16.msra.mxu0 %v2814_v53  ;;  %v2753_v42 = vmul.f32 %v2732_v28, %v2705_v36  ;;  %v9220_v36 = vld [vmem:[#allocation25_spill] sm:$0xff] }
 0x66e   : > { %3326 = vperm.xlu0 %6595, %v7986_v24  }
 0x66f   : > { %v2793_v32 = vadd.f32 %v7784_v30, %v2753_v42  ;;  %v3070_v30 = vmul.f32 0.03125, %v3054_v20  ;;  %v9222_v42 = vld [vmem:[#allocation15_spill] sm:$0xff]  ;;  %v3122_v20 = vmul.f32 %v7954_v41, %v7954_v41 }
 0x670   : > { %v2694_v16 = vpop.permute.xlu1 %2693  ;;  %v3092_v41 = vld [vmem:[#allocation5 + $0x48] sm:$0xff] }
 0x671   : > { %v2707_v53 = vsub.f32 %v2555_v10, %v2694_v16  ;;  %v3118_v2 = vmul.f32 %v3070_v30, %v3070_v30  ;;  %v6619_v16 = vld [vmem:[%s9096_s2 + $0x8] sm:$0xff]  }
 0x672   : > { %3417 = vperm.xlu0 %6595, %v3255_v7  }
 0x673   : > { %v3134_v7 = vsub.f32 %v3102_v43, %v3118_v2  ;;  %v3108_v43 = vmul.f32 0.03125, %v3092_v41  ;;  %v3124_v2 = vmul.f32 %v7965_v22, %v7965_v22 }
 0x674   : > { %v2699_v37 = vpop.permute.xlu1 %2698 }
 0x675   : > { %v2708_v6 = vsub.f32 %v2556_v52, %v2699_v37  ;;  %v3150_v31 = vmax.f32 %v3134_v7, 0.0  ;;  %v3088_v37 = vld [vmem:[#allocation5 + $0x28] sm:$0xff] }
 0x676   : > { %3336 = vperm.xlu0 %6595, %v8009_v1   ;;  %v3104_v45 = vmul.f32 0.03125, %v3088_v37 }
 0x677   : > { %v2756_v11 = vmul.f32 %v7915_v0, %v2708_v6  ;;  %v6620_v0 = vld [vmem:[%s9096_s2 + $0x10] sm:$0xff]   ;;  %v3166_v39 = vadd.f32 1e-05, %v3150_v31 }
 0x678   : > { %v3136_v26 = vsub.f32 %v3104_v45, %v3120_v46  ;;  %v9231_v45 = vld [vmem:[#allocation23_spill] sm:$0xff] }
 0x679   : > { %v2779_v55 = vpop.permute.xlu1 %2778  ;;  %6662 = vrsqrt.f32 %v3166_v39 }
 0x67a   : > { %v2794_v3 = vadd.f32 %v2779_v55, %v2754_v5  ;;  %6612 = vset.pattern.permute.xlu0 %v6906_v48  ;;  %v9223_v55 = vmov 0  }
 0x67b   : > { %3452 = vperm.xlu0 %6612, %v9212_v13  }
 0x67c   : > { %v2815_v15 = vpack.c.bf16 %v2794_v3, %v2793_v32  ;;  %v3152_v3 = vmax.f32 %v3136_v26, 0.0  ;;  %v3224_v26 = vpop.permute.xlu0 %3223 }
 0x67e   : > { %6215 = vmatprep.subr.bf16.mxu0 %v2815_v15  ;;  %v2742_v12 = vpop.permute.xlu1 %2741  ;;  %v3168_v34 = vadd.f32 1e-05, %v3152_v3 }
 0x67f   : > { %6216 = vmatpush3.bf16.msra.mxu0 %v2815_v15  ;;  %3464 = vperm.xlu0 %6612, %v9213_v4   ;;  %v2755_v28 = vmul.f32 %v2742_v12, %v2707_v53  ;;  %v9224_v15 = vld [vmem:[#allocation13_spill] sm:$0xff]  ;;  %v9227_v53 = vld [vmem:[#allocation19_spill] sm:$0xff] }
 0x680   : > { %6664 = vrsqrt.f32 %v3168_v34  ;;  %v9225_v12 = vld [vmem:[#allocation17_spill] sm:$0xff] }
 0x683   : > { %v2783_v25 = vpop.permute.xlu1 %2782  ;;  %3472 = vperm.xlu0 %6612, %v9214_v27   ;;  %v6663_v5 = vpop.eup %6662 }
 0x684   : > { %v2795_v44 = vadd.f32 %v2783_v25, %v2755_v28  ;;  %v9226_v25 = vld [vmem:[#allocation29_spill] sm:$0xff] }
 0x687   : > { %v2787_v38 = vpop.permute.xlu1 %2786  ;;  %3480 = vperm.xlu0 %6612, %v9215_v58  }
 0x688   : > { %v2796_v18 = vadd.f32 %v2787_v38, %v2756_v11  ;;  %v3140_v38 = vsub.f32 %v3108_v43, %v3124_v2 }
 0x68a   : > { %v2816_v51 = vpack.c.bf16 %v2796_v18, %v2795_v44  ;;  %v6665_v8 = vpop.eup %6664  ;;  %v3156_v18 = vmax.f32 %v3140_v38, 0.0 }
 0x68b   : > { %v3198_v54 = vpop.permute.xlu1 %3197  ;;  %3488 = vperm.xlu0 %6612, %v9216_v57  }
 0x68c   : > { %v3244_v56 = vmul.f32 %v6661_v33, %v3198_v54  ;;  %6217 = vmatprep.subr.bf16.mxu0 %v2816_v51  ;;  %v3172_v7 = vadd.f32 1e-05, %v3156_v18  ;;  %v9228_v33 = vld [vmem:[#allocation30_spill] sm:$0xff]  ;;  %v9229_v54 = vld [vmem:[#allocation21_spill] sm:$0xff] }
 0x68d   : > { %6218 = vmatpush3.bf16.msra.mxu0 %v2816_v51  ;;  %v3094_v51 = vld [vmem:[#allocation5 + $0x58] sm:$0xff] }
 0x68e   : > { %3362 = vperm.xlu1 %6592, %v3244_v56   ;;  %v3126_v56 = vmul.f32 %v7978_v19, %v7978_v19  ;;  %v3096_v19 = vld [vmem:[#allocation5 + $0x68] sm:$0xff] }
 0x68f   : > { %3496 = vperm.xlu0 %6612, %v9217_v14   ;;  %v3202_v29 = vpop.permute.xlu1 %3201  ;;  %v3112_v46 = vmul.f32 0.03125, %v3096_v19 }
 0x690   : > { %6220 = vmatmul.mubr.msk.bf16.vlgmr.msra.gmra.mrb[0].mxu0 %vm2929_vm5, %v6619_v16  ;;  %v3246_v32 = vmul.f32 %v6663_v5, %v3202_v29 }
 0x691   : > { %6223 = vmatprep.mubr.msk.bf16.mxu0 %vm2929_vm5, %v6620_v0 }
 0x692   : > { %3276 = vperm.xlu1 %6592, %v3070_v30  }
 0x693   : > { %3504 = vperm.xlu0 %6612, %v9218_v17   ;;  %v3206_v30 = vpop.permute.xlu1 %3205 }
 0x694   : > { %v3248_v61 = vmul.f32 %v6665_v8, %v3206_v30  ;;  %v3098_v30 = vld [vmem:[#allocation5 + $0x78] sm:$0xff] }
 0x696   : > { %6593 = vset.pattern.permute.xlu1 %v6906_v48 }
 0x697   : > { %3456 = vperm.xlu1 %6593, %v9219_v62   ;;  %3508 = vperm.xlu0 %6612, %v9220_v36   ;;  %v3210_v11 = vpop.permute.xlu1 %3209 }
 0x698   : > { %6224 = vmatmul.mubr.msk.bf16.gmra.mrb[4].mxu0 %vm2929_vm5, %v6621_v21 }
 0x699   : > { %6227 = vmatprep.mubr.msk.bf16.mxu0 %vm2929_vm5, %v6622_v60 }
 0x69b   : > { %6594 = vset.pattern.permute.xlu1 %v9221_v49  ;;  %v3214_v22 = vpop.permute.xlu1 %3213 }
 0x69c   : > { %2834 = vperm.xlu1 %6594, %v9222_v42  }
 0x69f   : > { %v3218_v0 = vpop.permute.xlu1 %3217 }
 0x6a0   : > { %6228 = vmatmul.mubr.msk.bf16.gmra.mrb[8].mxu0 %vm2929_vm5, %v6623_v50  ;;  %6596 = vset.pattern.permute.xlu1 %v9223_v55  ;;  %v3128_v50 = vmul.f32 %v7986_v24, %v7986_v24 }
 0x6a1   : > { %3367 = vperm.xlu1 %6596, %v7927_v59   ;;  %6231 = vmatprep.mubr.msk.bf16.mxu0 %vm2929_vm5, %v6624_v35  ;;  %v3106_v59 = vmul.f32 0.03125, %v3090_v63  ;;  %v3097_v63 = vld [vmem:[#allocation5 + $0x70] sm:$0xff] }
 0x6a2   : > { %v3144_v5 = vsub.f32 %v3112_v46, %v3128_v50 }
 0x6a3   : > { %v3138_v52 = vsub.f32 %v3106_v59, %v3122_v20  ;;  %v3222_v23 = vpop.permute.xlu1 %3221  ;;  %v8105_v20 = vpop.permute.xlu0 %2818 }
 0x6a5   : > { %3372 = vperm.xlu1 %6596, %v3246_v32   ;;  %v3154_v6 = vmax.f32 %v3138_v52, 0.0  ;;  %v3065_v32 = vld [vmem:[#allocation4 + $0x70] sm:$0xff] }
 0x6a6   : > { %v3081_v34 = vmul.f32 0.03125, %v3065_v32 }
 0x6a7   : > { %v3170_v10 = vadd.f32 1e-05, %v3154_v6  ;;  %v8090_v37 = vpop.permute.xlu1 %3225  ;;  %v8111_v6 = vpop.permute.xlu0 %2838 }
 0x6a8   : > { %6232 = vmatmul.mubr.msk.bf16.gmra.mrb[12].mxu0 %vm2929_vm5, %v6625_v40  ;;  %v3160_v40 = vmax.f32 %v3144_v5, 0.0  ;;  %v3129_v8 = vmul.f32 %v3081_v34, %v3081_v34 }
 0x6a9   : > { %3286 = vperm.xlu1 %6596, %v3072_v47   ;;  %6666 = vrsqrt.f32 %v3170_v10  ;;  %v9230_v47 = vld [vmem:[#allocation31_spill] sm:$0xff]  ;;  %v3114_v10 = vmul.f32 0.03125, %v3098_v30 }
 0x6aa   : > { %6668 = vrsqrt.f32 %v3172_v7  ;;  %v3176_v24 = vadd.f32 1e-05, %v3160_v40 }
 0x6ab   : > { %v8120_v43 = vpop.permute.xlu0 %3266 }
 0x6ad   : > { %6597 = vset.pattern.permute.xlu1 %v6906_v48 }
 0x6ae   : > { %3460 = vperm.xlu1 %6597, %v9224_v15  }
 0x6b2   : > { %6598 = vset.pattern.permute.xlu1 %v9221_v49 }
 0x6b3   : > { %2842 = vperm.xlu1 %6598, %v9225_v12   ;;  %v6667_v28 = vpop.eup %6666 }
 0x6b4   : > { %v3250_v44 = vmul.f32 %v6667_v28, %v3210_v11  ;;  %v6669_v16 = vpop.eup %6668 }
 0x6b5   : > { %v3252_v39 = vmul.f32 %v6669_v16, %v3214_v22 }
 0x6b7   : > { %2846 = vperm.xlu1 %6598, %v9215_v58  }
 0x6bb   : > { %6599 = vset.pattern.permute.xlu1 %v9223_v55 }
 0x6bc   : > { %3382 = vperm.xlu1 %6599, %v3248_v61  }
 0x6c0   : > { %3291 = vperm.xlu1 %6599, %v9226_v25   ;;  %v3130_v25 = vmul.f32 %v8009_v1, %v8009_v1 }
 0x6c4   : > { %6600 = vset.pattern.permute.xlu1 %v6906_v48 }
 0x6c5   : > { %3468 = vperm.xlu1 %6600, %v9222_v42   ;;  %v8125_v18 = vpop.permute.xlu0 %3357 }
 0x6c9   : > { %6601 = vset.pattern.permute.xlu1 %v9221_v49 }
 0x6ca   : > { %2851 = vperm.xlu1 %6601, %v9227_v53  }
 0x6ce   : > { %2856 = vperm.xlu1 %6601, %v9216_v57   ;;  %v3110_v57 = vmul.f32 0.03125, %v3094_v51 }
 0x6d0   : > { %v3142_v31 = vsub.f32 %v3110_v57, %v3126_v56 }
 0x6d2   : > { %6602 = vset.pattern.permute.xlu1 %v9223_v55  ;;  %v3158_v21 = vmax.f32 %v3142_v31, 0.0 }
 0x6d3   : > { %3392 = vperm.xlu1 %6602, %v3250_v44   ;;  %v9232_v44 = vld [vmem:[#allocation26_spill] sm:$0xff] }
 0x6d4   : > { %v3174_v60 = vadd.f32 1e-05, %v3158_v21 }
 0x6d6   : > { %6670 = vrsqrt.f32 %v3174_v60 }
 0x6d7   : > { %3301 = vperm.xlu1 %6602, %v9228_v33   ;;  %6672 = vrsqrt.f32 %v3176_v24 }
 0x6db   : > { %6603 = vset.pattern.permute.xlu1 %v6906_v48 }
 0x6dc   : > { %3476 = vperm.xlu1 %6603, %v9225_v12  }
 0x6e0   : > { %6604 = vset.pattern.permute.xlu1 %v9221_v49  ;;  %v6671_v35 = vpop.eup %6670 }
 0x6e1   : > { %2861 = vperm.xlu1 %6604, %v9229_v54   ;;  %v3254_v3 = vmul.f32 %v6671_v35, %v3218_v0  ;;  %v6673_v11 = vpop.eup %6672  ;;  %v6908_v35 = vmov 1.0|1.0  }
 0x6e2   : > { %v3256_v1 = vmul.f32 %v6673_v11, %v3222_v23  ;;  %6382 = vmatprep.subr.bf16.mxu0 %v6908_v35 }
 0x6e3   : > { %6383 = vmatpush3.bf16.msra.mxu0 %v6908_v35 }
 0x6e4   : > { %6384 = vmatprep.subr.bf16.mxu0 %v6908_v35 }
 0x6e5   : > { %2866 = vperm.xlu1 %6604, %v9217_v14   ;;  %v8094_v14 = vpop.permute.xlu1 %2822 }
 0x6e7   : > { %6385 = vmatpush3.bf16.msra.mxu0 %v6908_v35 }
 0x6e9   : > { %6605 = vset.pattern.permute.xlu1 %v9223_v55  ;;  %v8100_v29 = vpop.permute.xlu1 %3261 }
 0x6ea   : > { %3402 = vperm.xlu1 %6605, %v3252_v39  }
 0x6ed   : > { %v8103_v59 = vpop.permute.xlu1 %2826 }
 0x6ee   : > { %3311 = vperm.xlu1 %6605, %v9230_v47  }
 0x6f1   : > { %v8108_v52 = vpop.permute.xlu1 %2830 }
 0x6f2   : > { %6606 = vset.pattern.permute.xlu1 %v6906_v48 }
 0x6f3   : > { %3484 = vperm.xlu1 %6606, %v9227_v53  }
 0x6f7   : > { %6607 = vset.pattern.permute.xlu1 %v9221_v49 }
 0x6f8   : > { %2871 = vperm.xlu1 %6607, %v9231_v45  }
 0x6fc   : > { %2876 = vperm.xlu1 %6607, %v9218_v17   ;;  %v3113_v17 = vmul.f32 0.03125, %v3097_v63 }
 0x6fe   : > { %v3145_v61 = vsub.f32 %v3113_v17, %v3129_v8 }
 0x700   : > { %6608 = vset.pattern.permute.xlu1 %v9223_v55  ;;  %v3161_v41 = vmax.f32 %v3145_v61, 0.0 }
 0x701   : > { %3412 = vperm.xlu1 %6608, %v3254_v3  }
 0x702   : > { %v3177_v2 = vadd.f32 1e-05, %v3161_v41 }
 0x704   : > { %6674 = vrsqrt.f32 %v3177_v2 }
 0x705   : > { %3321 = vperm.xlu1 %6608, %v7939_v9   ;;  %v3146_v9 = vsub.f32 %v3114_v10, %v3130_v25 }
 0x707   : > { %v3162_v38 = vmax.f32 %v3146_v9, 0.0 }
 0x709   : > { %6609 = vset.pattern.permute.xlu1 %v6906_v48  ;;  %v3178_v33 = vadd.f32 1e-05, %v3162_v38 }
 0x70a   : > { %3492 = vperm.xlu1 %6609, %v9229_v54  }
 0x70b   : > { %6676 = vrsqrt.f32 %v3178_v33 }
 0x70d   : > { %v8116_v53 = vpop.permute.xlu1 %3362 }
 0x70e   : > { %6610 = vset.pattern.permute.xlu1 %v9221_v49  ;;  %v6675_v51 = vpop.eup %6674 }
 0x70f   : > { %2881 = vperm.xlu1 %6610, %v9220_v36   ;;  %v8130_v36 = vpop.permute.xlu0 %3271  ;;  %v3257_v57 = vmul.f32 %v6675_v51, %v3224_v26 }
 0x711   : > { %v8122_v28 = vpop.permute.xlu1 %3276 }
 0x713   : > { %2886 = vperm.xlu1 %6610, %v9232_v44   ;;  %v8134_v22 = vpop.permute.xlu0 %3281 }
 0x715   : > { %v6677_v16 = vpop.eup %6676 }
 0x716   : > { %v8127_v7 = vpop.permute.xlu1 %3456  ;;  %v3258_v0 = vmul.f32 %v6677_v16, %v8090_v37 }
 0x717   : > { %6611 = vset.pattern.permute.xlu1 %v9223_v55  ;;  %v8143_v31 = vpop.permute.xlu0 %3377 }
 0x718   : > { %3422 = vperm.xlu1 %6611, %v3256_v1  }
 0x71b   : > { %v8132_v49 = vpop.permute.xlu1 %2834  ;;  %v8148_v21 = vpop.permute.xlu0 %3296 }
 0x71c   : > { %3331 = vperm.xlu1 %6611, %v3081_v34  }
 0x71f   : > { %v8152_v60 = vpop.permute.xlu0 %3387 }
 0x720   : > { %6613 = vset.pattern.permute.xlu1 %v6906_v48  ;;  %v8137_v54 = vpop.permute.xlu1 %3367 }
 0x721   : > { %3500 = vperm.xlu1 %6613, %v9231_v45  }
 0x723   : > { %v8159_v37 = vpop.permute.xlu0 %3306 }
 0x724   : > { %v8140_v56 = vpop.permute.xlu1 %3372 }
 0x725   : > { %6614 = vset.pattern.permute.xlu1 %v9223_v55  ;;  %v6626_v55 = vld [vmem:[%s9097_s3] sm:$0xff]  }
 0x726   : > { %3427 = vperm.xlu1 %6614, %v3257_v57   ;;  %6251 = vmatprep.mubr.bf16.mxu1 %v6626_v55 }
 0x727   : > { %v8163_v46 = vpop.permute.xlu0 %3397 }
 0x728   : > { %v8146_v39 = vpop.permute.xlu1 %3286 }
 0x72a   : > { %3432 = vperm.xlu1 %6614, %v3258_v0  }
 0x72b   : > { %v8170_v5 = vpop.permute.xlu0 %3316 }
 0x72d   : > { %v3461_v23 = vpop.permute.xlu1 %3460 }
 0x72e   : > { %6615 = vset.pattern.permute.xlu1 %v6906_v48  ;;  %v6907_v48 = vmov 6  }
 0x72f   : > { %3512 = vperm.xlu1 %6615, %v9232_v44   ;;  %6616 = vset.pattern.permute.xlu0 %v6907_v48 }
 0x730   : > { %3548 = vperm.xlu0 %6616, %v9212_v13  }
 0x732   : > { %v2843_v47 = vpop.permute.xlu1 %2842 }
 0x733   : > { %6617 = vset.pattern.permute.xlu1 %v6907_v48 }
 0x734   : > { %3552 = vperm.xlu1 %6617, %v9219_v62   ;;  %3560 = vperm.xlu0 %6616, %v9213_v4   ;;  %v8181_v62 = vpop.permute.xlu0 %3407 }
 0x736   : > { %v8157_v19 = vpop.permute.xlu1 %2846 }
 0x738   : > { %3556 = vperm.xlu1 %6617, %v9224_v15   ;;  %3568 = vperm.xlu0 %6616, %v9214_v27   ;;  %v8189_v3 = vpop.permute.xlu0 %3326 }
 0x73b   : > { %v8161_v45 = vpop.permute.xlu1 %3382 }
 0x73c   : > { %3564 = vperm.xlu1 %6617, %v9222_v42   ;;  %3576 = vperm.xlu0 %6616, %v9215_v58   ;;  %v8191_v15 = vpop.permute.xlu0 %3417 }
 0x73f   : > { %v8165_v50 = vpop.permute.xlu1 %3291 }
 0x740   : > { %3572 = vperm.xlu1 %6617, %v9225_v12   ;;  %v8195_v34 = vpop.permute.xlu0 %3336 }
 0x744   : > { %v8173_v26 = vpop.permute.xlu1 %3468  ;;  %v3453_v24 = vpop.permute.xlu0 %3452 }
 0x748   : > { %v3465_v61 = vpop.permute.xlu0 %3464 }
 0x749   : > { %v8179_v13 = vpop.permute.xlu1 %2851 }
 0x74d   : > { %v8185_v32 = vpop.permute.xlu1 %2856 }
 0x752   : > { %v3393_v4 = vpop.permute.xlu1 %3392 }
 0x756   : > { %v8193_v40 = vpop.permute.xlu1 %3301 }
 0x75b   : > { %v3477_v63 = vpop.permute.xlu1 %3476 }
 0x760   : > { %v8197_v27 = vpop.permute.xlu1 %2861 }
 0x763   : > { %v6221_v42 = vpop.f32.mrb[0].mxu0 }
 0x764   : > { %v2997_v17 = vadd.f32 %v6221_v42, %v8103_v59  ;;  %v2988_v8 = vpop.f32.mrb[1].mxu0  ;;  %v8200_v58 = vpop.permute.xlu1 %2866 }
 0x765   : > { %v2989_v12 = vadd.f32 %v2988_v8, %v8105_v20  ;;  %v6222_v30 = vpop.f32.mrb[2].mxu0 }
 0x766   : > { %v3341_v10 = vsub.f32 %v2997_v17, %v8130_v36  ;;  %v3000_v25 = vadd.f32 %v6222_v30, %v8108_v52  ;;  %v2991_v41 = vpop.f32.mrb[3].mxu0  ;;  %v3473_v52 = vpop.permute.xlu0 %3472 }
 0x767   : > { %v3339_v9 = vsub.f32 %v2989_v12, %v8100_v29  ;;  %v2992_v2 = vadd.f32 %v2991_v41, %v8094_v14 }
 0x768   : > { %v3437_v11 = vmul.f32 %v8137_v54, %v3341_v10  ;;  %v3342_v59 = vsub.f32 %v3000_v25, %v8122_v28 }
 0x769   : > { %v3340_v38 = vsub.f32 %v2992_v2, %v8120_v43  ;;  %v3435_v44 = vmul.f32 %v8125_v18, %v3339_v9  ;;  %v3403_v20 = vpop.permute.xlu1 %3402 }
 0x76a   : > { %v3438_v1 = vmul.f32 %v8140_v56, %v3342_v59  ;;  %v3517_v51 = vadd.f32 %v3461_v23, %v3437_v11 }
 0x76b   : > { %v3436_v33 = vmul.f32 %v8116_v53, %v3340_v38  ;;  %v6225_v36 = vpop.f32.mrb[4].mxu0  ;;  %v3515_v14 = vadd.f32 %v3453_v24, %v3435_v44 }
 0x76c   : > { %v3518_v57 = vadd.f32 %v3465_v61, %v3438_v1  ;;  %v3013_v29 = vadd.f32 %v6225_v36, %v2843_v47  ;;  %v3004_v16 = vpop.f32.mrb[5].mxu0 }
 0x76d   : > { %v3005_v54 = vadd.f32 %v3004_v16, %v8132_v49  ;;  %v6226_v0 = vpop.f32.mrb[6].mxu0  ;;  %v3312_v28 = vpop.permute.xlu1 %3311  ;;  %v3516_v43 = vadd.f32 %v8127_v7, %v3436_v33 }
 0x76e   : > { %v3540_v55 = vpack.c.bf16 %v3518_v57, %v3517_v51  ;;  %v3345_v18 = vsub.f32 %v3013_v29, %v8165_v50  ;;  %v3016_v56 = vadd.f32 %v6226_v0, %v8157_v19  ;;  %v3007_v48 = vpop.f32.mrb[7].mxu0  ;;  %v3481_v7 = vpop.permute.xlu0 %3480 }
 0x76f   : > { %v3343_v53 = vsub.f32 %v3005_v54, %v8134_v22  ;;  %v3008_v23 = vadd.f32 %v3007_v48, %v8111_v6  ;;  %v3539_v42 = vpack.c.bf16 %v3516_v43, %v3515_v14 }
 0x770   : > { %v3441_v47 = vmul.f32 %v8152_v60, %v3345_v18  ;;  %v3346_v24 = vsub.f32 %v3016_v56, %v8148_v21 }
 0x771   : > { %v3439_v49 = vmul.f32 %v8143_v31, %v3343_v53  ;;  %v3344_v17 = vsub.f32 %v3008_v23, %v8146_v39  ;;  %6235 = vmatprep.subr.bf16.mxu1 %v3539_v42 }
 0x772   : > { %6236 = vmatpush3.bf16.msra.mxu1 %v3539_v42  ;;  %v3485_v50 = vpop.permute.xlu1 %3484  ;;  %v3442_v8 = vmul.f32 %v3393_v4, %v3346_v24  ;;  %v3521_v22 = vadd.f32 %v3477_v63, %v3441_v47 }
 0x773   : > { %v3440_v19 = vmul.f32 %v8161_v45, %v3344_v17  ;;  %v6229_v12 = vpop.f32.mrb[8].mxu0  ;;  %6237 = vmatprep.subr.bf16.mxu1 %v3540_v55  ;;  %v3519_v60 = vadd.f32 %v8173_v26, %v3439_v49  ;;  %v3489_v26 = vpop.permute.xlu0 %3488 }
 0x774   : > { %v3522_v6 = vadd.f32 %v3481_v7, %v3442_v8  ;;  %v3020_v30 = vpop.f32.mrb[9].mxu0 }
 0x775   : > { %v3520_v61 = vadd.f32 %v3473_v52, %v3440_v19  ;;  %v3021_v21 = vadd.f32 %v3020_v30, %v8179_v13  ;;  %v6230_v31 = vpop.f32.mrb[10].mxu0 }
 0x776   : > { %v3542_v10 = vpack.c.bf16 %v3522_v6, %v3521_v22  ;;  %v3023_v39 = vpop.f32.mrb[11].mxu0  ;;  %6238 = vmatpush3.bf16.msra.mxu1 %v3540_v55 }
 0x777   : > { %v3541_v25 = vpack.c.bf16 %v3520_v61, %v3519_v60  ;;  %v3347_v41 = vsub.f32 %v3021_v21, %v8193_v40  ;;  %v3024_v4 = vadd.f32 %v3023_v39, %v8185_v32  ;;  %v2872_v45 = vpop.permute.xlu1 %2871  ;;  %v3029_v32 = vadd.f32 %v6229_v12, %v8197_v27  ;;  %v6627_v61 = vld [vmem:[%s9097_s3 + $0x8] sm:$0xff]   ;;  %v6628_v21 = vld [vmem:[%s9097_s3 + $0x10] sm:$0xff]  }
 0x779   : > { %v3443_v9 = vmul.f32 %v8163_v46, %v3347_v41  ;;  %v3348_v63 = vsub.f32 %v3024_v4, %v8159_v37  ;;  %6239 = vmatprep.subr.bf16.mxu1 %v3541_v25  ;;  %v3032_v46 = vadd.f32 %v6230_v31, %v8200_v58  ;;  %v3349_v37 = vsub.f32 %v3029_v32, %v3312_v28 }
 0x77a   : > { %6240 = vmatpush3.bf16.msra.mxu1 %v3541_v25  ;;  %v6909_v31 = vmov 0.0  }
 0x77b   : > { %v6233_v2 = vpop.f32.mrb[12].mxu0  ;;  %6241 = vmatprep.subr.bf16.mxu1 %v3542_v10  ;;  %v2877_v13 = vpop.permute.xlu1 %2876  ;;  %v3444_v11 = vmul.f32 %v3403_v20, %v3348_v63  ;;  %v3523_v38 = vadd.f32 %v3485_v50, %v3443_v9  ;;  %v3350_v52 = vsub.f32 %v3032_v46, %v8170_v5  ;;  %v3445_v29 = vmul.f32 %v8181_v62, %v3349_v37 }
 0x77c   : > { %v3036_v59 = vpop.f32.mrb[13].mxu0  ;;  %v3497_v20 = vpop.permute.xlu0 %3496  ;;  %2254 = vst.msk [vmem:[#allocation6 + $0x8] sm:$0xff] %vm2252_vm14, %v6909_v31  ;;  %2253 = vst.msk [vmem:[#allocation6] sm:$0xff] %vm2252_vm14, %v6909_v31 }
 0x77d   : > { %v3524_v44 = vadd.f32 %v3489_v26, %v3444_v11  ;;  %v6234_v1 = vpop.f32.mrb[14].mxu0  ;;  %v3037_v18 = vadd.f32 %v3036_v59, %v2872_v45  ;;  %2255 = vst.msk [vmem:[#allocation6 + $0x10] sm:$0xff] %vm2252_vm14, %v6909_v31  ;;  %2256 = vst.msk [vmem:[#allocation6 + $0x18] sm:$0xff] %vm2252_vm14, %v6909_v31 }
 0x77e   : > { %v3039_v33 = vpop.f32.mrb[15].mxu0  ;;  %6242 = vmatpush3.bf16.msra.mxu1 %v3542_v10  ;;  %2257 = vst.msk [vmem:[#allocation6 + $0x20] sm:$0xff] %vm2252_vm14, %v6909_v31  ;;  %2258 = vst.msk [vmem:[#allocation6 + $0x28] sm:$0xff] %vm2252_vm14, %v6909_v31 }
 0x77f   : > { %v3543_v40 = vpack.c.bf16 %v3524_v44, %v3523_v38  ;;  %v3040_v58 = vadd.f32 %v3039_v33, %v2877_v13  ;;  %2259 = vst.msk [vmem:[#allocation6 + $0x30] sm:$0xff] %vm2252_vm14, %v6909_v31  ;;  %2260 = vst.msk [vmem:[#allocation6 + $0x38] sm:$0xff] %vm2252_vm14, %v6909_v31 }
 0x780   : > { %v3413_v36 = vpop.permute.xlu1 %3412  ;;  %v3505_v23 = vpop.permute.xlu0 %3504  ;;  %2261 = vst.msk [vmem:[#allocation7] sm:$0xff] %vm2252_vm14, %v6909_v31  ;;  %2262 = vst.msk [vmem:[#allocation7 + $0x8] sm:$0xff] %vm2252_vm14, %v6909_v31 }
 0x781   : > { %6243 = vmatprep.subr.bf16.mxu1 %v3543_v40  ;;  %v3446_v57 = vmul.f32 %v3413_v36, %v3350_v52  ;;  %v3352_v28 = vsub.f32 %v3040_v58, %v8189_v3  ;;  %2263 = vst.msk [vmem:[#allocation7 + $0x10] sm:$0xff] %vm2252_vm14, %v6909_v31  ;;  %2264 = vst.msk [vmem:[#allocation7 + $0x18] sm:$0xff] %vm2252_vm14, %v6909_v31 }
 0x782   : > { %6244 = vmatpush3.bf16.msra.mxu1 %v3543_v40  ;;  %2265 = vst.msk [vmem:[#allocation7 + $0x20] sm:$0xff] %vm2252_vm14, %v6909_v31  ;;  %2266 = vst.msk [vmem:[#allocation7 + $0x28] sm:$0xff] %vm2252_vm14, %v6909_v31 }
 0x783   : > { %v3526_v14 = vadd.f32 %v3497_v20, %v3446_v57  ;;  %2267 = vst.msk [vmem:[#allocation7 + $0x30] sm:$0xff] %vm2252_vm14, %v6909_v31  ;;  %2268 = vst.msk [vmem:[#allocation7 + $0x38] sm:$0xff] %vm2252_vm14, %v6909_v31 }
 0x784   : > { %v3322_v51 = vpop.permute.xlu1 %3321  ;;  %v3509_v22 = vpop.permute.xlu0 %3508 }
 0x785   : > { %v3351_v56 = vsub.f32 %v3037_v18, %v3322_v51 }
 0x787   : > { %v3447_v53 = vmul.f32 %v8191_v15, %v3351_v56 }
 0x789   : > { %v3493_v16 = vpop.permute.xlu1 %3492 }
 0x78a   : > { %v3525_v54 = vadd.f32 %v3493_v16, %v3445_v29 }
 0x78c   : > { %v3544_v0 = vpack.c.bf16 %v3526_v14, %v3525_v54 }
 0x78e   : > { %6245 = vmatprep.subr.bf16.mxu1 %v3544_v0  ;;  %v2882_v43 = vpop.permute.xlu1 %2881 }
 0x78f   : > { %6246 = vmatpush3.bf16.msra.mxu1 %v3544_v0  ;;  %v3045_v17 = vadd.f32 %v6233_v2, %v2882_v43 }
 0x792   : > { %v2887_v27 = vpop.permute.xlu1 %2886 }
 0x793   : > { %v3048_v7 = vadd.f32 %v6234_v1, %v2887_v27 }
 0x795   : > { %v3354_v12 = vsub.f32 %v3048_v7, %v8195_v34  ;;  %v6629_v34 = vld [vmem:[%s9097_s3 + $0x18] sm:$0xff]  }
 0x796   : > { %v3679_v7 = vld [vmem:[#allocation6 + $0x18] sm:$0xff] }
 0x797   : > { %v3423_v55 = vpop.permute.xlu1 %3422 }
 0x798   : > { %v3448_v48 = vmul.f32 %v3423_v55, %v3352_v28 }
 0x79a   : > { %v3528_v42 = vadd.f32 %v3505_v23, %v3448_v48  ;;  %v3677_v48 = vld [vmem:[#allocation6 + $0x8] sm:$0xff] }
 0x79b   : > { %v3332_v5 = vpop.permute.xlu1 %3331 }
 0x79c   : > { %v3353_v50 = vsub.f32 %v3045_v17, %v3332_v5 }
 0x7a0   : > { %v3501_v62 = vpop.permute.xlu1 %3500 }
 0x7a1   : > { %v3527_v47 = vadd.f32 %v3501_v62, %v3447_v53  ;;  %v3676_v53 = vld [vmem:[#allocation6] sm:$0xff]  ;;  %v3832_v62 = vld [vmem:[#allocation7 + $0x8] sm:$0xff] }
 0x7a3   : > { %v3545_v24 = vpack.c.bf16 %v3528_v42, %v3527_v47 }
 0x7a5   : > { %6247 = vmatprep.subr.bf16.mxu1 %v3545_v24  ;;  %v3428_v49 = vpop.permute.xlu1 %3427 }
 0x7a6   : > { %6248 = vmatpush3.bf16.msra.mxu1 %v3545_v24  ;;  %v3449_v19 = vmul.f32 %v3428_v49, %v3353_v50  ;;  %v3831_v24 = vld [vmem:[#allocation7] sm:$0xff] }
 0x7a8   : > { %v3529_v30 = vadd.f32 %v3509_v22, %v3449_v19  ;;  %v3678_v19 = vld [vmem:[#allocation6 + $0x10] sm:$0xff]  ;;  %v3834_v22 = vld [vmem:[#allocation7 + $0x18] sm:$0xff] }
 0x7a9   : > { %v3433_v8 = vpop.permute.xlu1 %3432 }
 0x7aa   : > { %v3450_v3 = vmul.f32 %v3433_v8, %v3354_v12 }
 0x7ae   : > { %v3513_v6 = vpop.permute.xlu1 %3512 }
 0x7af   : > { %v3530_v15 = vadd.f32 %v3513_v6, %v3450_v3  ;;  %v3549_v10 = vpop.permute.xlu0 %3548 }
 0x7b1   : > { %v3546_v60 = vpack.c.bf16 %v3530_v15, %v3529_v30  ;;  %v3833_v15 = vld [vmem:[#allocation7 + $0x10] sm:$0xff] }
 0x7b3   : > { %6249 = vmatprep.subr.bf16.mxu1 %v3546_v60  ;;  %v3561_v25 = vpop.permute.xlu0 %3560 }
 0x7b4   : > { %6250 = vmatpush3.bf16.msra.mxu1 %v3546_v60 }
 0x7b5   : > { %6386 = vmatprep.subr.bf16.mxu1 %v6908_v35 }
 0x7b7   : > { %6252 = vmatmul.mubr.bf16.vlgmr.msra.gmra.mrb[0].mxu1 %v6627_v61  ;;  %v3569_v38 = vpop.permute.xlu0 %3568 }
 0x7b8   : > { %6255 = vmatprep.mubr.bf16.mxu1 %v6628_v21  ;;  %6387 = vmatpush3.bf16.msra.mxu1 %v6908_v35  ;;  %v3681_v21 = vld [vmem:[#allocation6 + $0x28] sm:$0xff] }
 0x7b9   : > { %6388 = vmatprep.subr.bf16.mxu1 %v6908_v35 }
 0x7bb   : > { %v3577_v29 = vpop.permute.xlu0 %3576 }
 0x7bc   : > { %6389 = vmatpush3.bf16.msra.mxu1 %v6908_v35  ;;  %v3553_v35 = vpop.permute.xlu1 %3552 }
 0x7bf   : > { %6256 = vmatmul.mubr.bf16.gmra.mrb[4].mxu1 %v6629_v34 }
 0x7c0   : > { %v3557_v39 = vpop.permute.xlu1 %3556 }
 0x7c4   : > { %v3565_v9 = vpop.permute.xlu1 %3564 }
 0x7c8   : > { %v3573_v32 = vpop.permute.xlu1 %3572 }
 0x88a   : > { %v6253_v41 = vpop.f32.mrb[0].mxu1 }
 0x88b   : > { %v3646_v4 = vadd.f32 %v6253_v41, %v3557_v39  ;;  %v3637_v45 = vpop.f32.mrb[1].mxu1 }
 0x88c   : > { %v3638_v63 = vadd.f32 %v3637_v45, %v3549_v10  ;;  %v6254_v26 = vpop.f32.mrb[2].mxu1  ;;  %v3835_v45 = vld [vmem:[#allocation7 + $0x20] sm:$0xff] }
 0x88d   : > { %v3640_v2 = vpop.f32.mrb[3].mxu1  ;;  %v3649_v11 = vadd.f32 %v6254_v26, %v3561_v25  ;;  %v3670_v44 = vmax.f32 %v3646_v4, 0.0  ;;  %v3836_v25 = vld [vmem:[#allocation7 + $0x28] sm:$0xff]  ;;  %v3683_v26 = vld [vmem:[#allocation6 + $0x38] sm:$0xff] }
 0x88e   : > { %v3668_v13 = vmax.f32 %v3638_v63, 0.0  ;;  %v3641_v59 = vadd.f32 %v3640_v2, %v3553_v35  ;;  %v3680_v35 = vld [vmem:[#allocation6 + $0x20] sm:$0xff] }
 0x88f   : > { %v3671_v40 = vmax.f32 %v3649_v11, 0.0  ;;  %v3841_v37 = vmul.f32 %v3670_v44, %v3670_v44  ;;  %v3682_v11 = vld [vmem:[#allocation6 + $0x30] sm:$0xff] }
 0x890   : > { %v3839_v1 = vmul.f32 %v3668_v13, %v3668_v13  ;;  %v3669_v33 = vmax.f32 %v3641_v59, 0.0  ;;  %6267 = vmatprep.mubr.msk.f32.mxu0 %vm3684_vm15, %v3668_v13 }
 0x891   : > { %v3842_v14 = vmul.f32 %v3671_v40, %v3671_v40 }
 0x892   : > { %v3840_v46 = vmul.f32 %v3669_v33, %v3669_v33  ;;  %v6257_v36 = vpop.f32.mrb[4].mxu1  ;;  %6268 = vmatmul.mubr.msk.f32.vlgmr.msra.gmra.mrb[16].mxu0 %vm3684_vm15, %v3669_v33  ;;  %6287 = vmatprep.mubr.msk.f32.mxu1 %vm3684_vm15, %v3839_v1 }
 0x893   : > { %v3662_v52 = vadd.f32 %v6257_v36, %v3573_v32  ;;  %v3653_v51 = vpop.f32.mrb[5].mxu1  ;;  %6270 = vmatprep.mubr.msk.f32.mxu0 %vm3684_vm15, %v3670_v44  ;;  %v3838_v44 = vld [vmem:[#allocation7 + $0x38] sm:$0xff] }
 0x894   : > { %v3654_v57 = vadd.f32 %v3653_v51, %v3565_v9  ;;  %v6258_v20 = vpop.f32.mrb[6].mxu1  ;;  %6288 = vmatmul.mubr.msk.f32.vlgmr.msra.gmra.mrb[8].mxu1 %vm3684_vm15, %v3840_v46 }
 0x895   : > { %v3656_v16 = vpop.f32.mrb[7].mxu1  ;;  %6290 = vmatprep.mubr.msk.f32.mxu1 %vm3684_vm15, %v3841_v37  ;;  %v3665_v0 = vadd.f32 %v6258_v20, %v3577_v29  ;;  %v3674_v27 = vmax.f32 %v3662_v52, 0.0 }
 0x896   : > { %v3672_v54 = vmax.f32 %v3654_v57, 0.0  ;;  %v3657_v43 = vadd.f32 %v3656_v16, %v3569_v38  ;;  %6271 = vmatmul.mubr.msk.f32.gmra.mrb[18].mxu0 %vm3684_vm15, %v3671_v40  ;;  %v3837_v40 = vld [vmem:[#allocation7 + $0x30] sm:$0xff] }
 0x897   : > { %v3675_v18 = vmax.f32 %v3665_v0, 0.0  ;;  %v3845_v28 = vmul.f32 %v3674_v27, %v3674_v27 }
 0x898   : > { %v3843_v58 = vmul.f32 %v3672_v54, %v3672_v54  ;;  %v3673_v55 = vmax.f32 %v3657_v43, 0.0  ;;  %6273 = vmatprep.mubr.msk.f32.mxu0 %vm3684_vm15, %v3672_v54  ;;  %6291 = vmatmul.mubr.msk.f32.gmra.mrb[10].mxu1 %vm3684_vm15, %v3842_v14 }
 0x899   : > { %v3846_v5 = vmul.f32 %v3675_v18, %v3675_v18 }
 0x89a   : > { %v3844_v56 = vmul.f32 %v3673_v55, %v3673_v55  ;;  %6274 = vmatmul.mubr.msk.f32.gmra.mrb[20].mxu0 %vm3684_vm15, %v3673_v55  ;;  %6293 = vmatprep.mubr.msk.f32.mxu1 %vm3684_vm15, %v3843_v58 }
 0x89b   : > { %6276 = vmatprep.mubr.msk.f32.mxu0 %vm3684_vm15, %v3674_v27 }
 0x89c   : > { %6294 = vmatmul.mubr.msk.f32.gmra.mrb[12].mxu1 %vm3684_vm15, %v3844_v56 }
 0x89d   : > { %6296 = vmatprep.mubr.msk.f32.mxu1 %vm3684_vm15, %v3845_v28 }
 0x89e   : > { %6277 = vmatmul.mubr.msk.f32.gmra.mrb[22].mxu0 %vm3684_vm15, %v3675_v18 }
 0x8a0   : > { %6297 = vmatmul.mubr.msk.f32.gmra.mrb[14].mxu1 %vm3684_vm15, %v3846_v5 }
 0x965   : > { %v6269_v23 = vpop.f32.mrb[16].mxu0 }
 0x966   : > { %v3815_v42 = vadd.f32 %v6269_v23, %v3677_v48  ;;  %v3775_v47 = vpop.f32.mrb[17].mxu0 }
 0x967   : > { %v3814_v49 = vadd.f32 %v3775_v47, %v3676_v53  ;;  %v6289_v17 = vpop.f32.mrb[8].mxu1 }
 0x968   : > { %3824 = vst.msk [vmem:[#allocation6 + $0x8] sm:$0xff] %vm2252_vm14, %v3815_v42  ;;  %v3977_v50 = vadd.f32 %v6289_v17, %v3832_v62  ;;  %v3937_v8 = vpop.f32.mrb[9].mxu1 }
 0x969   : > { %3823 = vst.msk [vmem:[#allocation6] sm:$0xff] %vm2252_vm14, %v3814_v49  ;;  %v3976_v12 = vadd.f32 %v3937_v8, %v3831_v24  ;;  %v6272_v3 = vpop.f32.mrb[18].mxu0 }
 0x96a   : > { %3985 = vst.msk [vmem:[#allocation7 + $0x8] sm:$0xff] %vm2252_vm14, %v3977_v50  ;;  %v3817_v6 = vadd.f32 %v6272_v3, %v3679_v7  ;;  %v3785_v30 = vpop.f32.mrb[19].mxu0 }
 0x96b   : > { %3984 = vst.msk [vmem:[#allocation7] sm:$0xff] %vm2252_vm14, %v3976_v12  ;;  %v3816_v60 = vadd.f32 %v3785_v30, %v3678_v19  ;;  %v6292_v61 = vpop.f32.mrb[10].mxu1 }
 0x96c   : > { %3826 = vst.msk [vmem:[#allocation6 + $0x18] sm:$0xff] %vm2252_vm14, %v3817_v6  ;;  %v3979_v34 = vadd.f32 %v6292_v61, %v3834_v22  ;;  %v3947_v31 = vpop.f32.mrb[11].mxu1 }
 0x96d   : > { %3825 = vst.msk [vmem:[#allocation6 + $0x10] sm:$0xff] %vm2252_vm14, %v3816_v60  ;;  %v3978_v10 = vadd.f32 %v3947_v31, %v3833_v15  ;;  %v6275_v39 = vpop.f32.mrb[20].mxu0 }
 0x96e   : > { %3987 = vst.msk [vmem:[#allocation7 + $0x18] sm:$0xff] %vm2252_vm14, %v3979_v34  ;;  %v3819_v41 = vadd.f32 %v6275_v39, %v3681_v21  ;;  %v3795_v4 = vpop.f32.mrb[21].mxu0 }
 0x96f   : > { %3986 = vst.msk [vmem:[#allocation7 + $0x10] sm:$0xff] %vm2252_vm14, %v3978_v10  ;;  %v3818_v9 = vadd.f32 %v3795_v4, %v3680_v35  ;;  %v6295_v63 = vpop.f32.mrb[12].mxu1 }
 0x970   : > { %3828 = vst.msk [vmem:[#allocation6 + $0x28] sm:$0xff] %vm2252_vm14, %v3819_v41  ;;  %v3981_v2 = vadd.f32 %v6295_v63, %v3836_v25  ;;  %v3957_v13 = vpop.f32.mrb[13].mxu1 }
 0x971   : > { %3827 = vst.msk [vmem:[#allocation6 + $0x20] sm:$0xff] %vm2252_vm14, %v3818_v9  ;;  %v3980_v59 = vadd.f32 %v3957_v13, %v3835_v45  ;;  %v6278_v38 = vpop.f32.mrb[22].mxu0 }
 0x972   : > { %3989 = vst.msk [vmem:[#allocation7 + $0x28] sm:$0xff] %vm2252_vm14, %v3981_v2  ;;  %v3821_v1 = vadd.f32 %v6278_v38, %v3683_v26  ;;  %v3805_v33 = vpop.f32.mrb[23].mxu0 }
 0x973   : > { %3988 = vst.msk [vmem:[#allocation7 + $0x20] sm:$0xff] %vm2252_vm14, %v3980_v59  ;;  %v3820_v32 = vadd.f32 %v3805_v33, %v3682_v11  ;;  %v6298_v46 = vpop.f32.mrb[14].mxu1 }
 0x974   : > { %3830 = vst.msk [vmem:[#allocation6 + $0x38] sm:$0xff] %vm2252_vm14, %v3821_v1  ;;  %v3983_v36 = vadd.f32 %v6298_v46, %v3838_v44  ;;  %v3967_v37 = vpop.f32.mrb[15].mxu1 }
 0x975   : > { %3829 = vst.msk [vmem:[#allocation6 + $0x30] sm:$0xff] %vm2252_vm14, %v3820_v32  ;;  %v3982_v52 = vadd.f32 %v3967_v37, %v3837_v40 }
 0x976   : > { %3991 = vst.msk [vmem:[#allocation7 + $0x38] sm:$0xff] %vm2252_vm14, %v3983_v36 }
 0x977   : > { %3990 = vst.msk [vmem:[#allocation7 + $0x30] sm:$0xff] %vm2252_vm14, %v3982_v52 }
 0x978 PF: > { %p5899_p7 = scmp.ne.s32.totalorder %s6877_s21, 3 }
 0x97a   : > { %3995 = sbr.rel (%p5899_p7) target bundleno = 3553 (0xde1), region = 72 }
 0x981   : > { %s6910_s15 = smov 127   ;;  %v9233_v51 = vld [vmem:[#allocation13_spill] sm:$0xff]  ;;  %v9234_v57 = vld [vmem:[#allocation11_spill] sm:$0xff]  ;;  %v6911_v20 = vmov 1   ;;  %v9161_v29 = vmov 0   ;;  %v9235_v16 = vld [vmem:[#allocation14_spill] sm:$0xff] }
 0x982   : > { %4360 = vrot.lane.b32.xlu1 %v9233_v51, %s6910_s15  ;;  %4356 = vrot.lane.b32.xlu0 %v9234_v57, %s6910_s15  ;;  %v9236_v14 = vld [vmem:[#allocation12_spill] sm:$0xff]  ;;  %v9238_v0 = vld [vmem:[#allocation15_spill] sm:$0xff]  ;;  %v9239_v43 = vld [vmem:[#allocation18_spill] sm:$0xff]  ;;  %v6913_v28 = vmov 2   ;;  %v9159_v48 = vmov 3   ;;  %s6915_s12 = smov 124  }
 0x983   : > { %6680 = vset.pattern.permute.xlu0 %v6911_v20  ;;  %6678 = vset.pattern.permute.xlu1 %v9161_v29  ;;  %v9237_v54 = vld [vmem:[#allocation16_spill] sm:$0xff]  ;;  %v9240_v27 = vld [vmem:[#allocation17_spill] sm:$0xff]  ;;  %v3996_v18 = vld [vmem:[%s9095_s1] sm:$0xff]  ;;  %vm4656_vm0 = vcmask 523264   ;;  %s6917_s9 = smov 121   ;;  %vm6921_vm9 = vmmov 0  }
 0x984   : > { %v3997_v58 = vld [vmem:[%s9095_s1 + $0x8] sm:$0xff]  ;;  %v3999_v55 = vld [vmem:[%s9095_s1 + $0x18] sm:$0xff]  ;;  %v8322_v56 = vld [vmem:[%s9095_s1 + $0x30] sm:$0xff]  ;;  %vm5728_vm10 = vcmask 253952  }
 0x985   : > { %v3998_v5 = vld [vmem:[%s9095_s1 + $0x10] sm:$0xff]  ;;  %v4001_v53 = vld [vmem:[%s9095_s1 + $0x28] sm:$0xff]  ;;  %v8340_v23 = vld [vmem:[%s9095_s1 + $0x38] sm:$0xff] }
 0x986   : > { %4362 = vrot.lane.b32.xlu1 %v9235_v16, %s6910_s15  ;;  %4358 = vrot.lane.b32.xlu0 %v9236_v14, %s6910_s15  ;;  %v4000_v62 = vld [vmem:[%s9095_s1 + $0x20] sm:$0xff]  ;;  %v4287_v24 = vld [vmem:[#allocation2 + $0x18] sm:$0xff]  ;;  %v4289_v8 = vld [vmem:[#allocation2 + $0x28] sm:$0xff] }
 0x987   : > { %v4284_v42 = vld [vmem:[#allocation2] sm:$0xff]  ;;  %v8360_v49 = vmul.f32 0.03125, %v4287_v24  ;;  %v4303_v17 = vld [vmem:[#allocation3 + $0x18] sm:$0xff]  ;;  %v4285_v12 = vld [vmem:[#allocation2 + $0x8] sm:$0xff]  ;;  %v8367_v22 = vmul.f32 0.03125, %v4289_v8 }
 0x988   : > { %v4292_v47 = vmul.f32 0.03125, %v4284_v42  ;;  %v4311_v7 = vmul.f32 0.03125, %v4303_v17  ;;  %v4300_v19 = vld [vmem:[#allocation3] sm:$0xff]  ;;  %v4305_v6 = vld [vmem:[#allocation3 + $0x28] sm:$0xff]  ;;  %v4291_v30 = vld [vmem:[#allocation2 + $0x38] sm:$0xff]  ;;  %v4293_v61 = vmul.f32 0.03125, %v4285_v12 }
 0x989   : > { %v4319_v50 = vmul.f32 %v8360_v49, %v8360_v49  ;;  %v4308_v15 = vmul.f32 0.03125, %v4300_v19  ;;  %v4301_v21 = vld [vmem:[#allocation3 + $0x8] sm:$0xff]  ;;  %v4313_v31 = vmul.f32 0.03125, %v4305_v6  ;;  %v4321_v35 = vmul.f32 %v8367_v22, %v8367_v22  ;;  %v4307_v39 = vld [vmem:[#allocation3 + $0x38] sm:$0xff]  ;;  %v4286_v37 = vld [vmem:[#allocation2 + $0x10] sm:$0xff] }
 0x98a   : > { %4366 = vrot.lane.b32.xlu1 %v9237_v54, %s6910_s15  ;;  %4364 = vrot.lane.b32.xlu0 %v9238_v0, %s6910_s15  ;;  %v4316_v60 = vmul.f32 %v4292_v47, %v4292_v47  ;;  %v8373_v10 = vmul.f32 0.03125, %v4291_v30  ;;  %v4309_v41 = vmul.f32 0.03125, %v4301_v21  ;;  %v4317_v4 = vmul.f32 %v4293_v61, %v4293_v61  ;;  %v4304_v21 = vld [vmem:[#allocation3 + $0x20] sm:$0xff] }
 0x98b   : > { %v4327_v3 = vsub.f32 %v4311_v7, %v4319_v50  ;;  %v4329_v9 = vsub.f32 %v4313_v31, %v4321_v35  ;;  %v4315_v63 = vmul.f32 0.03125, %v4307_v39  ;;  %v4312_v31 = vmul.f32 0.03125, %v4304_v21 }
 0x98c   : > { %v4324_v25 = vsub.f32 %v4308_v15, %v4316_v60  ;;  %v4323_v26 = vmul.f32 %v8373_v10, %v8373_v10  ;;  %v4325_v13 = vsub.f32 %v4309_v41, %v4317_v4 }
 0x98d   : > { %v4335_v34 = vmax.f32 %v4327_v3, 0.0  ;;  %v4337_v11 = vmax.f32 %v4329_v9, 0.0 }
 0x98e   : > { %4370 = vrot.lane.b32.xlu1 %v9239_v43, %s6910_s15  ;;  %4368 = vrot.lane.b32.xlu0 %v9240_v27, %s6910_s15  ;;  %v4332_v2 = vmax.f32 %v4324_v25, 0.0  ;;  %v4331_v59 = vsub.f32 %v4315_v63, %v4323_v26  ;;  %v4333_v44 = vmax.f32 %v4325_v13, 0.0  ;;  %v9241_v26 = vld [vmem:[#allocation19_spill] sm:$0xff] }
 0x98f   : > { %v4343_v45 = vadd.f32 1e-05, %v4335_v34  ;;  %v4345_v1 = vadd.f32 1e-05, %v4337_v11 }
 0x990   : > { %v4340_v38 = vadd.f32 1e-05, %v4332_v2  ;;  %v4339_v33 = vmax.f32 %v4331_v59, 0.0  ;;  %v4341_v40 = vadd.f32 1e-05, %v4333_v44  ;;  %v4290_v2 = vld [vmem:[#allocation2 + $0x30] sm:$0xff] }
 0x991   : > { %6765 = vrsqrt.f32 %v4343_v45  ;;  %v4298_v44 = vmul.f32 0.03125, %v4290_v2 }
 0x992   : > { %4061 = vperm.xlu0 %6680, %v3997_v58   ;;  %4011 = vperm.xlu1 %6678, %v3997_v58   ;;  %6767 = vrsqrt.f32 %v4340_v38  ;;  %v4347_v46 = vadd.f32 1e-05, %v4339_v33  ;;  %v9242_v38 = vld [vmem:[#allocation21_spill] sm:$0xff]  ;;  %v9243_v33 = vld [vmem:[#allocation23_spill] sm:$0xff] }
 0x993   : > { %6769 = vrsqrt.f32 %v4345_v1  ;;  %v4306_v1 = vld [vmem:[#allocation3 + $0x30] sm:$0xff] }
 0x994   : > { %6771 = vrsqrt.f32 %v4341_v40 }
 0x995   : > { %6773 = vrsqrt.f32 %v4347_v46  ;;  %v4314_v46 = vmul.f32 0.03125, %v4306_v1  ;;  %v4044_v1 = vlaneseq }
 0x996   : > { %4069 = vperm.xlu0 %6680, %v3999_v55   ;;  %6679 = vset.pattern.permute.xlu1 %v6911_v20 }
 0x997   : > { %4057 = vperm.xlu1 %6679, %v3996_v18  }
 0x99a   : > { %4081 = vperm.xlu0 %6680, %v8322_v56  }
 0x99b   : > { %6681 = vset.pattern.permute.xlu1 %v6913_v28  ;;  %v6766_v36 = vpop.eup %6765 }
 0x99c   : > { %4109 = vperm.xlu1 %6681, %v3996_v18   ;;  %v6768_v42 = vpop.eup %6767 }
 0x99e   : > { %6692 = vset.pattern.permute.xlu0 %v9159_v48 }
 0x99f   : > { %4169 = vperm.xlu0 %6692, %v3998_v5  }
 0x9a0   : > { %4113 = vperm.xlu1 %6681, %v3997_v58  }
 0x9a3   : > { %4181 = vperm.xlu0 %6692, %v4001_v53  }
 0x9a4   : > { %6682 = vset.pattern.permute.xlu1 %v9161_v29 }
 0x9a5   : > { %4021 = vperm.xlu1 %6682, %v3999_v55  }
 0x9a7   : > { %4185 = vperm.xlu0 %6692, %v8322_v56  }
 0x9a9   : > { %6683 = vset.pattern.permute.xlu1 %v6911_v20 }
 0x9aa   : > { %4065 = vperm.xlu1 %6683, %v3998_v5  }
 0x9ab   : > { %6697 = vset.pattern.permute.xlu0 %v6913_v28 }
 0x9ac   : > { %4117 = vperm.xlu0 %6697, %v3998_v5  }
 0x9ae   : > { %6684 = vset.pattern.permute.xlu1 %v9159_v48 }
 0x9af   : > { %4161 = vperm.xlu1 %6684, %v3996_v18  }
 0x9b0   : > { %4137 = vperm.xlu0 %6697, %v8340_v23  }
 0x9b3   : > { %4165 = vperm.xlu1 %6684, %v3997_v58  }
 0x9b4   : > { %4485 = vperm.xlu0 %6697, %v9234_v57  }
 0x9b7   : > { %6685 = vset.pattern.permute.xlu1 %v6913_v28 }
 0x9b8   : > { %4493 = vperm.xlu0 %6697, %v9233_v51   ;;  %4121 = vperm.xlu1 %6685, %v3999_v55  }
 0x9bc   : > { %4501 = vperm.xlu0 %6697, %v9238_v0   ;;  %6686 = vset.pattern.permute.xlu1 %v9161_v29 }
 0x9bd   : > { %4026 = vperm.xlu1 %6686, %v4000_v62  }
 0x9c0   : > { %6704 = vset.pattern.permute.xlu0 %v9161_v29 }
 0x9c1   : > { %4006 = vperm.xlu0 %6704, %v3996_v18   ;;  %6687 = vset.pattern.permute.xlu1 %v6911_v20 }
 0x9c2   : > { %4073 = vperm.xlu1 %6687, %v4000_v62  }
 0x9c5   : > { %4016 = vperm.xlu0 %6704, %v3998_v5  }
 0x9c6   : > { %4077 = vperm.xlu1 %6687, %v4001_v53  }
 0x9c9   : > { %4031 = vperm.xlu0 %6704, %v4001_v53  }
 0x9ca   : > { %6688 = vset.pattern.permute.xlu1 %v9159_v48 }
 0x9cb   : > { %4173 = vperm.xlu1 %6688, %v3999_v55   ;;  %v4294_v55 = vmul.f32 0.03125, %v4286_v37  ;;  %v9244_v37 = vld [vmem:[#allocation25_spill] sm:$0xff] }
 0x9cd   : > { %4219 = vperm.xlu0 %6704, %v9236_v14   ;;  %v4318_v17 = vmul.f32 %v4294_v55, %v4294_v55 }
 0x9cf   : > { %6689 = vset.pattern.permute.xlu1 %v9161_v29 }
 0x9d0   : > { %4214 = vperm.xlu1 %6689, %v9234_v57  }
 0x9d1   : > { %4036 = vperm.xlu0 %6704, %v8322_v56  }
 0x9d4   : > { %6690 = vset.pattern.permute.xlu1 %v6913_v28 }
 0x9d5   : > { %4390 = vperm.xlu0 %6704, %v4292_v47   ;;  %4125 = vperm.xlu1 %6690, %v4000_v62   ;;  %v6770_v47 = vpop.eup %6769 }
 0x9d6   : > { %v6772_v50 = vpop.eup %6771 }
 0x9d9   : > { %4129 = vperm.xlu1 %6690, %v4001_v53   ;;  %4239 = vperm.xlu0 %6704, %v9237_v54   ;;  %v4302_v53 = vld [vmem:[#allocation3 + $0x10] sm:$0xff] }
 0x9da   : > { %v4310_v24 = vmul.f32 0.03125, %v4302_v53 }
 0x9dc   : > { %v4326_v3 = vsub.f32 %v4310_v24, %v4318_v17 }
 0x9dd   : > { %6691 = vset.pattern.permute.xlu1 %v9161_v29 }
 0x9de   : > { %4041 = vperm.xlu1 %6691, %v8340_v23   ;;  %v4334_v15 = vmax.f32 %v4326_v3, 0.0 }
 0x9e2   : > { %6693 = vset.pattern.permute.xlu1 %v6911_v20  ;;  %v4288_v20 = vld [vmem:[#allocation2 + $0x20] sm:$0xff] }
 0x9e3   : > { %4085 = vperm.xlu1 %6693, %v8340_v23   ;;  %v4296_v18 = vmul.f32 0.03125, %v4288_v20 }
 0x9e5   : > { %v4320_v35 = vmul.f32 %v4296_v18, %v4296_v18 }
 0x9e7   : > { %6694 = vset.pattern.permute.xlu1 %v9159_v48  ;;  %v4328_v41 = vsub.f32 %v4312_v31, %v4320_v35 }
 0x9e8   : > { %4177 = vperm.xlu1 %6694, %v4000_v62  }
 0x9e9   : > { %v4336_v9 = vmax.f32 %v4328_v41, 0.0 }
 0x9eb   : > { %v4344_v11 = vadd.f32 1e-05, %v4336_v9  ;;  %v9249_v9 = vld [vmem:[#allocation20_spill] sm:$0xff] }
 0x9ec   : > { %6695 = vset.pattern.permute.xlu1 %v9161_v29 }
 0x9ed   : > { %4224 = vperm.xlu1 %6695, %v9233_v51  }
 0x9f1   : > { %4229 = vperm.xlu1 %6695, %v9235_v16  }
 0x9f4   : > { %v8381_v32 = vpop.permute.xlu1 %4360  ;;  %v4357_v5 = vpop.permute.xlu0 %4356 }
 0x9f5   : > { %4395 = vperm.xlu1 %6695, %v4293_v61   ;;  %v4380_v7 = vmul.f32 %v6768_v42, %v4357_v5  ;;  %v4342_v61 = vadd.f32 1e-05, %v4334_v15 }
 0x9f7   : > { %6775 = vrsqrt.f32 %v4342_v61 }
 0x9f8   : > { %v4363_v52 = vpop.permute.xlu1 %4362  ;;  %v4359_v19 = vpop.permute.xlu0 %4358  ;;  %6777 = vrsqrt.f32 %v4344_v11  ;;  %v9250_v11 = vld [vmem:[#allocation22_spill] sm:$0xff] }
 0x9f9   : > { %v4383_v58 = vmul.f32 %v6766_v36, %v4363_v52  ;;  %6696 = vset.pattern.permute.xlu1 %v6913_v28  ;;  %v4381_v6 = vmul.f32 %v6772_v50, %v4359_v19  ;;  %v4322_v36 = vmul.f32 %v4298_v44, %v4298_v44  ;;  %v4779_v50 = vld [vmem:[#allocation4 + $0x8] sm:$0xff] }
 0x9fa   : > { %4133 = vperm.xlu1 %6696, %v8322_v56   ;;  %v6774_v56 = vpop.eup %6773 }
 0x9fb   : > { %4453 = vperm.xlu0 %6704, %v4383_v58   ;;  %v4330_v52 = vsub.f32 %v4314_v46, %v4322_v36  ;;  %v9251_v46 = vld [vmem:[#allocation24_spill] sm:$0xff]  ;;  %v4810_v36 = vld [vmem:[#allocation5] sm:$0xff] }
 0x9fc   : > { %v4367_v62 = vpop.permute.xlu1 %4366  ;;  %v4365_v60 = vpop.permute.xlu0 %4364 }
 0x9fd   : > { %v4385_v8 = vmul.f32 %v6770_v47, %v4367_v62 }
 0x9fe   : > { %6698 = vset.pattern.permute.xlu1 %v9159_v48 }
 0x9ff   : > { %4410 = vperm.xlu0 %6704, %v4296_v18   ;;  %4189 = vperm.xlu1 %6698, %v8340_v23   ;;  %v4338_v18 = vmax.f32 %v4330_v52, 0.0  ;;  %v4780_v52 = vld [vmem:[#allocation4 + $0x10] sm:$0xff] }
 0xa00   : > { %v4371_v12 = vpop.permute.xlu1 %4370  ;;  %v8392_v23 = vpop.permute.xlu0 %4368 }
 0xa01   : > { %v4387_v30 = vmul.f32 %v6774_v56, %v4371_v12  ;;  %v6776_v45 = vpop.eup %6775  ;;  %v4346_v42 = vadd.f32 1e-05, %v4338_v18 }
 0xa03   : > { %4463 = vperm.xlu0 %6704, %v4385_v8   ;;  %6699 = vset.pattern.permute.xlu1 %v9161_v29  ;;  %6779 = vrsqrt.f32 %v4346_v42  ;;  %v8459_v8 = vmul.f32 0.03125, %v4779_v50  ;;  %v4826_v42 = vmul.f32 0.03125, %v4810_v36 }
 0xa04   : > { %4438 = vperm.xlu1 %6699, %v4380_v7  }
 0xa05   : > { %9247 = vst [vmem:[#allocation34_spill] sm:$0xff] %v8459_v8 }
 0xa07   : > { %4473 = vperm.xlu0 %6704, %v4387_v30  }
 0xa08   : > { %4443 = vperm.xlu1 %6699, %v4381_v6  }
 0xa0b   : > { %4922 = vrot.lane.b32.xlu0 %v9234_v57, %s6915_s12 }
 0xa0c   : > { %4234 = vperm.xlu1 %6699, %v9238_v0   ;;  %6708 = vset.pattern.permute.xlu0 %v9159_v48 }
 0xa0f   : > { %4926 = vrot.lane.b32.xlu0 %v9233_v51, %s6915_s12 }
 0xa10   : > { %4400 = vperm.xlu1 %6699, %v4294_v55   ;;  %v6778_v55 = vpop.eup %6777 }
 0xa11   : > { %v8396_v34 = vpop.permute.xlu1 %4011  ;;  %v8400_v39 = vpop.permute.xlu0 %4061  ;;  %v4384_v53 = vmul.f32 %v6778_v55, %v4365_v60 }
 0xa12   : > { %v6780_v19 = vpop.eup %6779 }
 0xa13   : > { %4930 = vrot.lane.b32.xlu0 %v9238_v0, %s6915_s12  ;;  %v4386_v12 = vmul.f32 %v6780_v19, %v8392_v23  ;;  %v8522_v19 = vmul.f32 0.03125, %v4780_v52 }
 0xa14   : > { %4405 = vperm.xlu1 %6699, %v8360_v49   ;;  %v4382_v49 = vmul.f32 %v6776_v45, %v8381_v32 }
 0xa15   : > { %v8407_v4 = vpop.permute.xlu0 %4069  ;;  %v4844_v0 = vmul.f32 %v8522_v19, %v8522_v19 }
 0xa16   : > { %v8403_v25 = vpop.permute.xlu1 %4057 }
 0xa17   : > { %4934 = vrot.lane.b32.xlu0 %v9240_v27, %s6915_s12 }
 0xa18   : > { %6700 = vset.pattern.permute.xlu1 %v6913_v28 }
 0xa19   : > { %4489 = vperm.xlu1 %6700, %v9236_v14   ;;  %v8417_v13 = vpop.permute.xlu0 %4081 }
 0xa1b   : > { %v8411_v63 = vpop.permute.xlu1 %4109  ;;  %4938 = vrot.lane.b32.xlu0 %v9241_v26, %s6915_s12 }
 0xa1d   : > { %6701 = vset.pattern.permute.xlu1 %v9161_v29 }
 0xa1e   : > { %4448 = vperm.xlu1 %6701, %v4382_v49   ;;  %v8426_v40 = vpop.permute.xlu0 %4169 }
 0xa1f   : > { %v8419_v59 = vpop.permute.xlu1 %4113  ;;  %4942 = vrot.lane.b32.xlu0 %v9242_v38, %s6915_s12 }
 0xa22   : > { %4244 = vperm.xlu1 %6701, %v9240_v27   ;;  %v8435_v58 = vpop.permute.xlu0 %4181 }
 0xa23   : > { %4946 = vrot.lane.b32.xlu0 %v9243_v33, %s6915_s12  ;;  %v4782_v33 = vld [vmem:[#allocation4 + $0x20] sm:$0xff] }
 0xa24   : > { %v8428_v32 = vpop.permute.xlu1 %4021 }
 0xa26   : > { %4249 = vperm.xlu1 %6701, %v9239_v43   ;;  %v8444_v62 = vpop.permute.xlu0 %4185 }
 0xa27   : > { %4950 = vrot.lane.b32.xlu0 %v9244_v37, %s6915_s12  ;;  %9245 = vst [vmem:[#allocation32_spill] sm:$0xff] %v8444_v62  ;;  %v9256_v62 = vmov 3  }
 0xa29   : > { %v8433_v20 = vpop.permute.xlu1 %4065 }
 0xa2a   : > { %4415 = vperm.xlu1 %6701, %v8367_v22  }
 0xa2b   : > { %4545 = vperm.xlu0 %6708, %v9234_v57   ;;  %v8450_v22 = vpop.permute.xlu0 %4117 }
 0xa2e   : > { %6702 = vset.pattern.permute.xlu1 %v6913_v28  ;;  %v8440_v5 = vpop.permute.xlu1 %4161 }
 0xa2f   : > { %4497 = vperm.xlu1 %6702, %v9235_v16   ;;  %4565 = vperm.xlu0 %6708, %v9237_v54   ;;  %v8454_v17 = vpop.permute.xlu0 %4137 }
 0xa30   : > { %9246 = vst [vmem:[#allocation33_spill] sm:$0xff] %v8454_v17 }
 0xa32   : > { %v8446_v47 = vpop.permute.xlu1 %4165 }
 0xa33   : > { %6703 = vset.pattern.permute.xlu1 %v9161_v29  ;;  %6715 = vset.pattern.permute.xlu0 %v9161_v29  ;;  %v8467_v3 = vpop.permute.xlu0 %4485 }
 0xa34   : > { %4458 = vperm.xlu1 %6703, %v4384_v53   ;;  %4993 = vperm.xlu0 %6715, %v8459_v8  }
 0xa37   : > { %v8452_v24 = vpop.permute.xlu1 %4121  ;;  %v8472_v6 = vpop.permute.xlu0 %4493 }
 0xa38   : > { %4420 = vperm.xlu1 %6703, %v4298_v44   ;;  %v4778_v44 = vld [vmem:[#allocation4] sm:$0xff] }
 0xa39   : > { %v4794_v53 = vmul.f32 0.03125, %v4778_v44 }
 0xa3b   : > { %v8478_v15 = vpop.permute.xlu0 %4501  ;;  %v4842_v50 = vmul.f32 %v4794_v53, %v4794_v53 }
 0xa3c   : > { %4425 = vperm.xlu1 %6703, %v8373_v10   ;;  %v8457_v7 = vpop.permute.xlu1 %4026  ;;  %9248 = vst [vmem:[#allocation35_spill] sm:$0xff] %v8478_v15 }
 0xa3d   : > { %v4858_v26 = vsub.f32 %v4826_v42, %v4842_v50  ;;  %v9254_v42 = vmov 0  }
 0xa40   : > { %6705 = vset.pattern.permute.xlu1 %v6913_v28  ;;  %v4007_v61 = vpop.permute.xlu0 %4006 }
 0xa41   : > { %4505 = vperm.xlu1 %6705, %v9237_v54   ;;  %v8464_v56 = vpop.permute.xlu1 %4073 }
 0xa44   : > { %v8496_v31 = vpop.permute.xlu0 %4016 }
 0xa45   : > { %6706 = vset.pattern.permute.xlu1 %v9161_v29  ;;  %v8470_v10 = vpop.permute.xlu1 %4077 }
 0xa46   : > { %4468 = vperm.xlu1 %6706, %v4386_v12   ;;  %v4045_v12 = vshrl.u32 %v4044_v1, 7  ;;  %v8535_v1 = vmul.f32 0.03125, %v4782_v33 }
 0xa48   : > { %v8504_v41 = vpop.permute.xlu0 %4031  ;;  %v4046_v44 = vsub.s32 0, %v4045_v12  ;;  %v4090_v52 = vsub.s32 1, %v4045_v12 }
 0xa4a   : > { %6707 = vset.pattern.permute.xlu1 %v6913_v28  ;;  %v8475_v30 = vpop.permute.xlu1 %4173  ;;  %v6753_v28 = vld [vmem:[%s9096_s2] sm:$0xff]  }
 0xa4b   : > { %4509 = vperm.xlu1 %6707, %v9240_v27   ;;  %6307 = vmatprep.mubr.msk.bf16.mxu0 %vm4656_vm0, %v6753_v28  ;;  %v9252_v28 = vld [vmem:[#allocation26_spill] sm:$0xff] }
 0xa4c   : > { %v8510_v49 = vpop.permute.xlu0 %4219 }
 0xa4f   : > { %4513 = vperm.xlu1 %6707, %v9239_v43   ;;  %v8481_v60 = vpop.permute.xlu1 %4214 }
 0xa50   : > { %v8518_v55 = vpop.permute.xlu0 %4036 }
 0xa53   : > { %4924 = vrot.lane.b32.xlu1 %v9236_v14, %s6915_s12 }
 0xa54   : > { %v8485_v23 = vpop.permute.xlu1 %4125  ;;  %6709 = vset.pattern.permute.xlu1 %v9159_v48  ;;  %v4812_v48 = vld [vmem:[#allocation5 + $0x10] sm:$0xff]  ;;  %v8528_v38 = vpop.permute.xlu0 %4390 }
 0xa55   : > { %v4828_v27 = vmul.f32 0.03125, %v4812_v48  ;;  %v4142_v48 = vsub.s32 2, %v4045_v12 }
 0xa57   : > { %4928 = vrot.lane.b32.xlu1 %v9235_v16, %s6915_s12 }
 0xa58   : > { %v8494_v21 = vpop.permute.xlu1 %4129  ;;  %v8537_v37 = vpop.permute.xlu0 %4239 }
 0xa5b   : > { %4932 = vrot.lane.b32.xlu1 %v9237_v54, %s6915_s12 }
 0xa5d   : > { %v8500_v35 = vpop.permute.xlu1 %4041 }
 0xa5f   : > { %4936 = vrot.lane.b32.xlu1 %v9239_v43, %s6915_s12 }
 0xa62   : > { %v8506_v45 = vpop.permute.xlu1 %4085 }
 0xa63   : > { %4940 = vrot.lane.b32.xlu1 %v9249_v9, %s6915_s12  ;;  %v9253_v9 = vld [vmem:[#allocation28_spill] sm:$0xff] }
 0xa64   : > { %v8540_v43 = vrot.slane %v9253_v9, %v4046_v44  ;;  %v8546_v33 = vrot.slane %v9253_v9, %v4090_v52 }
 0xa66   : > { %v4048_v54 = vmul.f32 %v8540_v43, %v4007_v61  ;;  %v4092_v15 = vmul.f32 %v8546_v33, %v8403_v25 }
 0xa67   : > { %v8512_v2 = vpop.permute.xlu1 %4177  ;;  %4944 = vrot.lane.b32.xlu1 %v9250_v11, %s6915_s12  ;;  %v4860_v11 = vsub.f32 %v4828_v27, %v4844_v0 }
 0xa68   : > { %v4100_v61 = vadd.f32 %v4092_v15, %v4048_v54  ;;  %v4093_v15 = vmul.f32 %v8546_v33, %v8400_v39 }
 0xa69   : > { %v4876_v44 = vmax.f32 %v4860_v11, 0.0 }
 0xa6b   : > { %4948 = vrot.lane.b32.xlu1 %v9251_v46, %s6915_s12  ;;  %v4874_v46 = vmax.f32 %v4858_v26, 0.0  ;;  %v4784_v26 = vld [vmem:[#allocation4 + $0x30] sm:$0xff]  ;;  %v4892_v11 = vadd.f32 1e-05, %v4876_v44 }
 0xa6c   : > { %v8520_v18 = vpop.permute.xlu1 %4224  ;;  %v8559_v17 = vmul.f32 0.03125, %v4784_v26 }
 0xa6d   : > { %v4890_v27 = vadd.f32 1e-05, %v4874_v46 }
 0xa6e   : > { %9257 = vst [vmem:[#allocation37_spill] sm:$0xff] %v8559_v17  ;;  %v4848_v54 = vmul.f32 %v8559_v17, %v8559_v17 }
 0xa6f   : > { %4952 = vrot.lane.b32.xlu1 %v9252_v28, %s6915_s12  ;;  %v4814_v28 = vld [vmem:[#allocation5 + $0x20] sm:$0xff]  ;;  %6781 = vrsqrt.f32 %v4890_v27 }
 0xa70   : > { %v8526_v29 = vpop.permute.xlu1 %4229  ;;  %v4830_v50 = vmul.f32 0.03125, %v4814_v28  ;;  %v4194_v28 = vsub.s32 3, %v4045_v12  ;;  %v4786_v27 = vld [vmem:[#allocation4 + $0x40] sm:$0xff]  ;;  %6783 = vrsqrt.f32 %v4892_v11 }
 0xa71   : > { %v8584_v39 = vmul.f32 0.03125, %v4786_v27 }
 0xa72   : > { %v8569_v12 = vrot.slane %v9253_v9, %v4194_v28 }
 0xa73   : > { %4549 = vperm.xlu1 %6709, %v9236_v14   ;;  %v4846_v14 = vmul.f32 %v8535_v1, %v8535_v1  ;;  %9258 = vst [vmem:[#allocation38_spill] sm:$0xff] %v8584_v39 }
 0xa74   : > { %v8533_v36 = vpop.permute.xlu1 %4395 }
 0xa75   : > { %v4862_v52 = vsub.f32 %v4830_v50, %v4846_v14  ;;  %v4049_v50 = vmul.f32 %v8540_v43, %v8396_v34  ;;  %v4197_v34 = vmul.f32 %v8569_v12, %v8446_v47 }
 0xa77   : > { %6710 = vset.pattern.permute.xlu1 %v9254_v42  ;;  %v4101_v17 = vadd.f32 %v4093_v15, %v4049_v50  ;;  %v4788_v50 = vld [vmem:[#allocation4 + $0x50] sm:$0xff] }
 0xa78   : > { %4988 = vperm.xlu1 %6710, %v4794_v53   ;;  %v8556_v53 = vrot.slane %v9253_v9, %v4142_v48  ;;  %v4878_v48 = vmax.f32 %v4862_v52, 0.0 }
 0xa79   : > { %v8549_v57 = vpop.permute.xlu1 %4133 }
 0xa7a   : > { %9255 = vst [vmem:[#allocation36_spill] sm:$0xff] %v8549_v57  ;;  %v8551_v0 = vpop.permute.xlu0 %4453  ;;  %v4816_v57 = vld [vmem:[#allocation5 + $0x30] sm:$0xff]  ;;  %v4144_v25 = vmul.f32 %v8556_v53, %v8411_v63  ;;  %v4145_v63 = vmul.f32 %v8556_v53, %v8419_v59  ;;  %v4894_v28 = vadd.f32 1e-05, %v4878_v48 }
 0xa7b   : > { %v4832_v14 = vmul.f32 0.03125, %v4816_v57  ;;  %v4196_v57 = vmul.f32 %v8569_v12, %v8440_v5  ;;  %v6782_v5 = vpop.eup %6781 }
 0xa7c   : > { %6711 = vset.pattern.permute.xlu1 %v9256_v62  ;;  %v4152_v26 = vadd.f32 %v4144_v25, %v4100_v61  ;;  %v4818_v25 = vld [vmem:[#allocation5 + $0x40] sm:$0xff]  ;;  %6785 = vrsqrt.f32 %v4894_v28  ;;  %v4820_v28 = vld [vmem:[#allocation5 + $0x50] sm:$0xff] }
 0xa7d   : > { %4553 = vperm.xlu1 %6711, %v9233_v51   ;;  %v4864_v52 = vsub.f32 %v4832_v14, %v4848_v54  ;;  %v4153_v51 = vadd.f32 %v4145_v63, %v4101_v17  ;;  %v4834_v14 = vmul.f32 0.03125, %v4818_v25  ;;  %v4850_v54 = vmul.f32 %v8584_v39, %v8584_v39  ;;  %v6784_v17 = vpop.eup %6783 }
 0xa7e   : > { %v8562_v8 = vpop.permute.xlu0 %4410  ;;  %v8564_v46 = vpop.permute.xlu1 %4189  ;;  %v4204_v61 = vadd.f32 %v4196_v57, %v4152_v26 }
 0xa7f   : > { %v4880_v48 = vmax.f32 %v4864_v52, 0.0  ;;  %v4205_v15 = vadd.f32 %v4197_v34, %v4153_v51  ;;  %v4866_v63 = vsub.f32 %v4834_v14, %v4850_v54 }
 0xa80   : > { %v4252_v59 = vadd.f32 %v8481_v60, %v4204_v61  ;;  %v8597_v61 = vmul.f32 0.03125, %v4788_v50 }
 0xa81   : > { %4557 = vperm.xlu1 %6711, %v9235_v16   ;;  %v4253_v26 = vadd.f32 %v8510_v49, %v4205_v15  ;;  %v4896_v60 = vadd.f32 1e-05, %v4880_v48  ;;  %v4882_v49 = vmax.f32 %v4866_v63, 0.0  ;;  %v4836_v15 = vmul.f32 0.03125, %v4820_v28  ;;  %v4790_v48 = vld [vmem:[#allocation4 + $0x60] sm:$0xff] }
 0xa82   : > { %v8578_v44 = vpop.permute.xlu0 %4463  ;;  %v4268_v27 = vmul.f32 0.2, %v4252_v59  ;;  %vm4260_vm1 = vcmp.ge.f32.partialorder %v4252_v59, 0.0  ;;  %9259 = vst [vmem:[#allocation39_spill] sm:$0xff] %v8597_v61  ;;  %v8613_v63 = vmul.f32 0.03125, %v4790_v48  ;;  %v4198_v48 = vmul.f32 %v8569_v12, %v8426_v40 }
 0xa83   : > { %v4439_v9 = vpop.permute.xlu1 %4438  ;;  %v4269_v25 = vmul.f32 0.2, %v4253_v26  ;;  %6787 = vrsqrt.f32 %v4896_v60  ;;  %vm4261_vm2 = vcmp.ge.f32.partialorder %v4253_v26, 0.0 }
 0xa84   : > { %v4276_v39 = vsel %vm4260_vm1, %v4252_v59, %v4268_v27  ;;  %v4094_v59 = vmul.f32 %v8546_v33, %v8433_v20  ;;  %v4146_v20 = vmul.f32 %v8556_v53, %v8450_v22 }
 0xa85   : > { %6712 = vset.pattern.permute.xlu1 %v9254_v42  ;;  %v4428_v50 = vsub.f32 %v4276_v39, %v8528_v38  ;;  %v4277_v27 = vsel %vm4261_vm2, %v4253_v26, %v4269_v25  ;;  %v4051_v38 = vmul.f32 %v8540_v43, %v8428_v32  ;;  %v4785_v26 = vld [vmem:[#allocation4 + $0x38] sm:$0xff]  ;;  %v4147_v25 = vmul.f32 %v8556_v53, %v8452_v24 }
 0xa86   : > { %v8589_v11 = vpop.permute.xlu0 %4473  ;;  %v6786_v14 = vpop.eup %6785  ;;  %v8628_v32 = vmul.f32 0.03125, %v4785_v26 }
 0xa87   : > { %v4444_v62 = vpop.permute.xlu1 %4443  ;;  %v4476_v28 = vmul.f32 %v4439_v9, %v4428_v50 }
 0xa8a   : > { %v4923_v47 = vpop.permute.xlu0 %4922 }
 0xa8b   : > { %v8595_v57 = vpop.permute.xlu1 %4234  ;;  %v4970_v42 = vmul.f32 %v6782_v5, %v4923_v47  ;;  %v4852_v5 = vmul.f32 %v8597_v61, %v8597_v61  ;;  %v4095_v61 = vmul.f32 %v8546_v33, %v8407_v4 }
 0xa8d   : > { %5084 = vperm.xlu0 %6715, %v4970_v42   ;;  %v4050_v42 = vmul.f32 %v8540_v43, %v8496_v31  ;;  %v4868_v60 = vsub.f32 %v4836_v15, %v4852_v5  ;;  %v4822_v31 = vld [vmem:[#allocation5 + $0x60] sm:$0xff]  ;;  %v4854_v15 = vmul.f32 %v8613_v63, %v8613_v63  ;;  %v4516_v5 = vadd.f32 %v8467_v3, %v4476_v28  ;;  %v6788_v22 = vpop.eup %6787  ;;  %v4787_v28 = vld [vmem:[#allocation4 + $0x48] sm:$0xff] }
 0xa8e   : > { %v4927_v52 = vpop.permute.xlu0 %4926 }
 0xa8f   : > { %v8599_v51 = vpop.permute.xlu1 %4400  ;;  %v8601_v34 = vmul.f32 %v6784_v17, %v4927_v52  ;;  %v4898_v17 = vadd.f32 1e-05, %v4882_v49  ;;  %v4102_v39 = vadd.f32 %v4094_v59, %v4050_v42  ;;  %v4838_v49 = vmul.f32 0.03125, %v4822_v31 }
 0xa90   : > { %v8639_v31 = vmul.f32 0.03125, %v4787_v28 }
 0xa91   : > { %4998 = vperm.xlu0 %6715, %v8522_v19   ;;  %v4429_v19 = vsub.f32 %v4277_v27, %v8533_v36  ;;  %6789 = vrsqrt.f32 %v4898_v17  ;;  %v4154_v24 = vadd.f32 %v4146_v20, %v4102_v39  ;;  %v4870_v27 = vsub.f32 %v4838_v49, %v4854_v15 }
 0xa92   : > { %v4931_v54 = vpop.permute.xlu0 %4930  ;;  %v4053_v39 = vmul.f32 %v8540_v43, %v8504_v41  ;;  %v4149_v49 = vmul.f32 %v8556_v53, %v8494_v21  ;;  %v4789_v41 = vld [vmem:[#allocation4 + $0x58] sm:$0xff]  ;;  %v4052_v15 = vmul.f32 %v8540_v43, %v8457_v7  ;;  %v4201_v7 = vmul.f32 %v8569_v12, %v8435_v58 }
 0xa93   : > { %v8611_v47 = vpop.permute.xlu1 %4405  ;;  %v4974_v52 = vmul.f32 %v6786_v14, %v4931_v54  ;;  %v4477_v36 = vmul.f32 %v4444_v62, %v4429_v19  ;;  %v4103_v14 = vadd.f32 %v4095_v61, %v4051_v38  ;;  %v4199_v62 = vmul.f32 %v8569_v12, %v8475_v30 }
 0xa94   : > { %v4886_v30 = vmax.f32 %v4870_v27, 0.0 }
 0xa95   : > { %5008 = vperm.xlu0 %6715, %v8535_v1   ;;  %v4884_v1 = vmax.f32 %v4868_v60, 0.0  ;;  %v4155_v59 = vadd.f32 %v4147_v25, %v4103_v14  ;;  %v4206_v60 = vadd.f32 %v4198_v48, %v4154_v24 }
 0xa96   : > { %v4935_v42 = vpop.permute.xlu0 %4934 }
 0xa97   : > { %v4900_v50 = vadd.f32 1e-05, %v4884_v1  ;;  %v4976_v3 = vmul.f32 %v6788_v22, %v4935_v42  ;;  %v4207_v19 = vadd.f32 %v4199_v62, %v4155_v59  ;;  %v4254_v40 = vadd.f32 %v8520_v18, %v4206_v60 }
 0xa98   : > { %v4490_v9 = vpop.permute.xlu1 %4489  ;;  %v4097_v18 = vmul.f32 %v8546_v33, %v8470_v10  ;;  %v4096_v1 = vmul.f32 %v8546_v33, %v8464_v56  ;;  %v4148_v10 = vmul.f32 %v8556_v53, %v8485_v23  ;;  %v8660_v56 = vmul.f32 0.03125, %v4789_v41  ;;  %v9262_v41 = vld [vmem:[#allocation36_spill] sm:$0xff] }
 0xa99   : > { %v4517_v4 = vadd.f32 %v4490_v9, %v4477_v36  ;;  %5104 = vperm.xlu0 %6715, %v4974_v52   ;;  %v4255_v61 = vadd.f32 %v8526_v29, %v4207_v19  ;;  %6791 = vrsqrt.f32 %v4900_v50  ;;  %v4270_v26 = vmul.f32 0.2, %v4254_v40  ;;  %v4791_v19 = vld [vmem:[#allocation4 + $0x68] sm:$0xff] }
 0xa9a   : > { %v4939_v20 = vpop.permute.xlu0 %4938  ;;  %v4902_v36 = vadd.f32 1e-05, %v4886_v30  ;;  %vm4262_vm3 = vcmp.ge.f32.partialorder %v4254_v40, 0.0  ;;  %v4104_v24 = vadd.f32 %v4096_v1, %v4052_v15  ;;  %v4200_v23 = vmul.f32 %v8569_v12, %v8512_v2  ;;  %v9261_v1 = vld [vmem:[#allocation33_spill] sm:$0xff] }
 0xa9b   : > { %v4540_v54 = vpack.c.bf16 %v4517_v4, %v4516_v5  ;;  %v6790_v38 = vpop.eup %6789  ;;  %v4271_v25 = vmul.f32 0.2, %v4255_v61  ;;  %vm4263_vm4 = vcmp.ge.f32.partialorder %v4255_v61, 0.0  ;;  %v4105_v4 = vadd.f32 %v4097_v18, %v4053_v39 }
 0xa9c   : > { %v4978_v9 = vmul.f32 %v6790_v38, %v4939_v20  ;;  %v4278_v5 = vsel %vm4262_vm3, %v4254_v40, %v4270_v26  ;;  %6793 = vrsqrt.f32 %v4902_v36  ;;  %v4156_v50 = vadd.f32 %v4148_v10, %v4104_v24  ;;  %v4811_v20 = vld [vmem:[#allocation5 + $0x8] sm:$0xff]  ;;  %v4793_v10 = vld [vmem:[#allocation4 + $0x78] sm:$0xff] }
 0xa9d   : > { %6299 = vmatprep.subr.bf16.mxu0 %v4540_v54  ;;  %v4449_v17 = vpop.permute.xlu1 %4448  ;;  %5023 = vperm.xlu0 %6715, %v8628_v32   ;;  %v4279_v22 = vsel %vm4263_vm4, %v4255_v61, %v4271_v25  ;;  %v4430_v48 = vsub.f32 %v4278_v5, %v8599_v51  ;;  %v4157_v42 = vadd.f32 %v4149_v49, %v4105_v4  ;;  %v8670_v2 = vmul.f32 0.03125, %v4791_v19  ;;  %v9265_v19 = vld [vmem:[#allocation11_spill] sm:$0xff] }
 0xa9e   : > { %6300 = vmatpush3.bf16.msra.mxu0 %v4540_v54  ;;  %v4431_v14 = vsub.f32 %v4279_v22, %v8611_v47  ;;  %v4943_v54 = vpop.permute.xlu0 %4942  ;;  %v4098_v39 = vmul.f32 %v8546_v33, %v8417_v13  ;;  %v4827_v18 = vmul.f32 0.03125, %v4811_v20  ;;  %v4150_v15 = vmul.f32 %v8556_v53, %v9262_v41  ;;  %v9266_v20 = vld [vmem:[#allocation16_spill] sm:$0xff] }
 0xa9f   : > { %v4478_v59 = vmul.f32 %v4449_v17, %v4430_v48  ;;  %v4209_v27 = vadd.f32 %v4201_v7, %v4157_v42  ;;  %v9263_v7 = vld [vmem:[#allocation32_spill] sm:$0xff] }
 0xaa0   : > { %v4479_v51 = vmul.f32 %v8551_v0, %v4431_v14  ;;  %v4202_v24 = vmul.f32 %v8569_v12, %v9263_v7  ;;  %v9272_v7 = vld [vmem:[#allocation25_spill] sm:$0xff] }
 0xaa1   : > { %v8637_v52 = vpop.permute.xlu1 %4244  ;;  %5114 = vperm.xlu0 %6715, %v4976_v3   ;;  %v4208_v3 = vadd.f32 %v4200_v23, %v4156_v50  ;;  %v4518_v28 = vadd.f32 %v8472_v6, %v4478_v59  ;;  %v4257_v30 = vadd.f32 %v8537_v37, %v4209_v27  ;;  %v4054_v6 = vmul.f32 %v8540_v43, %v8518_v55 }
 0xaa2   : > { %v4947_v0 = vpop.permute.xlu0 %4946  ;;  %v4055_v37 = vmul.f32 %v8540_v43, %v8500_v35  ;;  %v4151_v55 = vmul.f32 %v8556_v53, %v9261_v1  ;;  %v4203_v43 = vmul.f32 %v8569_v12, %v8564_v46 }
 0xaa3   : > { %v6792_v21 = vpop.eup %6791  ;;  %v4256_v40 = vadd.f32 %v8595_v57, %v4208_v3  ;;  %v4099_v57 = vmul.f32 %v8546_v33, %v8506_v45  ;;  %v4273_v36 = vmul.f32 0.2, %v4257_v30  ;;  %vm4265_vm6 = vcmp.ge.f32.partialorder %v4257_v30, 0.0 }
 0xaa4   : > { %v4980_v47 = vmul.f32 %v6792_v21, %v4943_v54  ;;  %v4106_v45 = vadd.f32 %v4098_v39, %v4054_v6  ;;  %v8692_v21 = vmul.f32 0.03125, %v4793_v10  ;;  %v6916_v3 = vmov 5  }
 0xaa5   : > { %v8645_v29 = vpop.permute.xlu1 %4249  ;;  %5033 = vperm.xlu0 %6715, %v8639_v31   ;;  %v4272_v26 = vmul.f32 0.2, %v4256_v40  ;;  %vm4264_vm5 = vcmp.ge.f32.partialorder %v4256_v40, 0.0  ;;  %v4107_v33 = vadd.f32 %v4099_v57, %v4055_v37  ;;  %v4281_v35 = vsel %vm4265_vm6, %v4257_v30, %v4273_v36  ;;  %v4813_v30 = vld [vmem:[#allocation5 + $0x18] sm:$0xff] }
 0xaa6   : > { %v6794_v17 = vpop.eup %6793  ;;  %v4158_v42 = vadd.f32 %v4150_v15, %v4106_v45  ;;  %v4829_v6 = vmul.f32 0.03125, %v4813_v30  ;;  %v9267_v36 = vld [vmem:[#allocation18_spill] sm:$0xff] }
 0xaa7   : > { %v4982_v25 = vmul.f32 %v6794_v17, %v4947_v0  ;;  %v4280_v4 = vsel %vm4264_vm5, %v4256_v40, %v4272_v26  ;;  %v4159_v53 = vadd.f32 %v4151_v55, %v4107_v33  ;;  %v4781_v40 = vld [vmem:[#allocation4 + $0x18] sm:$0xff]  ;;  %v9268_v33 = vld [vmem:[#allocation20_spill] sm:$0xff] }
 0xaa8   : > { %v4432_v48 = vsub.f32 %v4280_v4, %v8562_v8  ;;  %v4210_v50 = vadd.f32 %v4202_v24, %v4158_v42  ;;  %v9264_v8 = vld [vmem:[#allocation35_spill] sm:$0xff]  ;;  %v9269_v4 = vld [vmem:[#allocation22_spill] sm:$0xff]  ;;  %v9273_v42 = vmov 3  }
 0xaa9   : > { %v8658_v62 = vpop.permute.xlu1 %4415  ;;  %5124 = vperm.xlu0 %6715, %v4978_v9   ;;  %v9260_v9 = vld [vmem:[#allocation34_spill] sm:$0xff]  ;;  %v4211_v54 = vadd.f32 %v4203_v43, %v4159_v53  ;;  %v9270_v43 = vld [vmem:[#allocation24_spill] sm:$0xff] }
 0xaaa   : > { %v4843_v13 = vmul.f32 %v9260_v9, %v9260_v9  ;;  %v4433_v22 = vsub.f32 %v4281_v35, %v8658_v62  ;;  %v4258_v12 = vadd.f32 %v8637_v52, %v4210_v50  ;;  %v6756_v35 = vld [vmem:[%s9096_s2 + $0x18] sm:$0xff]   ;;  %v4815_v24 = vld [vmem:[#allocation5 + $0x28] sm:$0xff] }
 0xaab   : > { %v4259_v62 = vadd.f32 %v8645_v29, %v4211_v54  ;;  %v4797_v29 = vmul.f32 0.03125, %v4781_v40  ;;  %v4831_v53 = vmul.f32 0.03125, %v4815_v24  ;;  %v9274_v54 = vld [vmem:[#allocation15_spill] sm:$0xff]  ;;  %v4849_v40 = vmul.f32 %v8628_v32, %v8628_v32 }
 0xaac   : > { %v4859_v5 = vsub.f32 %v4827_v18, %v4843_v13  ;;  %v4481_v46 = vmul.f32 %v8578_v44, %v4433_v22  ;;  %vm4266_vm8 = vcmp.ge.f32.partialorder %v4258_v12, 0.0  ;;  %v6757_v22 = vld [vmem:[%s9096_s2 + $0x20] sm:$0xff]   ;;  %v4819_v32 = vld [vmem:[#allocation5 + $0x48] sm:$0xff] }
 0xaad   : > { %5043 = vperm.xlu0 %6715, %v8660_v56   ;;  %vm4267_vm7 = vcmp.ge.f32.partialorder %v4259_v62, 0.0  ;;  %v4845_v57 = vmul.f32 %v4797_v29, %v4797_v29 }
 0xaae   : > { %v4498_v60 = vpop.permute.xlu1 %4497  ;;  %v4875_v59 = vmax.f32 %v4859_v5, 0.0  ;;  %v4783_v5 = vld [vmem:[#allocation4 + $0x28] sm:$0xff] }
 0xaaf   : > { %v4519_v58 = vadd.f32 %v4498_v60, %v4479_v51  ;;  %v4861_v13 = vsub.f32 %v4829_v6, %v4845_v57  ;;  %v9279_v57 = vld [vmem:[#allocation19_spill] sm:$0xff] }
 0xab0   : > { %v4891_v60 = vadd.f32 1e-05, %v4875_v59  ;;  %v6758_v59 = vld [vmem:[%s9096_s2 + $0x28] sm:$0xff]  }
 0xab1   : > { %v4541_v61 = vpack.c.bf16 %v4519_v58, %v4518_v28  ;;  %5134 = vperm.xlu0 %6715, %v4980_v47   ;;  %v4275_v58 = vmul.f32 0.2, %v4259_v62  ;;  %v4877_v15 = vmax.f32 %v4861_v13, 0.0 }
 0xab2   : > { %6795 = vrsqrt.f32 %v4891_v60 }
 0xab3   : > { %6301 = vmatprep.subr.bf16.mxu0 %v4541_v61  ;;  %v4459_v38 = vpop.permute.xlu1 %4458  ;;  %v4283_v17 = vsel %vm4267_vm7, %v4259_v62, %v4275_v58  ;;  %v4893_v10 = vadd.f32 1e-05, %v4877_v15  ;;  %v4817_v58 = vld [vmem:[#allocation5 + $0x38] sm:$0xff] }
 0xab4   : > { %6302 = vmatpush3.bf16.msra.mxu0 %v4541_v61  ;;  %v4480_v23 = vmul.f32 %v4459_v38, %v4432_v48  ;;  %v4274_v61 = vmul.f32 0.2, %v4258_v12  ;;  %v9271_v48 = vld [vmem:[#allocation12_spill] sm:$0xff] }
 0xab5   : > { %5053 = vperm.xlu0 %6715, %v8670_v2   ;;  %6797 = vrsqrt.f32 %v4893_v10  ;;  %v9281_v10 = vld [vmem:[#allocation21_spill] sm:$0xff] }
 0xab6   : > { %v4520_v47 = vadd.f32 %v9264_v8, %v4480_v23  ;;  %v4282_v52 = vsel %vm4266_vm8, %v4258_v12, %v4274_v61  ;;  %v9275_v8 = vmov 0   ;;  %v6760_v12 = vld [vmem:[%s9096_s2 + $0x38] sm:$0xff]  }
 0xab7   : > { %v4421_v49 = vpop.permute.xlu1 %4420 }
 0xab8   : > { %v4434_v39 = vsub.f32 %v4282_v52, %v4421_v49  ;;  %v6754_v49 = vld [vmem:[%s9096_s2 + $0x8] sm:$0xff]  }
 0xab9   : > { %5144 = vperm.xlu0 %6715, %v4982_v25  }
 0xabb   : > { %v4426_v14 = vpop.permute.xlu1 %4425 }
 0xabc   : > { %v4435_v0 = vsub.f32 %v4283_v17, %v4426_v14  ;;  %v6796_v1 = vpop.eup %6795  ;;  %v4799_v14 = vmul.f32 0.03125, %v4783_v5  ;;  %v4853_v5 = vmul.f32 %v8660_v56, %v8660_v56 }
 0xabd   : > { %5063 = vperm.xlu0 %6715, %v8692_v21  }
 0xabe   : > { %v4483_v25 = vmul.f32 %v8589_v11, %v4435_v0  ;;  %v6755_v11 = vld [vmem:[%s9096_s2 + $0x10] sm:$0xff]   ;;  %v4847_v23 = vmul.f32 %v4799_v14, %v4799_v14 }
 0xabf   : > { %v6798_v50 = vpop.eup %6797 }
 0xac0   : > { %v4506_v51 = vpop.permute.xlu1 %4505 }
 0xac1   : > { %v4521_v27 = vadd.f32 %v4506_v51, %v4481_v46  ;;  %6732 = vset.pattern.permute.xlu0 %v6916_v3  ;;  %v6759_v46 = vld [vmem:[%s9096_s2 + $0x30] sm:$0xff]   ;;  %v4863_v51 = vsub.f32 %v4831_v53, %v4847_v23 }
 0xac2   : > { %5179 = vperm.xlu0 %6732, %v9265_v19  }
 0xac3   : > { %v4542_v28 = vpack.c.bf16 %v4521_v27, %v4520_v47  ;;  %v4879_v27 = vmax.f32 %v4863_v51, 0.0 }
 0xac5   : > { %6303 = vmatprep.subr.bf16.mxu0 %v4542_v28  ;;  %v4469_v44 = vpop.permute.xlu1 %4468  ;;  %v4895_v60 = vadd.f32 1e-05, %v4879_v27 }
 0xac6   : > { %6304 = vmatpush3.bf16.msra.mxu0 %v4542_v28  ;;  %5191 = vperm.xlu0 %6732, %v9235_v16   ;;  %v4482_v26 = vmul.f32 %v4469_v44, %v4434_v39  ;;  %v9276_v28 = vld [vmem:[#allocation13_spill] sm:$0xff]  ;;  %v8754_v39 = vpop.permute.xlu0 %4950 }
 0xac7   : > { %6799 = vrsqrt.f32 %v4895_v60  ;;  %v9277_v44 = vld [vmem:[#allocation17_spill] sm:$0xff]  ;;  %v9283_v60 = vld [vmem:[#allocation23_spill] sm:$0xff] }
 0xaca   : > { %v4510_v38 = vpop.permute.xlu1 %4509  ;;  %5199 = vperm.xlu0 %6732, %v9266_v20   ;;  %v8758_v6 = vpop.permute.xlu0 %4545 }
 0xacb   : > { %v4522_v18 = vadd.f32 %v4510_v38, %v4482_v26  ;;  %v9278_v38 = vld [vmem:[#allocation37_spill] sm:$0xff]  ;;  %v4835_v26 = vmul.f32 0.03125, %v4819_v32  ;;  %v4824_v32 = vld [vmem:[#allocation5 + $0x70] sm:$0xff] }
 0xace   : > { %v4514_v37 = vpop.permute.xlu1 %4513  ;;  %5207 = vperm.xlu0 %6732, %v9267_v36  }
 0xacf   : > { %v4523_v9 = vadd.f32 %v4514_v37, %v4483_v25  ;;  %v4851_v25 = vmul.f32 %v8639_v31, %v8639_v31 }
 0xad1   : > { %v4543_v55 = vpack.c.bf16 %v4523_v9, %v4522_v18  ;;  %v6800_v61 = vpop.eup %6799  ;;  %v8765_v9 = vpop.permute.xlu0 %4565  ;;  %v4867_v13 = vsub.f32 %v4835_v26, %v4851_v25 }
 0xad2   : > { %v4925_v45 = vpop.permute.xlu1 %4924  ;;  %5215 = vperm.xlu0 %6732, %v9268_v33  }
 0xad3   : > { %v4971_v41 = vmul.f32 %v6796_v1, %v4925_v45  ;;  %6305 = vmatprep.subr.bf16.mxu0 %v4543_v55 }
 0xad4   : > { %6306 = vmatpush3.bf16.msra.mxu0 %v4543_v55  ;;  %v4883_v55 = vmax.f32 %v4867_v13, 0.0 }
 0xad5   : > { %5089 = vperm.xlu1 %6712, %v4971_v41   ;;  %v8768_v45 = vpop.permute.xlu0 %4993 }
 0xad6   : > { %5223 = vperm.xlu0 %6732, %v9269_v4   ;;  %v4929_v62 = vpop.permute.xlu1 %4928  ;;  %v4899_v41 = vadd.f32 1e-05, %v4883_v55 }
 0xad7   : > { %6308 = vmatmul.mubr.msk.bf16.vlgmr.msra.gmra.mrb[0].mxu0 %vm4656_vm0, %v6754_v49  ;;  %v4973_v47 = vmul.f32 %v6798_v50, %v4929_v62  ;;  %v9280_v49 = vld [vmem:[#allocation38_spill] sm:$0xff]  ;;  %v9282_v62 = vld [vmem:[#allocation39_spill] sm:$0xff] }
 0xad8   : > { %6311 = vmatprep.mubr.msk.bf16.mxu0 %vm4656_vm0, %v6755_v11 }
 0xad9   : > { %5003 = vperm.xlu1 %6712, %v4797_v29  }
 0xada   : > { %5231 = vperm.xlu0 %6732, %v9270_v43   ;;  %v4933_v29 = vpop.permute.xlu1 %4932 }
 0xadb   : > { %v4975_v30 = vmul.f32 %v6800_v61, %v4933_v29 }
 0xadd   : > { %6713 = vset.pattern.permute.xlu1 %v6916_v3 }
 0xade   : > { %5183 = vperm.xlu1 %6713, %v9271_v48   ;;  %5235 = vperm.xlu0 %6732, %v9272_v7   ;;  %v4937_v18 = vpop.permute.xlu1 %4936 }
 0xadf   : > { %6312 = vmatmul.mubr.msk.bf16.gmra.mrb[4].mxu0 %vm4656_vm0, %v6756_v35 }
 0xae0   : > { %6315 = vmatprep.mubr.msk.bf16.mxu0 %vm4656_vm0, %v6757_v22 }
 0xae2   : > { %6714 = vset.pattern.permute.xlu1 %v9273_v42  ;;  %5475 = vrot.lane.b32.xlu0 %v9265_v19, %s6917_s9  ;;  %v4941_v11 = vpop.permute.xlu1 %4940 }
 0xae3   : > { %4561 = vperm.xlu1 %6714, %v9274_v54  }
 0xae6   : > { %5479 = vrot.lane.b32.xlu0 %v9276_v28, %s6917_s9  ;;  %v4945_v53 = vpop.permute.xlu1 %4944 }
 0xae7   : > { %6316 = vmatmul.mubr.msk.bf16.gmra.mrb[8].mxu0 %vm4656_vm0, %v6758_v59  ;;  %6716 = vset.pattern.permute.xlu1 %v9275_v8 }
 0xae8   : > { %5094 = vperm.xlu1 %6716, %v8601_v34   ;;  %6319 = vmatprep.mubr.msk.bf16.mxu0 %vm4656_vm0, %v6759_v46  ;;  %v4833_v34 = vmul.f32 0.03125, %v4817_v58 }
 0xaea   : > { %v4865_v17 = vsub.f32 %v4833_v34, %v4849_v40  ;;  %5483 = vrot.lane.b32.xlu0 %v9274_v54, %s6917_s9  ;;  %v4949_v56 = vpop.permute.xlu1 %4948  ;;  %v4855_v34 = vmul.f32 %v8670_v2, %v8670_v2 }
 0xaec   : > { %5099 = vperm.xlu1 %6716, %v4973_v47   ;;  %v4881_v0 = vmax.f32 %v4865_v17, 0.0  ;;  %v4823_v47 = vld [vmem:[#allocation5 + $0x68] sm:$0xff] }
 0xaed   : > { %v4839_v58 = vmul.f32 0.03125, %v4823_v47 }
 0xaee   : > { %v4897_v52 = vadd.f32 1e-05, %v4881_v0  ;;  %5487 = vrot.lane.b32.xlu0 %v9277_v44, %s6917_s9 }
 0xaef   : > { %6320 = vmatmul.mubr.msk.bf16.gmra.mrb[12].mxu0 %vm4656_vm0, %v6760_v12  ;;  %v4871_v29 = vsub.f32 %v4839_v58, %v4855_v34 }
 0xaf0   : > { %5013 = vperm.xlu1 %6716, %v4799_v14   ;;  %6801 = vrsqrt.f32 %v4897_v52 }
 0xaf1   : > { %6803 = vrsqrt.f32 %v4899_v41  ;;  %v4887_v52 = vmax.f32 %v4871_v29, 0.0  ;;  %v4857_v41 = vmul.f32 %v8692_v21, %v8692_v21 }
 0xaf3   : > { %v4903_v2 = vadd.f32 1e-05, %v4887_v52 }
 0xaf4   : > { %6717 = vset.pattern.permute.xlu1 %v6916_v3 }
 0xaf5   : > { %5187 = vperm.xlu1 %6717, %v9276_v28  }
 0xaf9   : > { %6718 = vset.pattern.permute.xlu1 %v9273_v42 }
 0xafa   : > { %4569 = vperm.xlu1 %6718, %v9277_v44   ;;  %v6802_v37 = vpop.eup %6801 }
 0xafb   : > { %v4977_v1 = vmul.f32 %v6802_v37, %v4937_v18  ;;  %v6804_v14 = vpop.eup %6803  ;;  %v4825_v37 = vld [vmem:[#allocation5 + $0x78] sm:$0xff] }
 0xafc   : > { %v4979_v23 = vmul.f32 %v6804_v14, %v4941_v11  ;;  %v4841_v55 = vmul.f32 0.03125, %v4825_v37 }
 0xafe   : > { %4573 = vperm.xlu1 %6718, %v9267_v36   ;;  %v4873_v11 = vsub.f32 %v4841_v55, %v4857_v41 }
 0xb02   : > { %6719 = vset.pattern.permute.xlu1 %v9275_v8 }
 0xb03   : > { %5109 = vperm.xlu1 %6719, %v4975_v30   ;;  %v4792_v30 = vld [vmem:[#allocation4 + $0x70] sm:$0xff] }
 0xb07   : > { %5018 = vperm.xlu1 %6719, %v9278_v38   ;;  %v4808_v38 = vmul.f32 0.03125, %v4792_v30 }
 0xb09   : > { %v4856_v25 = vmul.f32 %v4808_v38, %v4808_v38 }
 0xb0b   : > { %6720 = vset.pattern.permute.xlu1 %v6916_v3 }
 0xb0c   : > { %5195 = vperm.xlu1 %6720, %v9274_v54   ;;  %v8771_v15 = vpop.permute.xlu0 %5084 }
 0xb10   : > { %6721 = vset.pattern.permute.xlu1 %v9273_v42  ;;  %v8777_v31 = vpop.permute.xlu0 %4998 }
 0xb11   : > { %4578 = vperm.xlu1 %6721, %v9279_v57  }
 0xb14   : > { %v8787_v22 = vpop.permute.xlu0 %5008 }
 0xb15   : > { %4583 = vperm.xlu1 %6721, %v9268_v33   ;;  %v4821_v33 = vld [vmem:[#allocation5 + $0x58] sm:$0xff] }
 0xb16   : > { %v4837_v35 = vmul.f32 0.03125, %v4821_v33 }
 0xb18   : > { %v4869_v24 = vsub.f32 %v4837_v35, %v4853_v5  ;;  %v8793_v46 = vpop.permute.xlu0 %5104 }
 0xb19   : > { %6722 = vset.pattern.permute.xlu1 %v9275_v8 }
 0xb1a   : > { %5119 = vperm.xlu1 %6722, %v4977_v1   ;;  %v4885_v59 = vmax.f32 %v4869_v24, 0.0  ;;  %v4889_v24 = vmax.f32 %v4873_v11, 0.0 }
 0xb1c   : > { %v4901_v50 = vadd.f32 1e-05, %v4885_v59  ;;  %v8796_v51 = vpop.permute.xlu0 %5023  ;;  %v4905_v59 = vadd.f32 1e-05, %v4889_v24 }
 0xb1e   : > { %5028 = vperm.xlu1 %6722, %v9280_v49   ;;  %6805 = vrsqrt.f32 %v4901_v50 }
 0xb1f   : > { %6807 = vrsqrt.f32 %v4903_v2 }
 0xb20   : > { %v8802_v27 = vpop.permute.xlu0 %5114 }
 0xb22   : > { %6723 = vset.pattern.permute.xlu1 %v6916_v3 }
 0xb23   : > { %5203 = vperm.xlu1 %6723, %v9277_v44  }
 0xb24   : > { %v8811_v61 = vpop.permute.xlu0 %5033 }
 0xb27   : > { %6724 = vset.pattern.permute.xlu1 %v9273_v42 }
 0xb28   : > { %4588 = vperm.xlu1 %6724, %v9281_v10   ;;  %v6806_v40 = vpop.eup %6805 }
 0xb29   : > { %v4981_v0 = vmul.f32 %v6806_v40, %v4945_v53  ;;  %v6808_v14 = vpop.eup %6807 }
 0xb2a   : > { %v4983_v21 = vmul.f32 %v6808_v14, %v4949_v56  ;;  %v9175_v14 = vmov 6  }
 0xb2b   : > { %6736 = vset.pattern.permute.xlu0 %v9175_v14 }
 0xb2c   : > { %4593 = vperm.xlu1 %6724, %v9269_v4   ;;  %v8799_v4 = vpop.permute.xlu1 %4952  ;;  %5275 = vperm.xlu0 %6736, %v9265_v19  }
 0xb30   : > { %6725 = vset.pattern.permute.xlu1 %v9275_v8  ;;  %v8805_v12 = vpop.permute.xlu1 %4549  ;;  %5287 = vperm.xlu0 %6736, %v9235_v16  }
 0xb31   : > { %5129 = vperm.xlu1 %6725, %v4979_v23  }
 0xb34   : > { %v8813_v17 = vpop.permute.xlu1 %4988  ;;  %5291 = vperm.xlu0 %6736, %v9274_v54  }
 0xb35   : > { %5038 = vperm.xlu1 %6725, %v9282_v62  }
 0xb38   : > { %v8818_v26 = vpop.permute.xlu1 %4553  ;;  %5299 = vperm.xlu0 %6736, %v9277_v44   ;;  %v5407_v44 = vld [vmem:[#allocation6 + $0x20] sm:$0xff] }
 0xb39   : > { %6726 = vset.pattern.permute.xlu1 %v6916_v3 }
 0xb3a   : > { %5211 = vperm.xlu1 %6726, %v9279_v57   ;;  %v8816_v57 = vpop.permute.xlu0 %5124 }
 0xb3c   : > { %v8823_v13 = vpop.permute.xlu1 %4557 }
 0xb3e   : > { %6727 = vset.pattern.permute.xlu1 %v9273_v42  ;;  %v8821_v18 = vpop.permute.xlu0 %5043 }
 0xb3f   : > { %4598 = vperm.xlu1 %6727, %v9283_v60  }
 0xb43   : > { %4603 = vperm.xlu1 %6727, %v9270_v43   ;;  %v4840_v43 = vmul.f32 0.03125, %v4824_v32 }
 0xb45   : > { %v4872_v1 = vsub.f32 %v4840_v43, %v4856_v25  ;;  %v5419_v43 = vld [vmem:[#allocation7] sm:$0xff] }
 0xb46   : > { %v5427_v37 = vmul.f32 0.03125, %v5419_v43  ;;  %v5421_v43 = vld [vmem:[#allocation7 + $0x10] sm:$0xff] }
 0xb47   : > { %6728 = vset.pattern.permute.xlu1 %v9275_v8  ;;  %v4888_v49 = vmax.f32 %v4872_v1, 0.0 }
 0xb48   : > { %5139 = vperm.xlu1 %6728, %v4981_v0  }
 0xb49   : > { %v4904_v35 = vadd.f32 1e-05, %v4888_v49 }
 0xb4b   : > { %6809 = vrsqrt.f32 %v4904_v35 }
 0xb4c   : > { %5048 = vperm.xlu1 %6728, %v8613_v63   ;;  %v8832_v63 = vpop.permute.xlu0 %5134  ;;  %6811 = vrsqrt.f32 %v4905_v59 }
 0xb50   : > { %6729 = vset.pattern.permute.xlu1 %v6916_v3  ;;  %v8838_v53 = vpop.permute.xlu0 %5053 }
 0xb51   : > { %5219 = vperm.xlu1 %6729, %v9281_v10   ;;  %v9284_v10 = vld [vmem:[#allocation26_spill] sm:$0xff] }
 0xb54   : > { %v8829_v33 = vpop.permute.xlu1 %5089 }
 0xb55   : > { %6730 = vset.pattern.permute.xlu1 %v9273_v42  ;;  %v8843_v42 = vpop.permute.xlu0 %5144  ;;  %v6810_v50 = vpop.eup %6809 }
 0xb56   : > { %4608 = vperm.xlu1 %6730, %v9272_v7   ;;  %v4984_v56 = vmul.f32 %v6810_v50, %v8754_v39  ;;  %v6812_v40 = vpop.eup %6811 }
 0xb57   : > { %v4985_v29 = vmul.f32 %v6812_v40, %v8799_v4  ;;  %v6761_v4 = vld [vmem:[%s9097_s3] sm:$0xff]  }
 0xb58   : > { %v8835_v5 = vpop.permute.xlu1 %5003  ;;  %6339 = vmatprep.mubr.bf16.mxu1 %v6761_v4 }
 0xb59   : > { %v8850_v47 = vpop.permute.xlu0 %5063 }
 0xb5a   : > { %4613 = vperm.xlu1 %6730, %v9284_v10  }
 0xb5d   : > { %v8840_v23 = vpop.permute.xlu1 %5183  ;;  %v8856_v34 = vpop.permute.xlu0 %5179 }
 0xb5e   : > { %6731 = vset.pattern.permute.xlu1 %v9275_v8 }
 0xb5f   : > { %5149 = vperm.xlu1 %6731, %v4983_v21  }
 0xb61   : > { %v8862_v0 = vpop.permute.xlu0 %5191 }
 0xb62   : > { %v8845_v7 = vpop.permute.xlu1 %4561 }
 0xb63   : > { %5058 = vperm.xlu1 %6731, %v4808_v38  }
 0xb65   : > { %v8868_v39 = vpop.permute.xlu0 %5199 }
 0xb67   : > { %6733 = vset.pattern.permute.xlu1 %v6916_v3  ;;  %v8848_v62 = vpop.permute.xlu1 %5094 }
 0xb68   : > { %5227 = vperm.xlu1 %6733, %v9283_v60  }
 0xb69   : > { %v8879_v32 = vpop.permute.xlu0 %5207 }
 0xb6b   : > { %v8854_v58 = vpop.permute.xlu1 %5099 }
 0xb6c   : > { %6734 = vset.pattern.permute.xlu1 %v9275_v8 }
 0xb6d   : > { %5154 = vperm.xlu1 %6734, %v4984_v56   ;;  %v8883_v25 = vpop.permute.xlu0 %5215  ;;  %v5405_v56 = vld [vmem:[#allocation6 + $0x10] sm:$0xff] }
 0xb6f   : > { %v8860_v30 = vpop.permute.xlu1 %5013 }
 0xb71   : > { %5159 = vperm.xlu1 %6734, %v4985_v29   ;;  %v8889_v49 = vpop.permute.xlu0 %5223 }
 0xb74   : > { %v8864_v52 = vpop.permute.xlu1 %5187 }
 0xb75   : > { %6735 = vset.pattern.permute.xlu1 %v6916_v3  ;;  %v5403_v3 = vld [vmem:[#allocation6] sm:$0xff] }
 0xb76   : > { %5239 = vperm.xlu1 %6735, %v9284_v10   ;;  %v5411_v2 = vmul.f32 0.03125, %v5403_v3  ;;  %v8898_v10 = vpop.permute.xlu0 %5231 }
 0xb78   : > { %v5435_v1 = vmul.f32 %v5411_v2, %v5411_v2 }
 0xb79   : > { %v8870_v60 = vpop.permute.xlu1 %4569 }
 0xb7a   : > { %5477 = vrot.lane.b32.xlu1 %v9271_v48, %s6917_s9  ;;  %v5443_v41 = vsub.f32 %v5427_v37, %v5435_v1  ;;  %v8905_v59 = vpop.permute.xlu0 %5235  ;;  %v8914_v37 = vmul.f32 0.03125, %v5405_v56  ;;  %v5429_v1 = vmul.f32 0.03125, %v5421_v43  ;;  %v5406_v56 = vld [vmem:[#allocation6 + $0x18] sm:$0xff]  ;;  %v8927_v43 = vmul.f32 0.03125, %v5407_v44 }
 0xb7b   : > { %6737 = vset.pattern.permute.xlu1 %v9175_v14 }
 0xb7c   : > { %v5451_v11 = vmax.f32 %v5443_v41, 0.0  ;;  %9285 = vst [vmem:[#allocation34_spill] sm:$0xff] %v8914_v37  ;;  %v5437_v41 = vmul.f32 %v8914_v37, %v8914_v37  ;;  %9286 = vst [vmem:[#allocation33_spill] sm:$0xff] %v8927_v43 }
 0xb7d   : > { %v8877_v38 = vpop.permute.xlu1 %4573 }
 0xb7e   : > { %5481 = vrot.lane.b32.xlu1 %v9235_v16, %s6917_s9  ;;  %v5459_v24 = vadd.f32 1e-05, %v5451_v11  ;;  %v5476_v29 = vpop.permute.xlu0 %5475  ;;  %v9178_v11 = vmov 8   ;;  %v5445_v14 = vsub.f32 %v5429_v1, %v5437_v41  ;;  %v8930_v16 = vmul.f32 0.03125, %v5406_v56 }
 0xb7f   : > { %6747 = vset.pattern.permute.xlu0 %v9178_v11 }
 0xb80   : > { %6813 = vrsqrt.f32 %v5459_v24  ;;  %5620 = vperm.xlu0 %6747, %v9274_v54   ;;  %v5453_v11 = vmax.f32 %v5445_v14, 0.0  ;;  %v5439_v54 = vmul.f32 %v8927_v43, %v8927_v43 }
 0xb82   : > { %v8885_v55 = vpop.permute.xlu1 %5109  ;;  %5485 = vrot.lane.b32.xlu1 %v9266_v20, %s6917_s9  ;;  %v5461_v41 = vadd.f32 1e-05, %v5453_v11 }
 0xb84   : > { %6748 = vset.pattern.permute.xlu0 %v9275_v8  ;;  %6815 = vrsqrt.f32 %v5461_v41 }
 0xb86   : > { %v8891_v35 = vpop.permute.xlu1 %5018  ;;  %5489 = vrot.lane.b32.xlu1 %v9267_v36, %s6917_s9 }
 0xb8a   : > { %5279 = vperm.xlu1 %6737, %v9271_v48   ;;  %v6814_v40 = vpop.eup %6813 }
 0xb8b   : > { %v8901_v21 = vpop.permute.xlu1 %5195  ;;  %v5499_v3 = vmul.f32 %v6814_v40, %v5476_v29 }
 0xb8e   : > { %5283 = vperm.xlu1 %6737, %v9276_v28  }
 0xb90   : > { %v8907_v50 = vpop.permute.xlu1 %4578 }
 0xb92   : > { %6738 = vset.pattern.permute.xlu1 %v9275_v8 }
 0xb93   : > { %5509 = vperm.xlu1 %6738, %v5411_v2   ;;  %v5404_v2 = vld [vmem:[#allocation6 + $0x8] sm:$0xff] }
 0xb94   : > { %v8911_v4 = vpop.permute.xlu1 %4583  ;;  %v8922_v40 = vmul.f32 0.03125, %v5404_v2 }
 0xb96   : > { %5514 = vperm.xlu0 %6748, %v8922_v40  }
 0xb97   : > { %5557 = vperm.xlu1 %6738, %v5499_v3   ;;  %v5423_v3 = vld [vmem:[#allocation7 + $0x20] sm:$0xff] }
 0xb98   : > { %v5431_v28 = vmul.f32 0.03125, %v5423_v3 }
 0xb99   : > { %v8919_v24 = vpop.permute.xlu1 %5119 }
 0xb9a   : > { %5524 = vperm.xlu0 %6748, %v8930_v16   ;;  %v5447_v2 = vsub.f32 %v5431_v28, %v5439_v54  ;;  %v5480_v28 = vpop.permute.xlu0 %5479 }
 0xb9c   : > { %v5455_v44 = vmax.f32 %v5447_v2, 0.0  ;;  %v6816_v2 = vpop.eup %6815 }
 0xb9d   : > { %v8924_v29 = vpop.permute.xlu1 %5028 }
 0xb9e   : > { %v5463_v43 = vadd.f32 1e-05, %v5455_v44 }
 0xba0   : > { %6817 = vrsqrt.f32 %v5463_v43 }
 0xba2   : > { %v8934_v1 = vpop.permute.xlu1 %5203 }
 0xba7   : > { %v8937_v36 = vpop.permute.xlu1 %4588 }
 0xbaa   : > { %v6309_v48 = vpop.f32.mrb[0].mxu0 }
 0xbab   : > { %v4724_v19 = vadd.f32 %v6309_v48, %v8818_v26  ;;  %v4715_v14 = vpop.f32.mrb[1].mxu0  ;;  %v8940_v56 = vpop.permute.xlu1 %4593 }
 0xbac   : > { %v4716_v3 = vadd.f32 %v4715_v14, %v8758_v6  ;;  %v6310_v37 = vpop.f32.mrb[2].mxu0 }
 0xbad   : > { %v5068_v8 = vsub.f32 %v4724_v19, %v8777_v31  ;;  %v4727_v20 = vadd.f32 %v6310_v37, %v8823_v13  ;;  %v4718_v11 = vpop.f32.mrb[3].mxu0  ;;  %v5501_v19 = vmul.f32 %v6816_v2, %v5480_v28  ;;  %v5408_v13 = vld [vmem:[#allocation6 + $0x28] sm:$0xff] }
 0xbae   : > { %v5066_v54 = vsub.f32 %v4716_v3, %v8813_v17  ;;  %v4719_v41 = vadd.f32 %v4718_v11, %v8805_v12  ;;  %v8963_v3 = vmul.f32 0.03125, %v5408_v13 }
 0xbaf   : > { %v5164_v48 = vmul.f32 %v8848_v62, %v5068_v8  ;;  %v5069_v26 = vsub.f32 %v4727_v20, %v8835_v5  ;;  %5567 = vperm.xlu0 %6748, %v5501_v19  }
 0xbb0   : > { %v5067_v6 = vsub.f32 %v4719_v41, %v8768_v45  ;;  %v5162_v44 = vmul.f32 %v8771_v15, %v5066_v54  ;;  %v8951_v14 = vpop.permute.xlu1 %5129  ;;  %v6818_v41 = vpop.eup %6817 }
 0xbb1   : > { %v5165_v31 = vmul.f32 %v8854_v58, %v5069_v26  ;;  %v5244_v12 = vadd.f32 %v8864_v52, %v5164_v48 }
 0xbb2   : > { %v5163_v17 = vmul.f32 %v8829_v33, %v5067_v6  ;;  %v6313_v37 = vpop.f32.mrb[4].mxu0  ;;  %v5242_v45 = vadd.f32 %v8856_v34, %v5162_v44  ;;  %v5409_v6 = vld [vmem:[#allocation6 + $0x30] sm:$0xff] }
 0xbb3   : > { %v5245_v8 = vadd.f32 %v8862_v0, %v5165_v31  ;;  %v4740_v20 = vadd.f32 %v6313_v37, %v8870_v60  ;;  %v4731_v5 = vpop.f32.mrb[5].mxu0  ;;  %5534 = vperm.xlu0 %6748, %v8963_v3  }
 0xbb4   : > { %v4732_v15 = vadd.f32 %v4731_v5, %v8845_v7  ;;  %v6314_v62 = vpop.f32.mrb[6].mxu0  ;;  %v8960_v43 = vpop.permute.xlu1 %5038  ;;  %v5243_v58 = vadd.f32 %v8840_v23, %v5163_v17 }
 0xbb5   : > { %v5267_v33 = vpack.c.bf16 %v5245_v8, %v5244_v12  ;;  %v5072_v11 = vsub.f32 %v4740_v20, %v8891_v35  ;;  %v4743_v52 = vadd.f32 %v6314_v62, %v8877_v38  ;;  %v4734_v0 = vpop.f32.mrb[7].mxu0  ;;  %v5484_v7 = vpop.permute.xlu0 %5483 }
 0xbb6   : > { %v5070_v60 = vsub.f32 %v4732_v15, %v8787_v22  ;;  %v4735_v28 = vadd.f32 %v4734_v0, %v8765_v9  ;;  %v5266_v34 = vpack.c.bf16 %v5243_v58, %v5242_v45  ;;  %v5503_v48 = vmul.f32 %v6818_v41, %v5484_v7 }
 0xbb7   : > { %v5168_v54 = vmul.f32 %v8802_v27, %v5072_v11  ;;  %v5073_v23 = vsub.f32 %v4743_v52, %v8796_v51 }
 0xbb8   : > { %v5166_v2 = vmul.f32 %v8793_v46, %v5070_v60  ;;  %v5071_v35 = vsub.f32 %v4735_v28, %v8860_v30  ;;  %6323 = vmatprep.subr.bf16.mxu1 %v5266_v34  ;;  %5577 = vperm.xlu0 %6748, %v5503_v48  }
 0xbb9   : > { %6324 = vmatpush3.bf16.msra.mxu1 %v5266_v34  ;;  %v5212_v38 = vpop.permute.xlu1 %5211  ;;  %v5169_v22 = vmul.f32 %v8919_v24, %v5073_v23  ;;  %v5248_v27 = vadd.f32 %v8934_v1, %v5168_v54  ;;  %v5420_v34 = vld [vmem:[#allocation7 + $0x8] sm:$0xff] }
 0xbba   : > { %v5167_v9 = vmul.f32 %v8885_v55, %v5071_v35  ;;  %v6317_v26 = vpop.f32.mrb[8].mxu0  ;;  %6325 = vmatprep.subr.bf16.mxu1 %v5267_v33  ;;  %v5246_v46 = vadd.f32 %v8901_v21, %v5166_v2  ;;  %v8981_v55 = vmul.f32 0.03125, %v5409_v6  ;;  %v5428_v7 = vmul.f32 0.03125, %v5420_v34 }
 0xbbb   : > { %v5249_v51 = vadd.f32 %v8879_v32, %v5169_v22  ;;  %v4747_v44 = vpop.f32.mrb[9].mxu0  ;;  %v4756_v62 = vadd.f32 %v6317_v26, %v8937_v36  ;;  %v5426_v26 = vld [vmem:[#allocation7 + $0x38] sm:$0xff] }
 0xbbc   : > { %v5247_v30 = vadd.f32 %v8868_v39, %v5167_v9  ;;  %v4748_v19 = vadd.f32 %v4747_v44, %v8907_v50  ;;  %v6318_v31 = vpop.f32.mrb[10].mxu0  ;;  %5539 = vperm.xlu0 %6748, %v8981_v55   ;;  %v5434_v44 = vmul.f32 0.03125, %v5426_v26  ;;  %v9296_v26 = vld [vmem:[#allocation13_spill] sm:$0xff] }
 0xbbd   : > { %v5269_v24 = vpack.c.bf16 %v5249_v51, %v5248_v27  ;;  %v4750_v13 = vpop.f32.mrb[11].mxu0  ;;  %6326 = vmatpush3.bf16.msra.mxu1 %v5267_v33  ;;  %v5076_v58 = vsub.f32 %v4756_v62, %v8960_v43  ;;  %v5436_v43 = vmul.f32 %v8922_v40, %v8922_v40 }
 0xbbe   : > { %v5268_v17 = vpack.c.bf16 %v5247_v30, %v5246_v46  ;;  %v5074_v37 = vsub.f32 %v4748_v19, %v8924_v29  ;;  %v4751_v1 = vadd.f32 %v4750_v13, %v8911_v4  ;;  %v4599_v32 = vpop.permute.xlu1 %4598 }
 0xbbf   : > { %v5172_v52 = vmul.f32 %v8832_v63, %v5076_v58  ;;  %v5444_v41 = vsub.f32 %v5428_v7, %v5436_v43  ;;  %v9288_v58 = vld [vmem:[#allocation16_spill] sm:$0xff]  ;;  %v5440_v7 = vmul.f32 %v8963_v3, %v8963_v3 }
 0xbc0   : > { %v5170_v21 = vmul.f32 %v8816_v57, %v5074_v37  ;;  %v5075_v39 = vsub.f32 %v4751_v1, %v8811_v61  ;;  %6327 = vmatprep.subr.bf16.mxu1 %v5268_v17  ;;  %v4759_v57 = vadd.f32 %v6318_v31, %v8940_v56 }
 0xbc1   : > { %6328 = vmatpush3.bf16.msra.mxu1 %v5268_v17  ;;  %v5452_v22 = vmax.f32 %v5444_v41, 0.0  ;;  %v5422_v17 = vld [vmem:[#allocation7 + $0x18] sm:$0xff] }
 0xbc2   : > { %v6321_v50 = vpop.f32.mrb[12].mxu0  ;;  %6329 = vmatprep.subr.bf16.mxu1 %v5269_v24  ;;  %v4604_v12 = vpop.permute.xlu1 %4603  ;;  %v5171_v8 = vmul.f32 %v8951_v14, %v5075_v39  ;;  %v5250_v5 = vadd.f32 %v5212_v38, %v5170_v21  ;;  %v5077_v33 = vsub.f32 %v4759_v57, %v8821_v18  ;;  %v5438_v21 = vmul.f32 %v8930_v16, %v8930_v16  ;;  %v6763_v16 = vld [vmem:[%s9097_s3 + $0x10] sm:$0xff]  }
 0xbc3   : > { %v4763_v20 = vpop.f32.mrb[13].mxu0  ;;  %v5460_v51 = vadd.f32 1e-05, %v5452_v22  ;;  %v9295_v22 = vld [vmem:[#allocation33_spill] sm:$0xff] }
 0xbc4   : > { %v5251_v29 = vadd.f32 %v8883_v25, %v5171_v8  ;;  %v6322_v45 = vpop.f32.mrb[14].mxu0  ;;  %v4764_v23 = vadd.f32 %v4763_v20, %v4599_v32  ;;  %v5430_v32 = vmul.f32 0.03125, %v5422_v17 }
 0xbc5   : > { %v4766_v4 = vpop.f32.mrb[15].mxu0  ;;  %6330 = vmatpush3.bf16.msra.mxu1 %v5269_v24  ;;  %6819 = vrsqrt.f32 %v5460_v51 }
 0xbc6   : > { %v5270_v15 = vpack.c.bf16 %v5251_v29, %v5250_v5  ;;  %v4767_v54 = vadd.f32 %v4766_v4, %v4604_v12 }
 0xbc7   : > { %v5140_v61 = vpop.permute.xlu1 %5139 }
 0xbc8   : > { %6331 = vmatprep.subr.bf16.mxu1 %v5270_v15  ;;  %v5173_v11 = vmul.f32 %v5140_v61, %v5077_v33  ;;  %v5079_v63 = vsub.f32 %v4767_v54, %v8838_v53  ;;  %v9287_v61 = vmov 6   ;;  %v9293_v54 = vld [vmem:[#allocation12_spill] sm:$0xff] }
 0xbc9   : > { %6332 = vmatpush3.bf16.msra.mxu1 %v5270_v15 }
 0xbca   : > { %v5253_v0 = vadd.f32 %v8889_v49, %v5173_v11  ;;  %v5410_v49 = vld [vmem:[#allocation6 + $0x38] sm:$0xff] }
 0xbcb   : > { %v5049_v14 = vpop.permute.xlu1 %5048  ;;  %v8999_v48 = vmul.f32 0.03125, %v5410_v49 }
 0xbcc   : > { %v5078_v2 = vsub.f32 %v4764_v23, %v5049_v14  ;;  %v6764_v14 = vld [vmem:[%s9097_s3 + $0x18] sm:$0xff]  }
 0xbcd   : > { %v5442_v46 = vmul.f32 %v8999_v48, %v8999_v48 }
 0xbce   : > { %v5174_v9 = vmul.f32 %v8843_v42, %v5078_v2  ;;  %v5425_v2 = vld [vmem:[#allocation7 + $0x30] sm:$0xff] }
 0xbcf   : > { %v5450_v19 = vsub.f32 %v5434_v44, %v5442_v46  ;;  %v6820_v29 = vpop.eup %6819  ;;  %v5433_v49 = vmul.f32 0.03125, %v5425_v2  ;;  %v5488_v44 = vpop.permute.xlu0 %5487 }
 0xbd0   : > { %v5220_v25 = vpop.permute.xlu1 %5219 }
 0xbd1   : > { %v5252_v60 = vadd.f32 %v5220_v25, %v5172_v52  ;;  %v5458_v37 = vmax.f32 %v5450_v19, 0.0  ;;  %v9289_v52 = vmov 0   ;;  %v6923_v19 = vmov 9  }
 0xbd3   : > { %v5271_v28 = vpack.c.bf16 %v5253_v0, %v5252_v60  ;;  %v5466_v8 = vadd.f32 1e-05, %v5458_v37  ;;  %v9290_v0 = vld [vmem:[#allocation34_spill] sm:$0xff] }
 0xbd5   : > { %6333 = vmatprep.subr.bf16.mxu1 %v5271_v28  ;;  %v4609_v36 = vpop.permute.xlu1 %4608  ;;  %6821 = vrsqrt.f32 %v5466_v8 }
 0xbd6   : > { %6334 = vmatpush3.bf16.msra.mxu1 %v5271_v28  ;;  %v4772_v31 = vadd.f32 %v6321_v50, %v4609_v36  ;;  %v5446_v50 = vsub.f32 %v5430_v32, %v5438_v21  ;;  %v5424_v28 = vld [vmem:[#allocation7 + $0x28] sm:$0xff]  ;;  %v9291_v36 = vmov 8   ;;  %v5276_v21 = vpop.permute.xlu0 %5275 }
 0xbd7   : > { %v5432_v34 = vmul.f32 0.03125, %v5424_v28 }
 0xbd8   : > { %v5454_v62 = vmax.f32 %v5446_v50, 0.0 }
 0xbd9   : > { %v4614_v56 = vpop.permute.xlu1 %4613 }
 0xbda   : > { %v4775_v24 = vadd.f32 %v6322_v45, %v4614_v56  ;;  %v5462_v57 = vadd.f32 1e-05, %v5454_v62  ;;  %v9292_v56 = vld [vmem:[#allocation11_spill] sm:$0xff] }
 0xbdc   : > { %6823 = vrsqrt.f32 %v5462_v57 }
 0xbde   : > { %v5150_v18 = vpop.permute.xlu1 %5149 }
 0xbdf   : > { %v5175_v38 = vmul.f32 %v5150_v18, %v5079_v63  ;;  %v6822_v11 = vpop.eup %6821  ;;  %v5448_v18 = vsub.f32 %v5432_v34, %v5440_v7 }
 0xbe1   : > { %v5255_v27 = vadd.f32 %v8898_v10, %v5175_v38  ;;  %v5081_v10 = vsub.f32 %v4775_v24, %v8850_v47  ;;  %v6762_v47 = vld [vmem:[%s9097_s3 + $0x8] sm:$0xff]   ;;  %v5456_v41 = vmax.f32 %v5448_v18, 0.0  ;;  %v5441_v38 = vmul.f32 %v8981_v55, %v8981_v55 }
 0xbe2   : > { %v5059_v35 = vpop.permute.xlu1 %5058 }
 0xbe3   : > { %v5080_v13 = vsub.f32 %v4772_v31, %v5059_v35  ;;  %v5464_v63 = vadd.f32 1e-05, %v5456_v41  ;;  %v9294_v35 = vld [vmem:[#allocation18_spill] sm:$0xff]  ;;  %v5449_v3 = vsub.f32 %v5433_v49, %v5441_v38  ;;  %v9299_v31 = vld [vmem:[#allocation27_spill] sm:$0xff] }
 0xbe5   : > { %6825 = vrsqrt.f32 %v5464_v63 }
 0xbe6   : > { %v6824_v43 = vpop.eup %6823 }
 0xbe7   : > { %v5228_v6 = vpop.permute.xlu1 %5227 }
 0xbe8   : > { %v5254_v40 = vadd.f32 %v5228_v6, %v5174_v9  ;;  %v5457_v9 = vmax.f32 %v5449_v3, 0.0 }
 0xbea   : > { %v5272_v30 = vpack.c.bf16 %v5255_v27, %v5254_v40  ;;  %v5465_v27 = vadd.f32 1e-05, %v5457_v9  ;;  %v9297_v40 = vld [vmem:[#allocation14_spill] sm:$0xff] }
 0xbec   : > { %6335 = vmatprep.subr.bf16.mxu1 %v5272_v30  ;;  %v5155_v53 = vpop.permute.xlu1 %5154  ;;  %6827 = vrsqrt.f32 %v5465_v27 }
 0xbed   : > { %6336 = vmatpush3.bf16.msra.mxu1 %v5272_v30  ;;  %v5176_v1 = vmul.f32 %v5155_v53, %v5080_v13  ;;  %v9298_v30 = vld [vmem:[#allocation17_spill] sm:$0xff]  ;;  %v6920_v53 = vmov 0.0|0.0  }
 0xbee   : > { %6390 = vmatprep.subr.bf16.mxu0 %v6920_v53 }
 0xbef   : > { %v5256_v20 = vadd.f32 %v8905_v59, %v5176_v1  ;;  %v6826_v6 = vpop.eup %6825 }
 0xbf0   : > { %v5160_v42 = vpop.permute.xlu1 %5159 }
 0xbf1   : > { %v5177_v39 = vmul.f32 %v5160_v42, %v5081_v10 }
 0xbf5   : > { %v5240_v12 = vpop.permute.xlu1 %5239 }
 0xbf6   : > { %v5257_v5 = vadd.f32 %v5240_v12, %v5177_v39  ;;  %v6828_v55 = vpop.eup %6827  ;;  %v5288_v12 = vpop.permute.xlu0 %5287 }
 0xbf7   : > { %v5505_v46 = vmul.f32 %v6828_v55, %v5488_v44 }
 0xbf8   : > { %v5273_v45 = vpack.c.bf16 %v5257_v5, %v5256_v20 }
 0xbf9   : > { %v5478_v4 = vpop.permute.xlu1 %5477 }
 0xbfa   : > { %6337 = vmatprep.subr.bf16.mxu1 %v5273_v45  ;;  %v5500_v15 = vmul.f32 %v6820_v29, %v5478_v4  ;;  %v5292_v20 = vpop.permute.xlu0 %5291 }
 0xbfb   : > { %6338 = vmatpush3.bf16.msra.mxu1 %v5273_v45 }
 0xbfc   : > { %5562 = vperm.xlu1 %6738, %v5500_v15  }
 0xbfd   : > { %v5482_v59 = vpop.permute.xlu1 %5481 }
 0xbfe   : > { %6340 = vmatmul.mubr.bf16.vlgmr.msra.gmra.mrb[0].mxu1 %v6762_v47  ;;  %v5502_v23 = vmul.f32 %v6824_v43, %v5482_v59  ;;  %v5300_v29 = vpop.permute.xlu0 %5299 }
 0xbff   : > { %6343 = vmatprep.mubr.bf16.mxu1 %v6763_v16 }
 0xc00   : > { %6739 = vset.pattern.permute.xlu1 %v9287_v61 }
 0xc01   : > { %5295 = vperm.xlu1 %6739, %v9288_v58   ;;  %v5486_v33 = vpop.permute.xlu1 %5485 }
 0xc02   : > { %v5504_v51 = vmul.f32 %v6826_v6, %v5486_v33  ;;  %v9047_v45 = vpop.permute.xlu0 %5620 }
 0xc05   : > { %6740 = vset.pattern.permute.xlu1 %v9289_v52  ;;  %v5490_v25 = vpop.permute.xlu1 %5489 }
 0xc06   : > { %6344 = vmatmul.mubr.bf16.gmra.mrb[4].mxu1 %v6764_v14  ;;  %5519 = vperm.xlu1 %6740, %v9290_v0   ;;  %v5506_v60 = vmul.f32 %v6822_v11, %v5490_v25 }
 0xc08   : > { %5592 = vperm.xlu0 %6748, %v5506_v60  }
 0xc09   : > { %v5280_v24 = vpop.permute.xlu1 %5279 }
 0xc0a   : > { %6741 = vset.pattern.permute.xlu1 %v9291_v36 }
 0xc0b   : > { %5604 = vperm.xlu1 %6741, %v9292_v56  }
 0xc0c   : > { %6752 = vset.pattern.permute.xlu0 %v6923_v19 }
 0xc0d   : > { %5646 = vperm.xlu0 %6752, %v9299_v31   ;;  %v5284_v13 = vpop.permute.xlu1 %5283 }
 0xc0f   : > { %5608 = vperm.xlu1 %6741, %v9293_v54  }
 0xc12   : > { %v5510_v42 = vpop.permute.xlu1 %5509 }
 0xc13   : > { %6742 = vset.pattern.permute.xlu1 %v9289_v52 }
 0xc14   : > { %5572 = vperm.xlu1 %6742, %v5502_v23  }
 0xc15   : > { %v5515_v47 = vpop.permute.xlu0 %5514 }
 0xc16   : > { %v5558_v17 = vpop.permute.xlu1 %5557 }
 0xc18   : > { %6743 = vset.pattern.permute.xlu1 %v9287_v61 }
 0xc19   : > { %5303 = vperm.xlu1 %6743, %v9294_v35   ;;  %v5525_v16 = vpop.permute.xlu0 %5524 }
 0xc1d   : > { %6744 = vset.pattern.permute.xlu1 %v9289_v52 }
 0xc1e   : > { %5529 = vperm.xlu1 %6744, %v9295_v22  }
 0xc22   : > { %6745 = vset.pattern.permute.xlu1 %v9291_v36 }
 0xc23   : > { %5612 = vperm.xlu1 %6745, %v9296_v26  }
 0xc27   : > { %5616 = vperm.xlu1 %6745, %v9297_v40  }
 0xc2b   : > { %6746 = vset.pattern.permute.xlu1 %v9289_v52 }
 0xc2c   : > { %5582 = vperm.xlu1 %6746, %v5504_v51  }
 0xc2e   : > { %v5568_v59 = vpop.permute.xlu0 %5567 }
 0xc30   : > { %5544 = vperm.xlu1 %6746, %v8999_v48   ;;  %v6922_v48 = vmov 0.0  }
 0xc31   : > { %6363 = vmatprep.mubr.msk.f32.mxu0 %vm6921_vm9, %v6922_v48 }
 0xc32   : > { %v5535_v61 = vpop.permute.xlu0 %5534 }
 0xc34   : > { %6749 = vset.pattern.permute.xlu1 %v9291_v36 }
 0xc35   : > { %5624 = vperm.xlu1 %6749, %v9288_v58  }
 0xc37   : > { %v5578_v0 = vpop.permute.xlu0 %5577 }
 0xc39   : > { %6750 = vset.pattern.permute.xlu1 %v9289_v52 }
 0xc3a   : > { %5587 = vperm.xlu1 %6750, %v5505_v46  }
 0xc3b   : > { %v5540_v3 = vpop.permute.xlu0 %5539 }
 0xc3e   : > { %6751 = vset.pattern.permute.xlu1 %v9291_v36 }
 0xc3f   : > { %5628 = vperm.xlu1 %6751, %v9298_v30  }
 0xc43   : > { %5632 = vperm.xlu1 %6751, %v9294_v35  }
 0xc7b   : > { %v5563_v37 = vpop.permute.xlu1 %5562 }
 0xc80   : > { %v5296_v1 = vpop.permute.xlu1 %5295 }
 0xc85   : > { %v5520_v10 = vpop.permute.xlu1 %5519 }
 0xc8a   : > { %v5605_v32 = vpop.permute.xlu1 %5604 }
 0xc8e   : > { %v5609_v39 = vpop.permute.xlu1 %5608 }
 0xc93   : > { %v5573_v8 = vpop.permute.xlu1 %5572 }
 0xc98   : > { %v5304_v5 = vpop.permute.xlu1 %5303 }
 0xc9d   : > { %v5530_v50 = vpop.permute.xlu1 %5529 }
 0xca2   : > { %v5613_v4 = vpop.permute.xlu1 %5612 }
 0xca6   : > { %v5617_v15 = vpop.permute.xlu1 %5616 }
 0xcab   : > { %v5583_v62 = vpop.permute.xlu1 %5582 }
 0xcaf   : > { %v5545_v57 = vpop.permute.xlu1 %5544 }
 0xcb4   : > { %v5625_v58 = vpop.permute.xlu1 %5624 }
 0xcb9   : > { %v5588_v7 = vpop.permute.xlu1 %5587 }
 0xcbe   : > { %v5629_v40 = vpop.permute.xlu1 %5628 }
 0xcd1   : > { %v6341_v33 = vpop.f32.mrb[0].mxu1 }
 0xcd2   : > { %v5373_v14 = vadd.f32 %v6341_v33, %v5284_v13  ;;  %v5364_v11 = vpop.f32.mrb[1].mxu1 }
 0xcd3   : > { %v5365_v52 = vadd.f32 %v5364_v11, %v5276_v21  ;;  %v6342_v25 = vpop.f32.mrb[2].mxu1 }
 0xcd4   : > { %v5397_v60 = vmax.f32 %v5373_v14, 0.0  ;;  %v5376_v28 = vadd.f32 %v6342_v25, %v5288_v12  ;;  %v5367_v36 = vpop.f32.mrb[3].mxu1 }
 0xcd5   : > { %v5395_v56 = vmax.f32 %v5365_v52, 0.0  ;;  %v5368_v34 = vadd.f32 %v5367_v36, %v5280_v24 }
 0xcd6   : > { %v5549_v43 = vsub.f32 %v5397_v60, %v5520_v10  ;;  %v5398_v54 = vmax.f32 %v5376_v28, 0.0 }
 0xcd7   : > { %v5547_v18 = vsub.f32 %v5395_v56, %v5510_v42  ;;  %v5396_v23 = vmax.f32 %v5368_v34, 0.0 }
 0xcd8   : > { %v5597_v41 = vmul.f32 %v5568_v59, %v5549_v43  ;;  %v5550_v2 = vsub.f32 %v5398_v54, %v5525_v16 }
 0xcd9   : > { %v5595_v63 = vmul.f32 %v5558_v17, %v5547_v18  ;;  %v5548_v35 = vsub.f32 %v5396_v23, %v5515_v47  ;;  %v6345_v49 = vpop.f32.mrb[4].mxu1 }
 0xcda   : > { %v5598_v38 = vmul.f32 %v5573_v8, %v5550_v2  ;;  %v5389_v22 = vadd.f32 %v6345_v49, %v5300_v29  ;;  %v5380_v9 = vpop.f32.mrb[5].mxu1  ;;  %v5637_v51 = vadd.f32 %v5613_v4, %v5597_v41  ;;  %v5633_v4 = vpop.permute.xlu1 %5632 }
 0xcdb   : > { %v5596_v26 = vmul.f32 %v5563_v37, %v5548_v35  ;;  %v5381_v6 = vadd.f32 %v5380_v9, %v5292_v20  ;;  %v6346_v27 = vpop.f32.mrb[6].mxu1  ;;  %v5635_v48 = vadd.f32 %v5605_v32, %v5595_v63  ;;  %v5593_v20 = vpop.permute.xlu0 %5592 }
 0xcdc   : > { %v5638_v55 = vadd.f32 %v5617_v15, %v5598_v38  ;;  %v5401_v44 = vmax.f32 %v5389_v22, 0.0  ;;  %v5392_v46 = vadd.f32 %v6346_v27, %v5304_v5  ;;  %v5383_v30 = vpop.f32.mrb[7].mxu1 }
 0xcdd   : > { %v5636_v19 = vadd.f32 %v5609_v39, %v5596_v26  ;;  %v5399_v31 = vmax.f32 %v5381_v6, 0.0  ;;  %v5384_v24 = vadd.f32 %v5383_v30, %v5296_v1 }
 0xcde   : > { %v5402_v13 = vmax.f32 %v5392_v46, 0.0  ;;  %v5553_v42 = vsub.f32 %v5401_v44, %v5540_v3  ;;  %v6394_v17 = vpack.c.bf16 %v5638_v55, %v5637_v51 }
 0xcdf   : > { %v5551_v10 = vsub.f32 %v5399_v31, %v5530_v50  ;;  %v5400_v21 = vmax.f32 %v5384_v24, 0.0  ;;  %v6391_v12 = vpack.c.bf16 %v5636_v19, %v5635_v48 }
 0xce0   : > { %v5554_v8 = vsub.f32 %v5402_v13, %v5545_v57  ;;  %v5601_v37 = vmul.f32 %v5588_v7, %v5553_v42  ;;  %v5643_v57 = vld [vmem:[%s9098_s4] sm:$0x1] }
 0xce1   : > { %v5599_v29 = vmul.f32 %v5578_v0, %v5551_v10  ;;  %v5552_v47 = vsub.f32 %v5400_v21, %v5535_v61  ;;  %6392 = vmatpush3.bf16.msra.mxu0 %v6391_v12 }
 0xce2   : > { %v5602_v15 = vmul.f32 %v5593_v20, %v5554_v8  ;;  %6393 = vmatprep.subr.bf16.mxu0 %v6920_v53  ;;  %v5641_v39 = vadd.f32 %v5629_v40, %v5601_v37 }
 0xce3   : > { %v5600_v32 = vmul.f32 %v5583_v62, %v5552_v47  ;;  %v5639_v1 = vadd.f32 %v9047_v45, %v5599_v29  ;;  %v5647_v62 = vpop.permute.xlu0 %5646 }
 0xce4   : > { %v5642_v5 = vadd.f32 %v5633_v4, %v5602_v15 }
 0xce5   : > { %v5640_v16 = vadd.f32 %v5625_v58, %v5600_v32  ;;  %6395 = vmatpush3.bf16.msra.mxu0 %v6394_v17 }
 0xce6   : > { %v6400_v50 = vpack.c.bf16 %v5642_v5, %v5641_v39  ;;  %6396 = vmatprep.subr.bf16.mxu0 %v6920_v53 }
 0xce7   : > { %v6397_v59 = vpack.c.bf16 %v5640_v16, %v5639_v1 }
 0xce9   : > { %6398 = vmatpush3.bf16.msra.mxu0 %v6397_v59 }
 0xcea   : > { %6399 = vmatprep.subr.bf16.mxu0 %v6920_v53 }
 0xced   : > { %6401 = vmatpush3.bf16.msra.mxu0 %v6400_v50 }
 0xcf0   : > { %6364 = vmatmul.mubr.msk.f32.vlgmr.msra.gmra.mrb[16].mxu0 %vm4656_vm0, %v5643_v57 }
 0xdc3   : > { %v5718_v61 = vpop.f32.mrb[16].mxu0 }
 0xdc4   : > { %v5719_v33 = vadd.f32 %v5718_v61, %v5647_v62  ;;  %v6365_v45 = vpop.f32.mrb[17].mxu0 }
 0xdc6   : > { %v5921_v58 = vmul.f32 -1.442695, %v5719_v33 }
 0xdc8   : > { %6829 = vpow2.f32 %v5921_v58 }
 0xdd2   : > { %v6830_v14 = vpop.eup %6829 }
 0xdd3   : > { %v5725_v11 = vadd.f32 1.0, %v6830_v14 }
 0xdd5   : > { %6831 = vrcp.f32 %v5725_v11 }
 0xddf   : > { %v6832_v52 = vpop.eup %6831 }
 0xde0   : > { %5729 = vst.msk [vmem:[#allocation8] sm:$0x1] %vm5728_vm10, %v6832_v52 }
 0xde1 PF: > { %p9059_p8 = scmp.eq.s32.totalorder %s5792_s24, 3  ;;  %s6924_s20 = smov [#allocation8]  }
 0xde2   : > { %s5739_s26 = sshll.u32 %s6924_s20, 4  ;;  %s5740_s26 = int_to_ptr.vmem [resolvable:$true] %s5739_s26 }
 0xde3   : > { %s6833_s27 = scalar_lea.vmem %s5740_s26, 16  ;;  %s6839_s28 = scalar_lea.vmem %s5740_s26, 32 }
 0xde4   : > { %p6834_p9 = scmp.ne.s32.totalorder %s5740_s26, %s6833_s27  ;;  %p6840_p12 = scmp.lt.s32.totalorder %s5740_s26, %s5740_s26 }
 0xde5   : > { %p6841_p13 = scmp.lt.s32.totalorder %s6839_s28, %s6833_s27 }
 0xde6   : > { %p6835_p10 = pnand %p6834_p9, %p9059_p8 }
 0xde7   : > { %p6842_p0 = por %p6841_p13, %p6840_p12 }
 0xde8   : > { %p6836_p11 = pneg %p6835_p10 }
 0xdea   : > { %p6843_p1 = pnand %p6842_p0, %p6836_p11 }
 0xdec   : > { %6846 = shalt.err (!%p6843_p1)
}
 0xded   : > { %s6847_s30 = scalar_lea.hbm %s9100_s6, 16 }
 0xdee   : > { %p6848_p2 = scmp.ne.s32.totalorder %s9100_s6, %s6847_s30  ;;  %p6853_p5 = scmp.lt.u32.totalorder %s6847_s30, %s9100_s6 }
 0xdf0   : > { %p6849_p3 = pnand %p6848_p2, %p9059_p8 }
 0xdf2   : > { %p6850_p4 = pneg %p6849_p3 }
 0xdf4   : > { %p6855_p6 = pnand %p6853_p5, %p6850_p4 }
 0xdf6   : > { %6858 = shalt.err (!%p6855_p6)
}
 0xdf7   : > { %6407 = dma.vmem_to_hbm [thread:$0]  (%p9059_p8), %s5740_s26, 16, %s9100_s6, [#allocation9]  }
 0xdf8   : > { %6872 = dma.done.wait (%p9059_p8), [#allocation9], 16  }
 0xdf9   : > { %6874 = vsyncadd (%p9059_p8), [#allocation9], 4294967280 }
 0xdfa PF: > { %s17_s23 = sadd.s32 1, %s6885_s23   ;;  %s9301_s21 = smov %s6881_s22 }
 0xdfb   : > { %p14_p7 = scmp.ge.s32.totalorder %s17_s23, 6   ;;  %s9302_s22 = smov %s9304_s25 }
 0xdfd   :  { %16 = sbr.rel (!%p14_p7) target bundleno = 2 (0x2), region = 100 }
 0xe04   :  { %5752 = vsyncpa [#allocation9], 1 }
 0xe05   :  { %5754 = vsyncpa [#allocation9 + $0x1], 1 }

</bundles_post_ra>
